<compile_context>
chip_gen: v6e
topology: v6e:2x2x1
jax: 0.10.0
libtpu: 0.0.40
codegen_flags: <defaults>
</compile_context>

<pallas_src>
import functools

import jax
import jax.numpy as jnp
from jax.experimental import pallas as pl
from jax.experimental.pallas import tpu as pltpu

LN_EPS = 1e-5
MATMUL_DTYPE = jnp.bfloat16   # MXU operand dtype; accumulation stays f32.


def _layernorm(x, w, b):
    # x: (N, D) f32, w/b: (1, D) f32
    mean = jnp.mean(x, axis=-1, keepdims=True)
    var = jnp.mean((x - mean) ** 2, axis=-1, keepdims=True)
    return (x - mean) * jax.lax.rsqrt(var + LN_EPS) * w + b


def transformer_layer_kernel(x_ref,
                             aln_w_ref, aln_b_ref, wq_ref, wk_ref, wv_ref,
                             wout_ref, bout_ref,
                             fln_w_ref, fln_b_ref, w1_ref, b1_ref, w2_ref,
                             b2_ref, o_ref, *, heads):
    f32 = jnp.float32
    x = x_ref[0]                                       # (N, D) f32 residual stream
    n, d = x.shape

    # ---------------- attention: Residual(PreNorm(Attention)) ----------------
    xn = _layernorm(x, aln_w_ref[...], aln_b_ref[...])
    # Broadcast over the (untiled) head axis so every projection is one batched
    # MXU einsum -- no per-head loop, no lane slicing, no concat.
    xn_h = jnp.broadcast_to(xn.astype(MATMUL_DTYPE)[None], (heads, n, d))

    # Softmax scale is pre-folded into wq (wrapper side).
    q = jnp.einsum('hnd,hed->hne', xn_h, wq_ref[...], preferred_element_type=f32)
    k = jnp.einsum('hnd,hed->hne', xn_h, wk_ref[...], preferred_element_type=f32)
    v = jnp.einsum('hnd,hed->hne', xn_h, wv_ref[...], preferred_element_type=f32)

    dots = jnp.einsum('hqe,hke->hqk', q.astype(MATMUL_DTYPE),
                      k.astype(MATMUL_DTYPE), preferred_element_type=f32)
    dots = dots - jnp.max(dots, axis=-1, keepdims=True)        # stable softmax (f32)
    probs = jnp.exp(dots)
    probs = probs * pl.reciprocal(jnp.sum(probs, axis=-1, keepdims=True),
                                  approx=True)

    ctx = jnp.einsum('hqk,hke->hqe', probs.astype(MATMUL_DTYPE),
                     v.astype(MATMUL_DTYPE), preferred_element_type=f32)

    # Output projection applied per head and summed over heads:
    #   sum_h ctx[h] @ Wout.T[h*dh:(h+1)*dh, :]  ==  concat_h(ctx[h]) @ Wout.T
    attn_out = jnp.einsum('hne,hed->hnd', ctx.astype(MATMUL_DTYPE),
                          wout_ref[...], preferred_element_type=f32)
    x = x + jnp.sum(attn_out, axis=0) + bout_ref[...]          # residual

    # ---------------- feed-forward: Residual(PreNorm(FeedForward)) -----------
    xn = _layernorm(x, fln_w_ref[...], fln_b_ref[...])
    h1 = jnp.dot(xn.astype(MATMUL_DTYPE), w1_ref[...], preferred_element_type=f32)
    h1 = jnp.maximum(h1 + b1_ref[...], 0.0)                    # ReLU
    ff_out = jnp.dot(h1.astype(MATMUL_DTYPE), w2_ref[...],
                     preferred_element_type=f32)
    o_ref[0] = (x + ff_out + b2_ref[...]).astype(o_ref.dtype)  # residual


def transformer_layer(x, params, *, heads):
    B, N, D = x.shape
    assert D % heads == 0
    dh = D // heads
    scale = float(D) ** (-0.5)   # matches the module: dim**-0.5 (not head_dim**-0.5)

    # Wrapper-side weight plumbing (free XLA ops outside the kernel):
    #  * per-head (heads, dh, D) operands for qkv / out-proj (lane-dense, D last),
    #  * softmax scale folded into Wq,
    #  * FF weights pre-transposed to (in, out),
    #  * bf16 MXU operands.
    w_qkv = params["w_qkv"]                                   # (3D, D), rows = (q|k|v, head, dh)
    wq = (w_qkv[:D] * scale).reshape(heads, dh, D).astype(MATMUL_DTYPE)
    wk = w_qkv[D:2 * D].reshape(heads, dh, D).astype(MATMUL_DTYPE)
    wv = w_qkv[2 * D:].reshape(heads, dh, D).astype(MATMUL_DTYPE)
    wout = params["w_out"].T.reshape(heads, dh, D).astype(MATMUL_DTYPE)
    w1_t = params["w1"].T.astype(MATMUL_DTYPE)                # (D, H)
    w2_t = params["w2"].T.astype(MATMUL_DTYPE)                # (H, D)

    # Whole-array, single-copy VMEM residents for constant operands (no per-step
    # re-streaming, no double-buffer allocation).
    vmem = pl.BlockSpec(memory_space=pltpu.MemorySpace.VMEM)

    kernel = functools.partial(transformer_layer_kernel, heads=heads)
    return pl.pallas_call(
        kernel,
        out_shape=jax.ShapeDtypeStruct((B, N, D), x.dtype),
        grid=(B,),
        in_specs=[pl.BlockSpec((1, N, D), lambda b: (b, 0, 0))] + [vmem] * 13,
        out_specs=pl.BlockSpec((1, N, D), lambda b: (b, 0, 0)),
        input_output_aliases={0: 0},   # residual stream updated in place
        compiler_params=pltpu.CompilerParams(
            dimension_semantics=("parallel",),
            vmem_limit_bytes=64 * 1024 * 1024),
    )(x, params["attn_ln_w"], params["attn_ln_b"], wq, wk, wv, wout,
      params["b_out"], params["ff_ln_w"], params["ff_ln_b"],
      w1_t, params["b1"], w2_t, params["b2"])


def init_transformer_params(key, dim, depth, heads, mlp_dim):
    """Deterministic parameter init (PyTorch-like uniform for Linear,
    ones/zeros for LayerNorm). qkv projection has no bias (bias=False)."""
    del heads  # layout handled at call time
    params = []
    for _ in range(depth):
        keys = jax.random.split(key, 8)
        key = keys[0]

        def lin(k, out_f, in_f):
            bound = 1.0 / jnp.sqrt(in_f)
            return jax.random.uniform(k, (out_f, in_f), jnp.float32, -bound, bound)

        layer = dict(
            # attention block
            attn_ln_w=jnp.ones((1, dim), jnp.float32),
            attn_ln_b=jnp.zeros((1, dim), jnp.float32),
            w_qkv=lin(keys[1], 3 * dim, dim),                  # bias=False in module
            w_out=lin(keys[2], dim, dim),
            b_out=jax.random.uniform(keys[3], (1, dim), jnp.float32,
                                     -1.0 / jnp.sqrt(dim), 1.0 / jnp.sqrt(dim)),
            # feed-forward block
            ff_ln_w=jnp.ones((1, dim), jnp.float32),
            ff_ln_b=jnp.zeros((1, dim), jnp.float32),
            w1=lin(keys[4], mlp_dim, dim),
            b1=jax.random.uniform(keys[5], (1, mlp_dim), jnp.float32,
                                  -1.0 / jnp.sqrt(dim), 1.0 / jnp.sqrt(dim)),
            w2=lin(keys[6], dim, mlp_dim),
            b2=jax.random.uniform(keys[7], (1, dim), jnp.float32,
                                  -1.0 / jnp.sqrt(mlp_dim), 1.0 / jnp.sqrt(mlp_dim)),
        )
        params.append(layer)
    return params


def transformer_forward(x, params, *, heads):
    for layer in params:
        x = transformer_layer(x, layer, heads=heads)
    return x


if __name__ == "__main__":
    # Small shapes consistent with Transformer(dim, depth, heads, mlp_dim);
    # dim / mlp_dim are multiples of 128 and N a multiple of 8 for lane-dense
    # layouts and unmasked stores.
    B, N, DIM, DEPTH, HEADS, MLP = 2, 16, 128, 2, 8, 256

    key = jax.random.PRNGKey(0)
    k_x, k_p = jax.random.split(key)
    x = jax.random.normal(k_x, (B, N, DIM), jnp.float32)
    params = init_transformer_params(k_p, DIM, DEPTH, HEADS, MLP)

    fwd = jax.jit(functools.partial(transformer_forward, heads=HEADS))
    out = fwd(x, params)
    jax.block_until_ready(out)
    assert out.shape == (B, N, DIM)
    assert bool(jnp.all(jnp.isfinite(out)))
    print("KERNEL_OK")
</pallas_src>

<mosaic_0001>
module attributes {stable_mosaic.version = 11 : i64} {
  func.func @transformer_layer_kernel(%arg0: i32, %arg1: memref<1x16x128xf32, #tpu.memory_space<vmem>>, %arg2: memref<1x128xf32, #tpu.memory_space<vmem>>, %arg3: memref<1x128xf32, #tpu.memory_space<vmem>>, %arg4: memref<8x16x128xbf16, #tpu.memory_space<vmem>>, %arg5: memref<8x16x128xbf16, #tpu.memory_space<vmem>>, %arg6: memref<8x16x128xbf16, #tpu.memory_space<vmem>>, %arg7: memref<8x16x128xbf16, #tpu.memory_space<vmem>>, %arg8: memref<1x128xf32, #tpu.memory_space<vmem>>, %arg9: memref<1x128xf32, #tpu.memory_space<vmem>>, %arg10: memref<1x128xf32, #tpu.memory_space<vmem>>, %arg11: memref<128x256xbf16, #tpu.memory_space<vmem>>, %arg12: memref<1x256xf32, #tpu.memory_space<vmem>>, %arg13: memref<256x128xbf16, #tpu.memory_space<vmem>>, %arg14: memref<1x128xf32, #tpu.memory_space<vmem>>, %arg15: memref<1x16x128xf32, #tpu.memory_space<vmem>>) attributes {dimension_semantics = [#tpu.dimension_semantics<parallel>], iteration_bounds = array<i64: 2>, scalar_prefetch = 0 : i64, scratch_operands = 0 : i64, tpu.core_type = #tpu.core_type<tc>, window_params = [{transform_indices = @transform_0, window_bounds = array<i64: 1, 16, 128>}, {pipeline_mode = #tpu.pipeline_mode<synchronous>, transform_indices = @transform_1, window_bounds = array<i64: 1, 128>}, {pipeline_mode = #tpu.pipeline_mode<synchronous>, transform_indices = @transform_2, window_bounds = array<i64: 1, 128>}, {pipeline_mode = #tpu.pipeline_mode<synchronous>, transform_indices = @transform_3, window_bounds = array<i64: 8, 16, 128>}, {pipeline_mode = #tpu.pipeline_mode<synchronous>, transform_indices = @transform_4, window_bounds = array<i64: 8, 16, 128>}, {pipeline_mode = #tpu.pipeline_mode<synchronous>, transform_indices = @transform_5, window_bounds = array<i64: 8, 16, 128>}, {pipeline_mode = #tpu.pipeline_mode<synchronous>, transform_indices = @transform_6, window_bounds = array<i64: 8, 16, 128>}, {pipeline_mode = #tpu.pipeline_mode<synchronous>, transform_indices = @transform_7, window_bounds = array<i64: 1, 128>}, {pipeline_mode = #tpu.pipeline_mode<synchronous>, transform_indices = @transform_8, window_bounds = array<i64: 1, 128>}, {pipeline_mode = #tpu.pipeline_mode<synchronous>, transform_indices = @transform_9, window_bounds = array<i64: 1, 128>}, {pipeline_mode = #tpu.pipeline_mode<synchronous>, transform_indices = @transform_10, window_bounds = array<i64: 128, 256>}, {pipeline_mode = #tpu.pipeline_mode<synchronous>, transform_indices = @transform_11, window_bounds = array<i64: 1, 256>}, {pipeline_mode = #tpu.pipeline_mode<synchronous>, transform_indices = @transform_12, window_bounds = array<i64: 256, 128>}, {pipeline_mode = #tpu.pipeline_mode<synchronous>, transform_indices = @transform_13, window_bounds = array<i64: 1, 128>}, {transform_indices = @transform_14, window_bounds = array<i64: 1, 16, 128>}]} {
    %c0 = arith.constant 0 : index
    %c0_0 = arith.constant 0 : index
    %c0_1 = arith.constant 0 : index
    %0 = vector.load %arg1[%c0, %c0_0, %c0_1] : memref<1x16x128xf32, #tpu.memory_space<vmem>>, vector<1x16x128xf32>
    %1 = vector.shape_cast %0 : vector<1x16x128xf32> to vector<16x128xf32>
    %c0_2 = arith.constant 0 : index
    %c0_3 = arith.constant 0 : index
    %2 = vector.load %arg2[%c0_2, %c0_3] : memref<1x128xf32, #tpu.memory_space<vmem>>, vector<1x128xf32>
    %c0_4 = arith.constant 0 : index
    %c0_5 = arith.constant 0 : index
    %3 = vector.load %arg3[%c0_4, %c0_5] : memref<1x128xf32, #tpu.memory_space<vmem>>, vector<1x128xf32>
    %cst = arith.constant dense<0.000000e+00> : vector<16xf32>
    %4 = vector.multi_reduction <add>, %1, %cst [1] : vector<16x128xf32> to vector<16xf32>
    %5 = vector.shape_cast %4 : vector<16xf32> to vector<16x1xf32>
    %cst_6 = arith.constant 1.280000e+02 : f32
    %6 = vector.broadcast %cst_6 : f32 to vector<16x1xf32>
    %7 = arith.divf %5, %6 : vector<16x1xf32>
    %8 = vector.broadcast %7 : vector<16x1xf32> to vector<16x128xf32>
    %9 = arith.subf %1, %8 : vector<16x128xf32>
    %10 = arith.mulf %9, %9 : vector<16x128xf32>
    %cst_7 = arith.constant dense<0.000000e+00> : vector<16xf32>
    %11 = vector.multi_reduction <add>, %10, %cst_7 [1] : vector<16x128xf32> to vector<16xf32>
    %12 = vector.shape_cast %11 : vector<16xf32> to vector<16x1xf32>
    %cst_8 = arith.constant 1.280000e+02 : f32
    %13 = vector.broadcast %cst_8 : f32 to vector<16x1xf32>
    %14 = arith.divf %12, %13 : vector<16x1xf32>
    %15 = vector.broadcast %7 : vector<16x1xf32> to vector<16x128xf32>
    %16 = arith.subf %1, %15 : vector<16x128xf32>
    %cst_9 = arith.constant 9.99999974E-6 : f32
    %17 = vector.broadcast %cst_9 : f32 to vector<16x1xf32>
    %18 = arith.addf %14, %17 : vector<16x1xf32>
    %19 = math.rsqrt %18 : vector<16x1xf32>
    %20 = vector.broadcast %19 : vector<16x1xf32> to vector<16x128xf32>
    %21 = arith.mulf %16, %20 : vector<16x128xf32>
    %22 = vector.broadcast %2 : vector<1x128xf32> to vector<16x128xf32>
    %23 = arith.mulf %21, %22 : vector<16x128xf32>
    %24 = vector.broadcast %3 : vector<1x128xf32> to vector<16x128xf32>
    %25 = arith.addf %23, %24 : vector<16x128xf32>
    %26 = arith.truncf %25 : vector<16x128xf32> to vector<16x128xbf16>
    %27 = vector.shape_cast %26 : vector<16x128xbf16> to vector<1x16x128xbf16>
    %28 = vector.shape_cast %27 : vector<1x16x128xbf16> to vector<1x16x128xbf16>
    %29 = vector.broadcast %28 : vector<1x16x128xbf16> to vector<8x16x128xbf16>
    %c0_10 = arith.constant 0 : index
    %c0_11 = arith.constant 0 : index
    %c0_12 = arith.constant 0 : index
    %30 = vector.load %arg4[%c0_10, %c0_11, %c0_12] : memref<8x16x128xbf16, #tpu.memory_space<vmem>>, vector<8x16x128xbf16>
    "tpu.trace_start"() <{level = 10 : i32, message = "hnd,hed->hne"}> : () -> ()
    %cst_13 = arith.constant dense<0.000000e+00> : vector<8x16x16xf32>
    %31 = tpu.matmul %29, %30, %cst_13 {dimension_numbers = #tpu.dot_dimension_numbers<[2], [2], [1], [1], [0, 0, 0, 1, 1, 1], [0], [0]>} : vector<8x16x128xbf16>, vector<8x16x128xbf16>, vector<8x16x16xf32> -> vector<8x16x16xf32>
    "tpu.trace_stop"() : () -> ()
    %c0_14 = arith.constant 0 : index
    %c0_15 = arith.constant 0 : index
    %c0_16 = arith.constant 0 : index
    %32 = vector.load %arg5[%c0_14, %c0_15, %c0_16] : memref<8x16x128xbf16, #tpu.memory_space<vmem>>, vector<8x16x128xbf16>
    "tpu.trace_start"() <{level = 10 : i32, message = "hnd,hed->hne"}> : () -> ()
    %cst_17 = arith.constant dense<0.000000e+00> : vector<8x16x16xf32>
    %33 = tpu.matmul %29, %32, %cst_17 {dimension_numbers = #tpu.dot_dimension_numbers<[2], [2], [1], [1], [0, 0, 0, 1, 1, 1], [0], [0]>} : vector<8x16x128xbf16>, vector<8x16x128xbf16>, vector<8x16x16xf32> -> vector<8x16x16xf32>
    "tpu.trace_stop"() : () -> ()
    %c0_18 = arith.constant 0 : index
    %c0_19 = arith.constant 0 : index
    %c0_20 = arith.constant 0 : index
    %34 = vector.load %arg6[%c0_18, %c0_19, %c0_20] : memref<8x16x128xbf16, #tpu.memory_space<vmem>>, vector<8x16x128xbf16>
    "tpu.trace_start"() <{level = 10 : i32, message = "hnd,hed->hne"}> : () -> ()
    %cst_21 = arith.constant dense<0.000000e+00> : vector<8x16x16xf32>
    %35 = tpu.matmul %29, %34, %cst_21 {dimension_numbers = #tpu.dot_dimension_numbers<[2], [2], [1], [1], [0, 0, 0, 1, 1, 1], [0], [0]>} : vector<8x16x128xbf16>, vector<8x16x128xbf16>, vector<8x16x16xf32> -> vector<8x16x16xf32>
    "tpu.trace_stop"() : () -> ()
    %36 = arith.truncf %31 : vector<8x16x16xf32> to vector<8x16x16xbf16>
    %37 = arith.truncf %33 : vector<8x16x16xf32> to vector<8x16x16xbf16>
    "tpu.trace_start"() <{level = 10 : i32, message = "hqe,hke->hqk"}> : () -> ()
    %cst_22 = arith.constant dense<0.000000e+00> : vector<8x16x16xf32>
    %38 = tpu.matmul %36, %37, %cst_22 {dimension_numbers = #tpu.dot_dimension_numbers<[2], [2], [1], [1], [0, 0, 0, 1, 1, 1], [0], [0]>} : vector<8x16x16xbf16>, vector<8x16x16xbf16>, vector<8x16x16xf32> -> vector<8x16x16xf32>
    "tpu.trace_stop"() : () -> ()
    %cst_23 = arith.constant dense<0xFF800000> : vector<8x16xf32>
    %39 = vector.multi_reduction <maximumf>, %38, %cst_23 [2] : vector<8x16x16xf32> to vector<8x16xf32>
    %40 = vector.shape_cast %39 : vector<8x16xf32> to vector<8x16x1xf32>
    %41 = vector.broadcast %40 : vector<8x16x1xf32> to vector<8x16x16xf32>
    %42 = arith.subf %38, %41 : vector<8x16x16xf32>
    %43 = math.exp %42 : vector<8x16x16xf32>
    %cst_24 = arith.constant dense<0.000000e+00> : vector<8x16xf32>
    %44 = vector.multi_reduction <add>, %43, %cst_24 [2] : vector<8x16x16xf32> to vector<8x16xf32>
    %45 = vector.shape_cast %44 : vector<8x16xf32> to vector<8x16x1xf32>
    %46 = tpu.reciprocal %45 {approx = true} : vector<8x16x1xf32> -> vector<8x16x1xf32>
    %47 = vector.broadcast %46 : vector<8x16x1xf32> to vector<8x16x16xf32>
    %48 = arith.mulf %43, %47 : vector<8x16x16xf32>
    %49 = arith.truncf %48 : vector<8x16x16xf32> to vector<8x16x16xbf16>
    %50 = arith.truncf %35 : vector<8x16x16xf32> to vector<8x16x16xbf16>
    "tpu.trace_start"() <{level = 10 : i32, message = "hqk,hke->hqe"}> : () -> ()
    %cst_25 = arith.constant dense<0.000000e+00> : vector<8x16x16xf32>
    %51 = tpu.matmul %49, %50, %cst_25 {dimension_numbers = #tpu.dot_dimension_numbers<[2], [1], [1], [2], [0, 0, 0, 1, 1, 2], [0], [0]>} : vector<8x16x16xbf16>, vector<8x16x16xbf16>, vector<8x16x16xf32> -> vector<8x16x16xf32>
    "tpu.trace_stop"() : () -> ()
    %52 = arith.truncf %51 : vector<8x16x16xf32> to vector<8x16x16xbf16>
    %c0_26 = arith.constant 0 : index
    %c0_27 = arith.constant 0 : index
    %c0_28 = arith.constant 0 : index
    %53 = vector.load %arg7[%c0_26, %c0_27, %c0_28] : memref<8x16x128xbf16, #tpu.memory_space<vmem>>, vector<8x16x128xbf16>
    "tpu.trace_start"() <{level = 10 : i32, message = "hne,hed->hnd"}> : () -> ()
    %cst_29 = arith.constant dense<0.000000e+00> : vector<8x16x128xf32>
    %54 = tpu.matmul %52, %53, %cst_29 {dimension_numbers = #tpu.dot_dimension_numbers<[2], [1], [1], [2], [0, 0, 0, 1, 1, 2], [0], [0]>} : vector<8x16x16xbf16>, vector<8x16x128xbf16>, vector<8x16x128xf32> -> vector<8x16x128xf32>
    "tpu.trace_stop"() : () -> ()
    %cst_30 = arith.constant dense<0.000000e+00> : vector<16x128xf32>
    %55 = vector.multi_reduction <add>, %54, %cst_30 [0] : vector<8x16x128xf32> to vector<16x128xf32>
    %56 = arith.addf %1, %55 : vector<16x128xf32>
    %c0_31 = arith.constant 0 : index
    %c0_32 = arith.constant 0 : index
    %57 = vector.load %arg8[%c0_31, %c0_32] : memref<1x128xf32, #tpu.memory_space<vmem>>, vector<1x128xf32>
    %58 = vector.broadcast %57 : vector<1x128xf32> to vector<16x128xf32>
    %59 = arith.addf %56, %58 : vector<16x128xf32>
    %c0_33 = arith.constant 0 : index
    %c0_34 = arith.constant 0 : index
    %60 = vector.load %arg9[%c0_33, %c0_34] : memref<1x128xf32, #tpu.memory_space<vmem>>, vector<1x128xf32>
    %c0_35 = arith.constant 0 : index
    %c0_36 = arith.constant 0 : index
    %61 = vector.load %arg10[%c0_35, %c0_36] : memref<1x128xf32, #tpu.memory_space<vmem>>, vector<1x128xf32>
    %cst_37 = arith.constant dense<0.000000e+00> : vector<16xf32>
    %62 = vector.multi_reduction <add>, %59, %cst_37 [1] : vector<16x128xf32> to vector<16xf32>
    %63 = vector.shape_cast %62 : vector<16xf32> to vector<16x1xf32>
    %cst_38 = arith.constant 1.280000e+02 : f32
    %64 = vector.broadcast %cst_38 : f32 to vector<16x1xf32>
    %65 = arith.divf %63, %64 : vector<16x1xf32>
    %66 = vector.broadcast %65 : vector<16x1xf32> to vector<16x128xf32>
    %67 = arith.subf %59, %66 : vector<16x128xf32>
    %68 = arith.mulf %67, %67 : vector<16x128xf32>
    %cst_39 = arith.constant dense<0.000000e+00> : vector<16xf32>
    %69 = vector.multi_reduction <add>, %68, %cst_39 [1] : vector<16x128xf32> to vector<16xf32>
    %70 = vector.shape_cast %69 : vector<16xf32> to vector<16x1xf32>
    %cst_40 = arith.constant 1.280000e+02 : f32
    %71 = vector.broadcast %cst_40 : f32 to vector<16x1xf32>
    %72 = arith.divf %70, %71 : vector<16x1xf32>
    %73 = vector.broadcast %65 : vector<16x1xf32> to vector<16x128xf32>
    %74 = arith.subf %59, %73 : vector<16x128xf32>
    %cst_41 = arith.constant 9.99999974E-6 : f32
    %75 = vector.broadcast %cst_41 : f32 to vector<16x1xf32>
    %76 = arith.addf %72, %75 : vector<16x1xf32>
    %77 = math.rsqrt %76 : vector<16x1xf32>
    %78 = vector.broadcast %77 : vector<16x1xf32> to vector<16x128xf32>
    %79 = arith.mulf %74, %78 : vector<16x128xf32>
    %80 = vector.broadcast %60 : vector<1x128xf32> to vector<16x128xf32>
    %81 = arith.mulf %79, %80 : vector<16x128xf32>
    %82 = vector.broadcast %61 : vector<1x128xf32> to vector<16x128xf32>
    %83 = arith.addf %81, %82 : vector<16x128xf32>
    %84 = arith.truncf %83 : vector<16x128xf32> to vector<16x128xbf16>
    %c0_42 = arith.constant 0 : index
    %c0_43 = arith.constant 0 : index
    %85 = vector.load %arg11[%c0_42, %c0_43] : memref<128x256xbf16, #tpu.memory_space<vmem>>, vector<128x256xbf16>
    %cst_44 = arith.constant dense<0.000000e+00> : vector<16x256xf32>
    %86 = tpu.matmul %84, %85, %cst_44 {dimension_numbers = #tpu.dot_dimension_numbers<[1], [0], [0], [1], [0, 0, 1, 1], [], []>} : vector<16x128xbf16>, vector<128x256xbf16>, vector<16x256xf32> -> vector<16x256xf32>
    %c0_45 = arith.constant 0 : index
    %c0_46 = arith.constant 0 : index
    %87 = vector.load %arg12[%c0_45, %c0_46] : memref<1x256xf32, #tpu.memory_space<vmem>>, vector<1x256xf32>
    %88 = vector.broadcast %87 : vector<1x256xf32> to vector<16x256xf32>
    %89 = arith.addf %86, %88 : vector<16x256xf32>
    %cst_47 = arith.constant 0.000000e+00 : f32
    %90 = vector.broadcast %cst_47 : f32 to vector<16x256xf32>
    %91 = arith.maximumf %89, %90 : vector<16x256xf32>
    %92 = arith.truncf %91 : vector<16x256xf32> to vector<16x256xbf16>
    %c0_48 = arith.constant 0 : index
    %c0_49 = arith.constant 0 : index
    %93 = vector.load %arg13[%c0_48, %c0_49] : memref<256x128xbf16, #tpu.memory_space<vmem>>, vector<256x128xbf16>
    %cst_50 = arith.constant dense<0.000000e+00> : vector<16x128xf32>
    %94 = tpu.matmul %92, %93, %cst_50 {dimension_numbers = #tpu.dot_dimension_numbers<[1], [0], [0], [1], [0, 0, 1, 1], [], []>} : vector<16x256xbf16>, vector<256x128xbf16>, vector<16x128xf32> -> vector<16x128xf32>
    %95 = arith.addf %59, %94 : vector<16x128xf32>
    %c0_51 = arith.constant 0 : index
    %c0_52 = arith.constant 0 : index
    %96 = vector.load %arg14[%c0_51, %c0_52] : memref<1x128xf32, #tpu.memory_space<vmem>>, vector<1x128xf32>
    %97 = vector.broadcast %96 : vector<1x128xf32> to vector<16x128xf32>
    %98 = arith.addf %95, %97 : vector<16x128xf32>
    %c0_53 = arith.constant 0 : index
    %c0_54 = arith.constant 0 : index
    %c0_55 = arith.constant 0 : index
    %99 = vector.load %arg15[%c0_53, %c0_54, %c0_55] : memref<1x16x128xf32, #tpu.memory_space<vmem>>, vector<1x16x128xf32>
    %100 = vector.shape_cast %99 : vector<1x16x128xf32> to vector<16x128xf32>
    %101 = vector.shape_cast %98 : vector<16x128xf32> to vector<1x16x128xf32>
    tpu.vector_store %arg15[%c0_53, %c0_54, %c0_55], %101 {strides = array<i32>} : memref<1x16x128xf32, #tpu.memory_space<vmem>>, vector<1x16x128xf32>,
    return
  }
  func.func @transform_0(%arg0: i32) -> (i32, i32, i32) {
    %c0_i32 = arith.constant 0 : i32
    %c0_i32_0 = arith.constant 0 : i32
    %c0_i32_1 = arith.constant 0 : i32
    return %arg0, %c0_i32, %c0_i32_0 : i32, i32, i32
  }
  func.func @transform_1(%arg0: i32) -> (i32, i32) {
    %c0_i32 = arith.constant 0 : i32
    %c0_i32_0 = arith.constant 0 : i32
    %c0_i32_1 = arith.constant 0 : i32
    return %c0_i32, %c0_i32_0 : i32, i32
  }
  func.func @transform_2(%arg0: i32) -> (i32, i32) {
    %c0_i32 = arith.constant 0 : i32
    %c0_i32_0 = arith.constant 0 : i32
    %c0_i32_1 = arith.constant 0 : i32
    return %c0_i32, %c0_i32_0 : i32, i32
  }
  func.func @transform_3(%arg0: i32) -> (i32, i32, i32) {
    %c0_i32 = arith.constant 0 : i32
    %c0_i32_0 = arith.constant 0 : i32
    %c0_i32_1 = arith.constant 0 : i32
    %c0_i32_2 = arith.constant 0 : i32
    return %c0_i32, %c0_i32_0, %c0_i32_1 : i32, i32, i32
  }
  func.func @transform_4(%arg0: i32) -> (i32, i32, i32) {
    %c0_i32 = arith.constant 0 : i32
    %c0_i32_0 = arith.constant 0 : i32
    %c0_i32_1 = arith.constant 0 : i32
    %c0_i32_2 = arith.constant 0 : i32
    return %c0_i32, %c0_i32_0, %c0_i32_1 : i32, i32, i32
  }
  func.func @transform_5(%arg0: i32) -> (i32, i32, i32) {
    %c0_i32 = arith.constant 0 : i32
    %c0_i32_0 = arith.constant 0 : i32
    %c0_i32_1 = arith.constant 0 : i32
    %c0_i32_2 = arith.constant 0 : i32
    return %c0_i32, %c0_i32_0, %c0_i32_1 : i32, i32, i32
  }
  func.func @transform_6(%arg0: i32) -> (i32, i32, i32) {
    %c0_i32 = arith.constant 0 : i32
    %c0_i32_0 = arith.constant 0 : i32
    %c0_i32_1 = arith.constant 0 : i32
    %c0_i32_2 = arith.constant 0 : i32
    return %c0_i32, %c0_i32_0, %c0_i32_1 : i32, i32, i32
  }
  func.func @transform_7(%arg0: i32) -> (i32, i32) {
    %c0_i32 = arith.constant 0 : i32
    %c0_i32_0 = arith.constant 0 : i32
    %c0_i32_1 = arith.constant 0 : i32
    return %c0_i32, %c0_i32_0 : i32, i32
  }
  func.func @transform_8(%arg0: i32) -> (i32, i32) {
    %c0_i32 = arith.constant 0 : i32
    %c0_i32_0 = arith.constant 0 : i32
    %c0_i32_1 = arith.constant 0 : i32
    return %c0_i32, %c0_i32_0 : i32, i32
  }
  func.func @transform_9(%arg0: i32) -> (i32, i32) {
    %c0_i32 = arith.constant 0 : i32
    %c0_i32_0 = arith.constant 0 : i32
    %c0_i32_1 = arith.constant 0 : i32
    return %c0_i32, %c0_i32_0 : i32, i32
  }
  func.func @transform_10(%arg0: i32) -> (i32, i32) {
    %c0_i32 = arith.constant 0 : i32
    %c0_i32_0 = arith.constant 0 : i32
    %c0_i32_1 = arith.constant 0 : i32
    return %c0_i32, %c0_i32_0 : i32, i32
  }
  func.func @transform_11(%arg0: i32) -> (i32, i32) {
    %c0_i32 = arith.constant 0 : i32
    %c0_i32_0 = arith.constant 0 : i32
    %c0_i32_1 = arith.constant 0 : i32
    return %c0_i32, %c0_i32_0 : i32, i32
  }
  func.func @transform_12(%arg0: i32) -> (i32, i32) {
    %c0_i32 = arith.constant 0 : i32
    %c0_i32_0 = arith.constant 0 : i32
    %c0_i32_1 = arith.constant 0 : i32
    return %c0_i32, %c0_i32_0 : i32, i32
  }
  func.func @transform_13(%arg0: i32) -> (i32, i32) {
    %c0_i32 = arith.constant 0 : i32
    %c0_i32_0 = arith.constant 0 : i32
    %c0_i32_1 = arith.constant 0 : i32
    return %c0_i32, %c0_i32_0 : i32, i32
  }
  func.func @transform_14(%arg0: i32) -> (i32, i32, i32) {
    %c0_i32 = arith.constant 0 : i32
    %c0_i32_0 = arith.constant 0 : i32
    %c0_i32_1 = arith.constant 0 : i32
    return %arg0, %c0_i32, %c0_i32_0 : i32, i32, i32
  }
}

module attributes {stable_mosaic.version = 11 : i64} {
  func.func @transformer_layer_kernel(%arg0: i32, %arg1: memref<1x16x128xf32, #tpu.memory_space<vmem>>, %arg2: memref<1x128xf32, #tpu.memory_space<vmem>>, %arg3: memref<1x128xf32, #tpu.memory_space<vmem>>, %arg4: memref<8x16x128xbf16, #tpu.memory_space<vmem>>, %arg5: memref<8x16x128xbf16, #tpu.memory_space<vmem>>, %arg6: memref<8x16x128xbf16, #tpu.memory_space<vmem>>, %arg7: memref<8x16x128xbf16, #tpu.memory_space<vmem>>, %arg8: memref<1x128xf32, #tpu.memory_space<vmem>>, %arg9: memref<1x128xf32, #tpu.memory_space<vmem>>, %arg10: memref<1x128xf32, #tpu.memory_space<vmem>>, %arg11: memref<128x256xbf16, #tpu.memory_space<vmem>>, %arg12: memref<1x256xf32, #tpu.memory_space<vmem>>, %arg13: memref<256x128xbf16, #tpu.memory_space<vmem>>, %arg14: memref<1x128xf32, #tpu.memory_space<vmem>>, %arg15: memref<1x16x128xf32, #tpu.memory_space<vmem>>) attributes {dimension_semantics = [#tpu.dimension_semantics<parallel>], iteration_bounds = array<i64: 2>, scalar_prefetch = 0 : i64, scratch_operands = 0 : i64, tpu.core_type = #tpu.core_type<tc>, window_params = [{transform_indices = @transform_0, window_bounds = array<i64: 1, 16, 128>}, {pipeline_mode = #tpu.pipeline_mode<synchronous>, transform_indices = @transform_1, window_bounds = array<i64: 1, 128>}, {pipeline_mode = #tpu.pipeline_mode<synchronous>, transform_indices = @transform_2, window_bounds = array<i64: 1, 128>}, {pipeline_mode = #tpu.pipeline_mode<synchronous>, transform_indices = @transform_3, window_bounds = array<i64: 8, 16, 128>}, {pipeline_mode = #tpu.pipeline_mode<synchronous>, transform_indices = @transform_4, window_bounds = array<i64: 8, 16, 128>}, {pipeline_mode = #tpu.pipeline_mode<synchronous>, transform_indices = @transform_5, window_bounds = array<i64: 8, 16, 128>}, {pipeline_mode = #tpu.pipeline_mode<synchronous>, transform_indices = @transform_6, window_bounds = array<i64: 8, 16, 128>}, {pipeline_mode = #tpu.pipeline_mode<synchronous>, transform_indices = @transform_7, window_bounds = array<i64: 1, 128>}, {pipeline_mode = #tpu.pipeline_mode<synchronous>, transform_indices = @transform_8, window_bounds = array<i64: 1, 128>}, {pipeline_mode = #tpu.pipeline_mode<synchronous>, transform_indices = @transform_9, window_bounds = array<i64: 1, 128>}, {pipeline_mode = #tpu.pipeline_mode<synchronous>, transform_indices = @transform_10, window_bounds = array<i64: 128, 256>}, {pipeline_mode = #tpu.pipeline_mode<synchronous>, transform_indices = @transform_11, window_bounds = array<i64: 1, 256>}, {pipeline_mode = #tpu.pipeline_mode<synchronous>, transform_indices = @transform_12, window_bounds = array<i64: 256, 128>}, {pipeline_mode = #tpu.pipeline_mode<synchronous>, transform_indices = @transform_13, window_bounds = array<i64: 1, 128>}, {transform_indices = @transform_14, window_bounds = array<i64: 1, 16, 128>}]} {
    %c0 = arith.constant 0 : index
    %c0_0 = arith.constant 0 : index
    %c0_1 = arith.constant 0 : index
    %0 = vector.load %arg1[%c0, %c0_0, %c0_1] : memref<1x16x128xf32, #tpu.memory_space<vmem>>, vector<1x16x128xf32>
    %1 = vector.shape_cast %0 : vector<1x16x128xf32> to vector<16x128xf32>
    %c0_2 = arith.constant 0 : index
    %c0_3 = arith.constant 0 : index
    %2 = vector.load %arg2[%c0_2, %c0_3] : memref<1x128xf32, #tpu.memory_space<vmem>>, vector<1x128xf32>
    %c0_4 = arith.constant 0 : index
    %c0_5 = arith.constant 0 : index
    %3 = vector.load %arg3[%c0_4, %c0_5] : memref<1x128xf32, #tpu.memory_space<vmem>>, vector<1x128xf32>
    %cst = arith.constant dense<0.000000e+00> : vector<16xf32>
    %4 = vector.multi_reduction <add>, %1, %cst [1] : vector<16x128xf32> to vector<16xf32>
    %5 = vector.shape_cast %4 : vector<16xf32> to vector<16x1xf32>
    %cst_6 = arith.constant 1.280000e+02 : f32
    %6 = vector.broadcast %cst_6 : f32 to vector<16x1xf32>
    %7 = arith.divf %5, %6 : vector<16x1xf32>
    %8 = vector.broadcast %7 : vector<16x1xf32> to vector<16x128xf32>
    %9 = arith.subf %1, %8 : vector<16x128xf32>
    %10 = arith.mulf %9, %9 : vector<16x128xf32>
    %cst_7 = arith.constant dense<0.000000e+00> : vector<16xf32>
    %11 = vector.multi_reduction <add>, %10, %cst_7 [1] : vector<16x128xf32> to vector<16xf32>
    %12 = vector.shape_cast %11 : vector<16xf32> to vector<16x1xf32>
    %cst_8 = arith.constant 1.280000e+02 : f32
    %13 = vector.broadcast %cst_8 : f32 to vector<16x1xf32>
    %14 = arith.divf %12, %13 : vector<16x1xf32>
    %15 = vector.broadcast %7 : vector<16x1xf32> to vector<16x128xf32>
    %16 = arith.subf %1, %15 : vector<16x128xf32>
    %cst_9 = arith.constant 9.99999974E-6 : f32
    %17 = vector.broadcast %cst_9 : f32 to vector<16x1xf32>
    %18 = arith.addf %14, %17 : vector<16x1xf32>
    %19 = math.rsqrt %18 : vector<16x1xf32>
    %20 = vector.broadcast %19 : vector<16x1xf32> to vector<16x128xf32>
    %21 = arith.mulf %16, %20 : vector<16x128xf32>
    %22 = vector.broadcast %2 : vector<1x128xf32> to vector<16x128xf32>
    %23 = arith.mulf %21, %22 : vector<16x128xf32>
    %24 = vector.broadcast %3 : vector<1x128xf32> to vector<16x128xf32>
    %25 = arith.addf %23, %24 : vector<16x128xf32>
    %26 = arith.truncf %25 : vector<16x128xf32> to vector<16x128xbf16>
    %27 = vector.shape_cast %26 : vector<16x128xbf16> to vector<1x16x128xbf16>
    %28 = vector.shape_cast %27 : vector<1x16x128xbf16> to vector<1x16x128xbf16>
    %29 = vector.broadcast %28 : vector<1x16x128xbf16> to vector<8x16x128xbf16>
    %c0_10 = arith.constant 0 : index
    %c0_11 = arith.constant 0 : index
    %c0_12 = arith.constant 0 : index
    %30 = vector.load %arg4[%c0_10, %c0_11, %c0_12] : memref<8x16x128xbf16, #tpu.memory_space<vmem>>, vector<8x16x128xbf16>
    "tpu.trace_start"() <{level = 10 : i32, message = "hnd,hed->hne"}> : () -> ()
    %cst_13 = arith.constant dense<0.000000e+00> : vector<8x16x16xf32>
    %31 = tpu.matmul %29, %30, %cst_13 {dimension_numbers = #tpu.dot_dimension_numbers<[2], [2], [1], [1], [0, 0, 0, 1, 1, 1], [0], [0]>} : vector<8x16x128xbf16>, vector<8x16x128xbf16>, vector<8x16x16xf32> -> vector<8x16x16xf32>
    "tpu.trace_stop"() : () -> ()
    %c0_14 = arith.constant 0 : index
    %c0_15 = arith.constant 0 : index
    %c0_16 = arith.constant 0 : index
    %32 = vector.load %arg5[%c0_14, %c0_15, %c0_16] : memref<8x16x128xbf16, #tpu.memory_space<vmem>>, vector<8x16x128xbf16>
    "tpu.trace_start"() <{level = 10 : i32, message = "hnd,hed->hne"}> : () -> ()
    %cst_17 = arith.constant dense<0.000000e+00> : vector<8x16x16xf32>
    %33 = tpu.matmul %29, %32, %cst_17 {dimension_numbers = #tpu.dot_dimension_numbers<[2], [2], [1], [1], [0, 0, 0, 1, 1, 1], [0], [0]>} : vector<8x16x128xbf16>, vector<8x16x128xbf16>, vector<8x16x16xf32> -> vector<8x16x16xf32>
    "tpu.trace_stop"() : () -> ()
    %c0_18 = arith.constant 0 : index
    %c0_19 = arith.constant 0 : index
    %c0_20 = arith.constant 0 : index
    %34 = vector.load %arg6[%c0_18, %c0_19, %c0_20] : memref<8x16x128xbf16, #tpu.memory_space<vmem>>, vector<8x16x128xbf16>
    "tpu.trace_start"() <{level = 10 : i32, message = "hnd,hed->hne"}> : () -> ()
    %cst_21 = arith.constant dense<0.000000e+00> : vector<8x16x16xf32>
    %35 = tpu.matmul %29, %34, %cst_21 {dimension_numbers = #tpu.dot_dimension_numbers<[2], [2], [1], [1], [0, 0, 0, 1, 1, 1], [0], [0]>} : vector<8x16x128xbf16>, vector<8x16x128xbf16>, vector<8x16x16xf32> -> vector<8x16x16xf32>
    "tpu.trace_stop"() : () -> ()
    %36 = arith.truncf %31 : vector<8x16x16xf32> to vector<8x16x16xbf16>
    %37 = arith.truncf %33 : vector<8x16x16xf32> to vector<8x16x16xbf16>
    "tpu.trace_start"() <{level = 10 : i32, message = "hqe,hke->hqk"}> : () -> ()
    %cst_22 = arith.constant dense<0.000000e+00> : vector<8x16x16xf32>
    %38 = tpu.matmul %36, %37, %cst_22 {dimension_numbers = #tpu.dot_dimension_numbers<[2], [2], [1], [1], [0, 0, 0, 1, 1, 1], [0], [0]>} : vector<8x16x16xbf16>, vector<8x16x16xbf16>, vector<8x16x16xf32> -> vector<8x16x16xf32>
    "tpu.trace_stop"() : () -> ()
    %cst_23 = arith.constant dense<0xFF800000> : vector<8x16xf32>
    %39 = vector.multi_reduction <maximumf>, %38, %cst_23 [2] : vector<8x16x16xf32> to vector<8x16xf32>
    %40 = vector.shape_cast %39 : vector<8x16xf32> to vector<8x16x1xf32>
    %41 = vector.broadcast %40 : vector<8x16x1xf32> to vector<8x16x16xf32>
    %42 = arith.subf %38, %41 : vector<8x16x16xf32>
    %43 = math.exp %42 : vector<8x16x16xf32>
    %cst_24 = arith.constant dense<0.000000e+00> : vector<8x16xf32>
    %44 = vector.multi_reduction <add>, %43, %cst_24 [2] : vector<8x16x16xf32> to vector<8x16xf32>
    %45 = vector.shape_cast %44 : vector<8x16xf32> to vector<8x16x1xf32>
    %46 = tpu.reciprocal %45 {approx = true} : vector<8x16x1xf32> -> vector<8x16x1xf32>
    %47 = vector.broadcast %46 : vector<8x16x1xf32> to vector<8x16x16xf32>
    %48 = arith.mulf %43, %47 : vector<8x16x16xf32>
    %49 = arith.truncf %48 : vector<8x16x16xf32> to vector<8x16x16xbf16>
    %50 = arith.truncf %35 : vector<8x16x16xf32> to vector<8x16x16xbf16>
    "tpu.trace_start"() <{level = 10 : i32, message = "hqk,hke->hqe"}> : () -> ()
    %cst_25 = arith.constant dense<0.000000e+00> : vector<8x16x16xf32>
    %51 = tpu.matmul %49, %50, %cst_25 {dimension_numbers = #tpu.dot_dimension_numbers<[2], [1], [1], [2], [0, 0, 0, 1, 1, 2], [0], [0]>} : vector<8x16x16xbf16>, vector<8x16x16xbf16>, vector<8x16x16xf32> -> vector<8x16x16xf32>
    "tpu.trace_stop"() : () -> ()
    %52 = arith.truncf %51 : vector<8x16x16xf32> to vector<8x16x16xbf16>
    %c0_26 = arith.constant 0 : index
    %c0_27 = arith.constant 0 : index
    %c0_28 = arith.constant 0 : index
    %53 = vector.load %arg7[%c0_26, %c0_27, %c0_28] : memref<8x16x128xbf16, #tpu.memory_space<vmem>>, vector<8x16x128xbf16>
    "tpu.trace_start"() <{level = 10 : i32, message = "hne,hed->hnd"}> : () -> ()
    %cst_29 = arith.constant dense<0.000000e+00> : vector<8x16x128xf32>
    %54 = tpu.matmul %52, %53, %cst_29 {dimension_numbers = #tpu.dot_dimension_numbers<[2], [1], [1], [2], [0, 0, 0, 1, 1, 2], [0], [0]>} : vector<8x16x16xbf16>, vector<8x16x128xbf16>, vector<8x16x128xf32> -> vector<8x16x128xf32>
    "tpu.trace_stop"() : () -> ()
    %cst_30 = arith.constant dense<0.000000e+00> : vector<16x128xf32>
    %55 = vector.multi_reduction <add>, %54, %cst_30 [0] : vector<8x16x128xf32> to vector<16x128xf32>
    %56 = arith.addf %1, %55 : vector<16x128xf32>
    %c0_31 = arith.constant 0 : index
    %c0_32 = arith.constant 0 : index
    %57 = vector.load %arg8[%c0_31, %c0_32] : memref<1x128xf32, #tpu.memory_space<vmem>>, vector<1x128xf32>
    %58 = vector.broadcast %57 : vector<1x128xf32> to vector<16x128xf32>
    %59 = arith.addf %56, %58 : vector<16x128xf32>
    %c0_33 = arith.constant 0 : index
    %c0_34 = arith.constant 0 : index
    %60 = vector.load %arg9[%c0_33, %c0_34] : memref<1x128xf32, #tpu.memory_space<vmem>>, vector<1x128xf32>
    %c0_35 = arith.constant 0 : index
    %c0_36 = arith.constant 0 : index
    %61 = vector.load %arg10[%c0_35, %c0_36] : memref<1x128xf32, #tpu.memory_space<vmem>>, vector<1x128xf32>
    %cst_37 = arith.constant dense<0.000000e+00> : vector<16xf32>
    %62 = vector.multi_reduction <add>, %59, %cst_37 [1] : vector<16x128xf32> to vector<16xf32>
    %63 = vector.shape_cast %62 : vector<16xf32> to vector<16x1xf32>
    %cst_38 = arith.constant 1.280000e+02 : f32
    %64 = vector.broadcast %cst_38 : f32 to vector<16x1xf32>
    %65 = arith.divf %63, %64 : vector<16x1xf32>
    %66 = vector.broadcast %65 : vector<16x1xf32> to vector<16x128xf32>
    %67 = arith.subf %59, %66 : vector<16x128xf32>
    %68 = arith.mulf %67, %67 : vector<16x128xf32>
    %cst_39 = arith.constant dense<0.000000e+00> : vector<16xf32>
    %69 = vector.multi_reduction <add>, %68, %cst_39 [1] : vector<16x128xf32> to vector<16xf32>
    %70 = vector.shape_cast %69 : vector<16xf32> to vector<16x1xf32>
    %cst_40 = arith.constant 1.280000e+02 : f32
    %71 = vector.broadcast %cst_40 : f32 to vector<16x1xf32>
    %72 = arith.divf %70, %71 : vector<16x1xf32>
    %73 = vector.broadcast %65 : vector<16x1xf32> to vector<16x128xf32>
    %74 = arith.subf %59, %73 : vector<16x128xf32>
    %cst_41 = arith.constant 9.99999974E-6 : f32
    %75 = vector.broadcast %cst_41 : f32 to vector<16x1xf32>
    %76 = arith.addf %72, %75 : vector<16x1xf32>
    %77 = math.rsqrt %76 : vector<16x1xf32>
    %78 = vector.broadcast %77 : vector<16x1xf32> to vector<16x128xf32>
    %79 = arith.mulf %74, %78 : vector<16x128xf32>
    %80 = vector.broadcast %60 : vector<1x128xf32> to vector<16x128xf32>
    %81 = arith.mulf %79, %80 : vector<16x128xf32>
    %82 = vector.broadcast %61 : vector<1x128xf32> to vector<16x128xf32>
    %83 = arith.addf %81, %82 : vector<16x128xf32>
    %84 = arith.truncf %83 : vector<16x128xf32> to vector<16x128xbf16>
    %c0_42 = arith.constant 0 : index
    %c0_43 = arith.constant 0 : index
    %85 = vector.load %arg11[%c0_42, %c0_43] : memref<128x256xbf16, #tpu.memory_space<vmem>>, vector<128x256xbf16>
    %cst_44 = arith.constant dense<0.000000e+00> : vector<16x256xf32>
    %86 = tpu.matmul %84, %85, %cst_44 {dimension_numbers = #tpu.dot_dimension_numbers<[1], [0], [0], [1], [0, 0, 1, 1], [], []>} : vector<16x128xbf16>, vector<128x256xbf16>, vector<16x256xf32> -> vector<16x256xf32>
    %c0_45 = arith.constant 0 : index
    %c0_46 = arith.constant 0 : index
    %87 = vector.load %arg12[%c0_45, %c0_46] : memref<1x256xf32, #tpu.memory_space<vmem>>, vector<1x256xf32>
    %88 = vector.broadcast %87 : vector<1x256xf32> to vector<16x256xf32>
    %89 = arith.addf %86, %88 : vector<16x256xf32>
    %cst_47 = arith.constant 0.000000e+00 : f32
    %90 = vector.broadcast %cst_47 : f32 to vector<16x256xf32>
    %91 = arith.maximumf %89, %90 : vector<16x256xf32>
    %92 = arith.truncf %91 : vector<16x256xf32> to vector<16x256xbf16>
    %c0_48 = arith.constant 0 : index
    %c0_49 = arith.constant 0 : index
    %93 = vector.load %arg13[%c0_48, %c0_49] : memref<256x128xbf16, #tpu.memory_space<vmem>>, vector<256x128xbf16>
    %cst_50 = arith.constant dense<0.000000e+00> : vector<16x128xf32>
    %94 = tpu.matmul %92, %93, %cst_50 {dimension_numbers = #tpu.dot_dimension_numbers<[1], [0], [0], [1], [0, 0, 1, 1], [], []>} : vector<16x256xbf16>, vector<256x128xbf16>, vector<16x128xf32> -> vector<16x128xf32>
    %95 = arith.addf %59, %94 : vector<16x128xf32>
    %c0_51 = arith.constant 0 : index
    %c0_52 = arith.constant 0 : index
    %96 = vector.load %arg14[%c0_51, %c0_52] : memref<1x128xf32, #tpu.memory_space<vmem>>, vector<1x128xf32>
    %97 = vector.broadcast %96 : vector<1x128xf32> to vector<16x128xf32>
    %98 = arith.addf %95, %97 : vector<16x128xf32>
    %c0_53 = arith.constant 0 : index
    %c0_54 = arith.constant 0 : index
    %c0_55 = arith.constant 0 : index
    %99 = vector.load %arg15[%c0_53, %c0_54, %c0_55] : memref<1x16x128xf32, #tpu.memory_space<vmem>>, vector<1x16x128xf32>
    %100 = vector.shape_cast %99 : vector<1x16x128xf32> to vector<16x128xf32>
    %101 = vector.shape_cast %98 : vector<16x128xf32> to vector<1x16x128xf32>
    tpu.vector_store %arg15[%c0_53, %c0_54, %c0_55], %101 {strides = array<i32>} : memref<1x16x128xf32, #tpu.memory_space<vmem>>, vector<1x16x128xf32>,
    return
  }
  func.func @transform_0(%arg0: i32) -> (i32, i32, i32) {
    %c0_i32 = arith.constant 0 : i32
    %c0_i32_0 = arith.constant 0 : i32
    %c0_i32_1 = arith.constant 0 : i32
    return %arg0, %c0_i32, %c0_i32_0 : i32, i32, i32
  }
  func.func @transform_1(%arg0: i32) -> (i32, i32) {
    %c0_i32 = arith.constant 0 : i32
    %c0_i32_0 = arith.constant 0 : i32
    %c0_i32_1 = arith.constant 0 : i32
    return %c0_i32, %c0_i32_0 : i32, i32
  }
  func.func @transform_2(%arg0: i32) -> (i32, i32) {
    %c0_i32 = arith.constant 0 : i32
    %c0_i32_0 = arith.constant 0 : i32
    %c0_i32_1 = arith.constant 0 : i32
    return %c0_i32, %c0_i32_0 : i32, i32
  }
  func.func @transform_3(%arg0: i32) -> (i32, i32, i32) {
    %c0_i32 = arith.constant 0 : i32
    %c0_i32_0 = arith.constant 0 : i32
    %c0_i32_1 = arith.constant 0 : i32
    %c0_i32_2 = arith.constant 0 : i32
    return %c0_i32, %c0_i32_0, %c0_i32_1 : i32, i32, i32
  }
  func.func @transform_4(%arg0: i32) -> (i32, i32, i32) {
    %c0_i32 = arith.constant 0 : i32
    %c0_i32_0 = arith.constant 0 : i32
    %c0_i32_1 = arith.constant 0 : i32
    %c0_i32_2 = arith.constant 0 : i32
    return %c0_i32, %c0_i32_0, %c0_i32_1 : i32, i32, i32
  }
  func.func @transform_5(%arg0: i32) -> (i32, i32, i32) {
    %c0_i32 = arith.constant 0 : i32
    %c0_i32_0 = arith.constant 0 : i32
    %c0_i32_1 = arith.constant 0 : i32
    %c0_i32_2 = arith.constant 0 : i32
    return %c0_i32, %c0_i32_0, %c0_i32_1 : i32, i32, i32
  }
  func.func @transform_6(%arg0: i32) -> (i32, i32, i32) {
    %c0_i32 = arith.constant 0 : i32
    %c0_i32_0 = arith.constant 0 : i32
    %c0_i32_1 = arith.constant 0 : i32
    %c0_i32_2 = arith.constant 0 : i32
    return %c0_i32, %c0_i32_0, %c0_i32_1 : i32, i32, i32
  }
  func.func @transform_7(%arg0: i32) -> (i32, i32) {
    %c0_i32 = arith.constant 0 : i32
    %c0_i32_0 = arith.constant 0 : i32
    %c0_i32_1 = arith.constant 0 : i32
    return %c0_i32, %c0_i32_0 : i32, i32
  }
  func.func @transform_8(%arg0: i32) -> (i32, i32) {
    %c0_i32 = arith.constant 0 : i32
    %c0_i32_0 = arith.constant 0 : i32
    %c0_i32_1 = arith.constant 0 : i32
    return %c0_i32, %c0_i32_0 : i32, i32
  }
  func.func @transform_9(%arg0: i32) -> (i32, i32) {
    %c0_i32 = arith.constant 0 : i32
    %c0_i32_0 = arith.constant 0 : i32
    %c0_i32_1 = arith.constant 0 : i32
    return %c0_i32, %c0_i32_0 : i32, i32
  }
  func.func @transform_10(%arg0: i32) -> (i32, i32) {
    %c0_i32 = arith.constant 0 : i32
    %c0_i32_0 = arith.constant 0 : i32
    %c0_i32_1 = arith.constant 0 : i32
    return %c0_i32, %c0_i32_0 : i32, i32
  }
  func.func @transform_11(%arg0: i32) -> (i32, i32) {
    %c0_i32 = arith.constant 0 : i32
    %c0_i32_0 = arith.constant 0 : i32
    %c0_i32_1 = arith.constant 0 : i32
    return %c0_i32, %c0_i32_0 : i32, i32
  }
  func.func @transform_12(%arg0: i32) -> (i32, i32) {
    %c0_i32 = arith.constant 0 : i32
    %c0_i32_0 = arith.constant 0 : i32
    %c0_i32_1 = arith.constant 0 : i32
    return %c0_i32, %c0_i32_0 : i32, i32
  }
  func.func @transform_13(%arg0: i32) -> (i32, i32) {
    %c0_i32 = arith.constant 0 : i32
    %c0_i32_0 = arith.constant 0 : i32
    %c0_i32_1 = arith.constant 0 : i32
    return %c0_i32, %c0_i32_0 : i32, i32
  }
  func.func @transform_14(%arg0: i32) -> (i32, i32, i32) {
    %c0_i32 = arith.constant 0 : i32
    %c0_i32_0 = arith.constant 0 : i32
    %c0_i32_1 = arith.constant 0 : i32
    return %arg0, %c0_i32, %c0_i32_0 : i32, i32, i32
  }
}

</mosaic_0001>

<bundles_post_ra>
// kernel: transformer_forward.3
= control target key start
LH: loop header
LB: loop body
LE: loop exit
PB: predicated region body
PF: predicated region fallthrough
CT: control target
= control target key end

     0   :  { %s5308_s0 = inlined_call_operand.hbm [shape: f32[2,16,128], index: 0, kind: input, shape index: {}, may-alias: {0,14}]   ;;  %s5309_s1 = inlined_call_operand.vmem [shape: f32[1,128], index: 1, kind: input, shape index: {}]   ;;  %s5310_s2 = inlined_call_operand.vmem [shape: f32[1,128], index: 2, kind: input, shape index: {}]   ;;  %s5311_s3 = inlined_call_operand.vmem [shape: bf16[8,16,128], index: 3, kind: input, shape index: {}]   ;;  %s5312_s4 = inlined_call_operand.vmem [shape: bf16[8,16,128], index: 4, kind: input, shape index: {}]   ;;  %s5313_s5 = inlined_call_operand.vmem [shape: bf16[8,16,128], index: 5, kind: input, shape index: {}]   ;;  %s5314_s6 = inlined_call_operand.vmem [shape: bf16[8,16,128], index: 6, kind: input, shape index: {}]   ;;  %s5315_s7 = inlined_call_operand.vmem [shape: f32[1,128], index: 7, kind: input, shape index: {}]   ;;  %s5316_s8 = inlined_call_operand.vmem [shape: f32[1,128], index: 8, kind: input, shape index: {}]   ;;  %s5317_s9 = inlined_call_operand.vmem [shape: f32[1,128], index: 9, kind: input, shape index: {}]   ;;  %s5318_s10 = inlined_call_operand.vmem [shape: bf16[128,256], index: 10, kind: input, shape index: {}]   ;;  %s5319_s11 = inlined_call_operand.vmem [shape: f32[1,256], index: 11, kind: input, shape index: {}]   ;;  %s5320_s12 = inlined_call_operand.vmem [shape: bf16[256,128], index: 12, kind: input, shape index: {}]   ;;  %s5321_s13 = inlined_call_operand.vmem [shape: f32[1,128], index: 13, kind: input, shape index: {}]   ;;  %s5322_s14 = inlined_call_operand.hbm [shape: f32[2,16,128], index: 14, kind: output, shape index: {}, may-alias: {0,14}]  }
   0x1   :  { %5333 = sst [smem:[#allocation14_spill]] %s5322_s14 }
   0x2   :  { %19 = vsyncpa [#allocation3], 0 }
   0x3   :  { %21 = vsyncpa [#allocation3 + $0x1], 0 }
   0x4   :  { %22 = vsyncpa [#allocation4], 0 }
   0x5   :  { %24 = vsyncpa [#allocation4 + $0x1], 0  ;;  %s4453_s29 = smov 0   ;;  %s4455_s30 = smov 0  }
   0x6   :  { %s4457_s15 = smov 0   ;;  %s4459_s16 = smov 0  }
   0x7 LB: > { %5334 = sst [smem:[#allocation8_spill]] %s4355_s29  ;;  %s4474_s17 = sadd.s32 4294967295, %s4367_s16   ;;  %s4367_s16 = sphi %s4459_s16, %s5353_s16   ;;  %s4363_s15 = sphi %s4457_s15, %s5355_s15   ;;  %s4359_s30 = sphi %s4455_s30, %s5357_s30   ;;  %s4355_s29 = sphi %s4453_s29, %s5356_s29  }
   0x8   : > { %5335 = sst [smem:[#allocation9_spill]] %s4363_s15  ;;  %s3560_s18 = sadd.s32 4294967294, %s4367_s16  }
   0x9   : > { %s4478_s19 = sadd.s32 1, %s4367_s16   ;;  %s37_s20 = sadd.s32 1, %s4363_s15 }
   0xa   : > { %5336 = sst [smem:[#allocation10_spill]] %s4478_s19  ;;  %s34_s21 = ssub.s32 %s4367_s16, %s4478_s19 }
   0xb   : > { %p44_p0 = scmp.ne.s32.totalorder %s4363_s15, %s4359_s30  ;;  %p35_p1 = scmp.eq.s32.totalorder %s34_s21, 0 }
   0xc   : > { %p45_p2 = scmp.eq.s32.totalorder %s4367_s16, 0  ;;  %p50_p3 = scmp.ne.s32.totalorder %s4359_s30, %s4355_s29 }
   0xd   : > { %p51_p4 = scmp.eq.s32.totalorder %s4474_s17, 0  ;;  %p347_p7 = scmp.eq.s32.totalorder %s4474_s17, 1 }
   0xe   : > { %s4490_s22 = scalar_select %p35_p1, %s4363_s15, %s37_s20  }
   0xf   : > { %p4492_p5 = por %p45_p2, %p44_p0  ;;  %p4496_p6 = por %p51_p4, %p50_p3 }
  0x10   : > { %5337 = sst [smem:[#allocation11_spill]] %s4490_s22  ;;  %p353_p8 = scmp.eq.s32.totalorder %s3560_s18, 1 }
  0x11   : > { %s5339_s24 = scalar_select %p4496_p6, 1, 0 }
  0x12   : > { %p4088_p10 = scmp.lt.s32.totalorder %s4367_s16, 2  ;;  %p4503_p11 = por %p347_p7, %p44_p0 }
  0x13   : > { %p4507_p12 = por %p353_p8, %p50_p3  ;;  %s412_s27 = sand.u32 1, %s4363_s15  }
  0x14   : > { %s5340_s25 = scalar_select %p4503_p11, 1, 0 }
  0x15   : > { %s5342_s26 = scalar_select %p4507_p12, 1, 0 }
  0x16   : > { %5341 = sst [smem:[#allocation12_spill]] %s5340_s25  ;;  %s3668_s28 = sshll.u32 %s4367_s16, 8 }
  0x17   : > { %5343 = sst [smem:[#allocation13_spill]] %s5342_s26  ;;  %s3563_s20 = sshll.u32 %s412_s27, 4 }
  0x18   : > { %s4516_s19 = scalar_lea.hbm %s5308_s0, %s3668_s28  ;;  %s416_s18 = scalar_lea.vmem [#allocation2], %s3563_s20 }
  0x19   : > { %s423_s29 = sshll.u32 %s416_s18, 4  ;;  %p4520_p13 = pnand %p4088_p10, %p4492_p5  ;;  %s4524_s29 = int_to_ptr.vmem [resolvable:$true] %s423_s29 }
  0x1a   : > { %s4526_s15 = scalar_lea.sflag [#allocation3], %s412_s27  ;;  %s4275_s26 = scalar_lea.hbm %s4516_s19, 256 }
  0x1b   : > { %p4276_p0 = scmp.ne.s32.totalorder %s4516_s19, %s4275_s26  ;;  %p4277_p1 = pneg %p4520_p13 }
  0x1c   : > { %s4280_s20 = scalar_lea.hbm %s5308_s0, 512  ;;  %p4281_p4 = scmp.lt.s32.totalorder %s4516_s19, %s5308_s0 }
  0x1d   : > { %p4278_p2 = pnand %p4277_p1, %p4276_p0  ;;  %p4282_p5 = scmp.lt.s32.totalorder %s4280_s20, %s4275_s26 }
  0x1f   : > { %p4279_p3 = pneg %p4278_p2  ;;  %p4283_p7 = por %p4282_p5, %p4281_p4 }
  0x21   : > { %p4284_p8 = pnand %p4283_p7, %p4279_p3 }
  0x23   : > { %4287 = shalt.err (!%p4284_p8)
}
  0x24   : > { %s4288_s27 = scalar_lea.vmem %s4524_s29, 256  ;;  %s4369_s18 = smov [#allocation2]  }
  0x25   : > { %p4289_p10 = scmp.ne.s32.totalorder %s4524_s29, %s4288_s27  ;;  %s4293_s25 = sshll.u32 %s4369_s18, 4  ;;  %s4294_s25 = int_to_ptr.vmem [resolvable:$false] %s4293_s25 }
  0x26   : > { %s4295_s22 = scalar_lea.vmem %s4294_s25, 512  ;;  %p4296_p2 = scmp.lt.s32.totalorder %s4524_s29, %s4294_s25 }
  0x27   : > { %p4291_p9 = pnand %p4289_p10, %p4277_p1  ;;  %p4297_p12 = scmp.lt.s32.totalorder %s4295_s22, %s4288_s27 }
  0x29   : > { %p4292_p0 = pneg %p4291_p9  ;;  %p4298_p11 = por %p4297_p12, %p4296_p2 }
  0x2b   : > { %p4299_p6 = pnand %p4298_p11, %p4292_p0 }
  0x2d   : > { %4302 = shalt.err (!%p4299_p6)
}
  0x2e   : > { %s4370_s26 = smov 128   ;;  %s4371_s28 = smov 8  }
  0x2f   : > { %4083 = dma.hbm_to_vmem [thread:$0]  (!%p4520_p13), %s4516_s19, 256, %s4524_s29, %s4526_s15, %s4370_s26, %s4370_s26, %s4371_s28  }
  0x30   : > { %p3566_p9 = scmp.ge.s32.totalorder %s4367_s16, 1  ;;  %p431_p1 = scmp.lt.s32.totalorder %s4367_s16, 3 }
  0x32   : > { %p432_p3 = pnand %p3566_p9, %p431_p1 }
  0x33   : > { %s4550_s25 = sand.u32 (!%p432_p3), 1, %s4359_s30   ;;  %p5345_p6 = scmp.ne.s32.totalorder (!%p432_p3), %s5339_s24, 0 }
  0x34   : > { %435 = sbr.rel (%p432_p3) target bundleno = 2285 (0x8ed), region = 76  ;;  %s3567_s20 = sshll.u32 (!%p432_p3), %s4550_s25, 4 }
  0x35   : > { %s438_s23 = scalar_lea.sflag (!%p432_p3), [#allocation3], %s4550_s25  ;;  %s4556_s21 = scalar_lea.vmem (!%p432_p3), [#allocation2], %s3567_s20 }
  0x39   : > { %4346 = dma.done.wait (%p5345_p6), %s438_s23, 256  }
  0x3a   : > { %4348 = vsyncadd (%p5345_p6), %s438_s23, 4294967040  ;;  %v487_v0 = vld [vmem:[%s4556_s21] sm:$0xff]  ;;  %v488_v1 = vld [vmem:[%s4556_s21 + $0x8] sm:$0xff]  ;;  %v4372_v12 = vmov 0.0   ;;  %vm4373_vm0 = vmmov 0   ;;  %vm1723_vm1 = vcmask 130048  }
  0x3b   : > { %491 = vadd.xlane.f32.xlu0 %v487_v0  ;;  %v4129_v10 = vld [vmem:[%s5311_s3] sm:$0xff]   ;;  %v4130_v11 = vld [vmem:[%s5311_s3 + $0x8] sm:$0xff]   ;;  %3788 = vmatprep.subr.bf16.mxu0 %v4372_v12  ;;  %v4131_v29 = vld [vmem:[%s5311_s3 + $0x10] sm:$0xff]   ;;  %s5346_s24 = sld [smem:[#allocation12_spill]]  ;;  %s485_s27 = scalar_lea.vmem [#allocation5], %s3567_s20 }
  0x3c   : > { %3794 = vmatprep.subr.bf16.mxu1 %v4372_v12  ;;  %3789 = vmatpush3.bf16.xpose.msra.mxu0 %v4129_v10  ;;  %v3569_v21 = vld [vmem:[%s5309_s1] ss:$0 sm:$0xff]  ;;  %v4132_v30 = vld [vmem:[%s5311_s3 + $0x18] sm:$0xff]   ;;  %v4134_v33 = vld [vmem:[%s5311_s3 + $0x28] sm:$0xff]   ;;  %s3487_s18 = sshll.u32 %s485_s27, 4  ;;  %s3669_s22 = sshll.u32 %s4474_s17, 8  ;;  %s5259_s18 = int_to_ptr.vmem [resolvable:$true] %s3487_s18 }
  0x3d   : > { %3795 = vmatpush3.bf16.xpose.msra.mxu1 %v4130_v11  ;;  %3800 = vmatprep.subr.bf16.mxu0 %v4372_v12  ;;  %v3570_v25 = vld [vmem:[%s5310_s2] ss:$0 sm:$0xff]  ;;  %v4135_v34 = vld [vmem:[%s5311_s3 + $0x30] sm:$0xff]   ;;  %v4136_v35 = vld [vmem:[%s5311_s3 + $0x38] sm:$0xff]   ;;  %s5347_s28 = sld [smem:[#allocation14_spill]]  ;;  %s3474_s20 = scalar_lea.sflag [#allocation4], %s4550_s25 }
  0x3e   : > { %3806 = vmatprep.subr.bf16.mxu1 %v4372_v12  ;;  %3790 = vmatprep.mubr.msk.bf16.mxu0 %vm4373_vm0, %v4372_v12  ;;  %v4133_v32 = vld [vmem:[%s5311_s3 + $0x20] sm:$0xff]   ;;  %v4138_v37 = vld [vmem:[%s5312_s4 + $0x8] sm:$0xff]   ;;  %v4139_v38 = vld [vmem:[%s5312_s4 + $0x10] sm:$0xff]   ;;  %s4303_s14 = scalar_lea.vmem %s5259_s18, 256  ;;  %s4375_s17 = smov [#allocation5]  }
  0x3f   : > { %493 = vadd.xlane.f32.xlu0 %v488_v1  ;;  %3796 = vmatprep.mubr.msk.bf16.mxu1 %vm4373_vm0, %v4372_v12  ;;  %v4137_v36 = vld [vmem:[%s5312_s4] sm:$0xff]   ;;  %v4140_v39 = vld [vmem:[%s5312_s4 + $0x18] sm:$0xff]   ;;  %v4142_v41 = vld [vmem:[%s5312_s4 + $0x28] sm:$0xff]   ;;  %p4304_p11 = scmp.ne.s32.totalorder %s5259_s18, %s4303_s14  ;;  %s4307_s29 = sshll.u32 %s4375_s17, 4  ;;  %s4308_s29 = int_to_ptr.vmem [resolvable:$false] %s4307_s29 }
  0x40   : > { %v4141_v40 = vld [vmem:[%s5312_s4 + $0x20] sm:$0xff]   ;;  %v4143_v42 = vld [vmem:[%s5312_s4 + $0x30] sm:$0xff]   ;;  %v4144_v43 = vld [vmem:[%s5312_s4 + $0x38] sm:$0xff]   ;;  %s4309_s15 = scalar_lea.vmem %s4308_s29, 512  ;;  %p4310_p5 = scmp.lt.s32.totalorder %s5259_s18, %s4308_s29 }
  0x41   : > { %v4145_v44 = vld [vmem:[%s5313_s5] sm:$0xff]   ;;  %v4146_v45 = vld [vmem:[%s5313_s5 + $0x8] sm:$0xff]   ;;  %v4147_v46 = vld [vmem:[%s5313_s5 + $0x10] sm:$0xff]   ;;  %p5348_p12 = scmp.ne.s32.totalorder %s5346_s24, 0  ;;  %p4311_p7 = scmp.lt.s32.totalorder %s4309_s15, %s4303_s14 }
  0x42   : > { %v4148_v47 = vld [vmem:[%s5313_s5 + $0x18] sm:$0xff]   ;;  %v4149_v48 = vld [vmem:[%s5313_s5 + $0x20] sm:$0xff]   ;;  %v4150_v49 = vld [vmem:[%s5313_s5 + $0x28] sm:$0xff]  }
  0x43   : > { %v4151_v50 = vld [vmem:[%s5313_s5 + $0x30] sm:$0xff]   ;;  %v4152_v51 = vld [vmem:[%s5313_s5 + $0x38] sm:$0xff]   ;;  %s5265_s23 = scalar_lea.hbm %s5347_s28, %s3669_s22  ;;  %p4305_p13 = pnand %p4304_p11, %p5348_p12 }
  0x44   : > { %p4312_p8 = por %p4311_p7, %p4310_p5 }
  0x45   : > { %p4306_p4 = pneg %p4305_p13 }
  0x47   : > { %p4313_p10 = pnand %p4312_p8, %p4306_p4 }
  0xc4   : > { %v492_v2 = vpop.xlane.xlu0 %491 }
  0xc5   : > { %v496_v3 = vmul.f32 0.0078125, %v492_v2 }
  0xc7   : > { %v498_v4 = vsub.f32 %v487_v0, %v496_v3 }
  0xc8   : > { %v494_v5 = vpop.xlane.xlu0 %493 }
  0xc9   : > { %v497_v6 = vmul.f32 0.0078125, %v494_v5  ;;  %v500_v7 = vmul.f32 %v498_v4, %v498_v4 }
  0xcb   : > { %v499_v8 = vsub.f32 %v488_v1, %v497_v6  ;;  %502 = vadd.xlane.f32.xlu1 %v500_v7 }
  0xcd   : > { %v501_v9 = vmul.f32 %v499_v8, %v499_v8 }
  0xcf   : > { %504 = vadd.xlane.f32.xlu1 %v501_v9 }
 0x154   : > { %v503_v13 = vpop.xlane.xlu1 %502 }
 0x155   : > { %v506_v14 = vmul.f32 0.0078125, %v503_v13 }
 0x157   : > { %v508_v15 = vadd.f32 1e-05, %v506_v14 }
 0x158   : > { %v505_v16 = vpop.xlane.xlu1 %504 }
 0x159   : > { %4201 = vrsqrt.f32 %v508_v15  ;;  %v507_v17 = vmul.f32 0.0078125, %v505_v16 }
 0x15b   : > { %v509_v18 = vadd.f32 1e-05, %v507_v17 }
 0x15d   : > { %4203 = vrsqrt.f32 %v509_v18 }
 0x166   : > { %v4202_v19 = vpop.eup %4201 }
 0x167   : > { %v512_v20 = vmul.f32 %v4202_v19, %v498_v4 }
 0x169   : > { %v520_v23 = vmul.f32 %v3569_v21, %v512_v20 }
 0x16a   : > { %v4204_v22 = vpop.eup %4203 }
 0x16b   : > { %v513_v24 = vmul.f32 %v4204_v22, %v499_v8  ;;  %v528_v27 = vadd.f32 %v3570_v25, %v520_v23 }
 0x16d   : > { %v521_v26 = vmul.f32 %v3569_v21, %v513_v24 }
 0x16f   : > { %v529_v28 = vadd.f32 %v3570_v25, %v521_v26 }
 0x171   : > { %v4590_v31 = vpack.c.bf16 %v529_v28, %v528_v27 }
 0x173   : > { %3791 = vmatmul.mubr.bf16.vlgmr.msra.gmra.mxu0 %v4590_v31  ;;  %3797 = vmatmul.mubr.bf16.vlgmr.msra.gmra.mxu1 %v4590_v31 }
 0x174   : > { %3801 = vmatpush3.bf16.xpose.msra.mxu0 %v4131_v29  ;;  %3807 = vmatpush3.bf16.xpose.msra.mxu1 %v4132_v30 }
 0x175   : > { %3802 = vmatprep.mubr.msk.bf16.mxu0 %vm4373_vm0, %v4372_v12  ;;  %3808 = vmatprep.mubr.msk.bf16.mxu1 %vm4373_vm0, %v4372_v12 }
 0x176   : > { %3812 = vmatprep.subr.bf16.mxu0 %v4372_v12  ;;  %3818 = vmatprep.subr.bf16.mxu1 %v4372_v12 }
 0x17b   : > { %3803 = vmatmul.mubr.bf16.vlgmr.msra.gmra.mxu0 %v4590_v31  ;;  %3809 = vmatmul.mubr.bf16.vlgmr.msra.gmra.mxu1 %v4590_v31 }
 0x17c   : > { %3813 = vmatpush3.bf16.xpose.msra.mxu0 %v4133_v32  ;;  %3819 = vmatpush3.bf16.xpose.msra.mxu1 %v4134_v33 }
 0x17d   : > { %3814 = vmatprep.mubr.msk.bf16.mxu0 %vm4373_vm0, %v4372_v12  ;;  %3820 = vmatprep.mubr.msk.bf16.mxu1 %vm4373_vm0, %v4372_v12 }
 0x17e   : > { %3824 = vmatprep.subr.bf16.mxu0 %v4372_v12  ;;  %3830 = vmatprep.subr.bf16.mxu1 %v4372_v12 }
 0x183   : > { %3815 = vmatmul.mubr.bf16.vlgmr.msra.gmra.mxu0 %v4590_v31  ;;  %3821 = vmatmul.mubr.bf16.vlgmr.msra.gmra.mxu1 %v4590_v31 }
 0x184   : > { %3825 = vmatpush3.bf16.xpose.msra.mxu0 %v4135_v34  ;;  %3831 = vmatpush3.bf16.xpose.msra.mxu1 %v4136_v35 }
 0x185   : > { %3826 = vmatprep.mubr.msk.bf16.mxu0 %vm4373_vm0, %v4372_v12  ;;  %3832 = vmatprep.mubr.msk.bf16.mxu1 %vm4373_vm0, %v4372_v12 }
 0x186   : > { %3836 = vmatprep.subr.bf16.mxu0 %v4372_v12  ;;  %3842 = vmatprep.subr.bf16.mxu1 %v4372_v12 }
 0x18b   : > { %3827 = vmatmul.mubr.bf16.vlgmr.msra.gmra.mxu0 %v4590_v31  ;;  %3833 = vmatmul.mubr.bf16.vlgmr.msra.gmra.mxu1 %v4590_v31 }
 0x18c   : > { %3837 = vmatpush3.bf16.xpose.msra.mxu0 %v4137_v36  ;;  %3843 = vmatpush3.bf16.xpose.msra.mxu1 %v4138_v37 }
 0x18d   : > { %3838 = vmatprep.mubr.msk.bf16.mxu0 %vm4373_vm0, %v4372_v12  ;;  %3844 = vmatprep.mubr.msk.bf16.mxu1 %vm4373_vm0, %v4372_v12 }
 0x18e   : > { %3848 = vmatprep.subr.bf16.mxu0 %v4372_v12  ;;  %3854 = vmatprep.subr.bf16.mxu1 %v4372_v12 }
 0x193   : > { %3839 = vmatmul.mubr.bf16.vlgmr.msra.gmra.mxu0 %v4590_v31  ;;  %3845 = vmatmul.mubr.bf16.vlgmr.msra.gmra.mxu1 %v4590_v31 }
 0x194   : > { %3849 = vmatpush3.bf16.xpose.msra.mxu0 %v4139_v38  ;;  %3855 = vmatpush3.bf16.xpose.msra.mxu1 %v4140_v39 }
 0x195   : > { %3850 = vmatprep.mubr.msk.bf16.mxu0 %vm4373_vm0, %v4372_v12  ;;  %3856 = vmatprep.mubr.msk.bf16.mxu1 %vm4373_vm0, %v4372_v12 }
 0x196   : > { %3860 = vmatprep.subr.bf16.mxu0 %v4372_v12  ;;  %3866 = vmatprep.subr.bf16.mxu1 %v4372_v12 }
 0x19b   : > { %3851 = vmatmul.mubr.bf16.vlgmr.msra.gmra.mxu0 %v4590_v31  ;;  %3857 = vmatmul.mubr.bf16.vlgmr.msra.gmra.mxu1 %v4590_v31 }
 0x19c   : > { %3861 = vmatpush3.bf16.xpose.msra.mxu0 %v4141_v40  ;;  %3867 = vmatpush3.bf16.xpose.msra.mxu1 %v4142_v41 }
 0x19d   : > { %3862 = vmatprep.mubr.msk.bf16.mxu0 %vm4373_vm0, %v4372_v12  ;;  %3868 = vmatprep.mubr.msk.bf16.mxu1 %vm4373_vm0, %v4372_v12 }
 0x19e   : > { %3872 = vmatprep.subr.bf16.mxu0 %v4372_v12  ;;  %3878 = vmatprep.subr.bf16.mxu1 %v4372_v12 }
 0x1a3   : > { %3863 = vmatmul.mubr.bf16.vlgmr.msra.gmra.mxu0 %v4590_v31  ;;  %3869 = vmatmul.mubr.bf16.vlgmr.msra.gmra.mxu1 %v4590_v31 }
 0x1a4   : > { %3873 = vmatpush3.bf16.xpose.msra.mxu0 %v4143_v42  ;;  %3879 = vmatpush3.bf16.xpose.msra.mxu1 %v4144_v43 }
 0x1a5   : > { %3874 = vmatprep.mubr.msk.bf16.mxu0 %vm4373_vm0, %v4372_v12  ;;  %3880 = vmatprep.mubr.msk.bf16.mxu1 %vm4373_vm0, %v4372_v12 }
 0x1a6   : > { %3884 = vmatprep.subr.bf16.mxu0 %v4372_v12  ;;  %3890 = vmatprep.subr.bf16.mxu1 %v4372_v12 }
 0x1ab   : > { %3875 = vmatmul.mubr.bf16.vlgmr.msra.gmra.mxu0 %v4590_v31  ;;  %3881 = vmatmul.mubr.bf16.vlgmr.msra.gmra.mxu1 %v4590_v31 }
 0x1ac   : > { %3885 = vmatpush3.bf16.xpose.msra.mxu0 %v4145_v44  ;;  %3891 = vmatpush3.bf16.xpose.msra.mxu1 %v4146_v45 }
 0x1ad   : > { %3886 = vmatprep.mubr.msk.bf16.mxu0 %vm4373_vm0, %v4372_v12  ;;  %3892 = vmatprep.mubr.msk.bf16.mxu1 %vm4373_vm0, %v4372_v12 }
 0x1ae   : > { %3896 = vmatprep.subr.bf16.mxu0 %v4372_v12  ;;  %3902 = vmatprep.subr.bf16.mxu1 %v4372_v12 }
 0x1b3   : > { %3887 = vmatmul.mubr.bf16.vlgmr.msra.gmra.mxu0 %v4590_v31  ;;  %3893 = vmatmul.mubr.bf16.vlgmr.msra.gmra.mxu1 %v4590_v31 }
 0x1b4   : > { %3897 = vmatpush3.bf16.xpose.msra.mxu0 %v4147_v46  ;;  %3903 = vmatpush3.bf16.xpose.msra.mxu1 %v4148_v47 }
 0x1b5   : > { %3898 = vmatprep.mubr.msk.bf16.mxu0 %vm4373_vm0, %v4372_v12  ;;  %3904 = vmatprep.mubr.msk.bf16.mxu1 %vm4373_vm0, %v4372_v12 }
 0x1b6   : > { %3908 = vmatprep.subr.bf16.mxu0 %v4372_v12  ;;  %3914 = vmatprep.subr.bf16.mxu1 %v4372_v12 }
 0x1bb   : > { %3899 = vmatmul.mubr.bf16.vlgmr.msra.gmra.mxu0 %v4590_v31  ;;  %3905 = vmatmul.mubr.bf16.vlgmr.msra.gmra.mxu1 %v4590_v31 }
 0x1bc   : > { %3909 = vmatpush3.bf16.xpose.msra.mxu0 %v4149_v48  ;;  %3915 = vmatpush3.bf16.xpose.msra.mxu1 %v4150_v49 }
 0x1bd   : > { %3910 = vmatprep.mubr.msk.bf16.mxu0 %vm4373_vm0, %v4372_v12  ;;  %3916 = vmatprep.mubr.msk.bf16.mxu1 %vm4373_vm0, %v4372_v12 }
 0x1be   : > { %3920 = vmatprep.subr.bf16.mxu0 %v4372_v12  ;;  %3926 = vmatprep.subr.bf16.mxu1 %v4372_v12 }
 0x1c3   : > { %3911 = vmatmul.mubr.bf16.vlgmr.msra.gmra.mxu0 %v4590_v31  ;;  %3917 = vmatmul.mubr.bf16.vlgmr.msra.gmra.mxu1 %v4590_v31 }
 0x1c4   : > { %3921 = vmatpush3.bf16.xpose.msra.mxu0 %v4151_v50  ;;  %3927 = vmatpush3.bf16.xpose.msra.mxu1 %v4152_v51 }
 0x1c5   : > { %3922 = vmatprep.mubr.msk.bf16.mxu0 %vm4373_vm0, %v4372_v12  ;;  %3928 = vmatprep.mubr.msk.bf16.mxu1 %vm4373_vm0, %v4372_v12 }
 0x1c6   : > { %3932 = vmatprep.subr.bf16.mxu0 %v4372_v12  ;;  %3938 = vmatprep.subr.bf16.mxu1 %v4372_v12 }
 0x1cb   : > { %3923 = vmatmul.mubr.bf16.vlgmr.msra.gmra.mxu0 %v4590_v31  ;;  %3929 = vmatmul.mubr.bf16.vlgmr.msra.gmra.mxu1 %v4590_v31 }
 0x1cc   : > { %3934 = vmatprep.mubr.msk.bf16.mxu0 %vm4373_vm0, %v4372_v12  ;;  %3940 = vmatprep.mubr.msk.bf16.mxu1 %vm4373_vm0, %v4372_v12 }
 0x233   : > { %v4746_v52 = vpop.f32.mrf.mxu0  ;;  %v4748_v53 = vpop.f32.mrf.mxu1 }
 0x235   : > { %v3792_v54 = vpop.f32.mrf.mxu0  ;;  %v3798_v55 = vpop.f32.mrf.mxu1 }
 0x237   : > { %v590_v56 = vpop.f32.mrf.mxu0  ;;  %v637_v57 = vpop.f32.mrf.mxu1 }
 0x238   : > { %v1707_v39 = vpack.c.bf16 %v590_v56, %v4746_v52  ;;  %v1708_v40 = vpack.c.bf16 %v637_v57, %v4748_v53 }
 0x239   : > { %v3793_v58 = vpop.f32.mrf.mxu0  ;;  %v3799_v59 = vpop.f32.mrf.mxu1 }
 0x23b   : > { %v4750_v60 = vpop.f32.mrf.mxu0  ;;  %v4752_v61 = vpop.f32.mrf.mxu1 }
 0x23d   : > { %v3804_v62 = vpop.f32.mrf.mxu0  ;;  %v3810_v63 = vpop.f32.mrf.mxu1 }
 0x23f   : > { %v4754_v0 = vpop.f32.mrf.mxu0  ;;  %v4756_v1 = vpop.f32.mrf.mxu1 }
 0x240   : > { %v1709_v53 = vpack.c.bf16 %v4754_v0, %v4750_v60  ;;  %v1710_v54 = vpack.c.bf16 %v4756_v1, %v4752_v61 }
 0x241   : > { %v3805_v2 = vpop.f32.mrf.mxu0  ;;  %v3811_v3 = vpop.f32.mrf.mxu1 }
 0x243   : > { %v4758_v4 = vpop.f32.mrf.mxu0  ;;  %v4760_v5 = vpop.f32.mrf.mxu1 }
 0x245   : > { %v3816_v6 = vpop.f32.mrf.mxu0  ;;  %v3822_v7 = vpop.f32.mrf.mxu1 }
 0x247   : > { %v4762_v8 = vpop.f32.mrf.mxu0  ;;  %v4764_v9 = vpop.f32.mrf.mxu1 }
 0x248   : > { %v1711_v3 = vpack.c.bf16 %v4762_v8, %v4758_v4  ;;  %v1712_v6 = vpack.c.bf16 %v4764_v9, %v4760_v5 }
 0x249   : > { %v3817_v10 = vpop.f32.mrf.mxu0  ;;  %v3823_v11 = vpop.f32.mrf.mxu1 }
 0x24b   : > { %v4766_v13 = vpop.f32.mrf.mxu0  ;;  %v4768_v14 = vpop.f32.mrf.mxu1 }
 0x24d   : > { %v3828_v15 = vpop.f32.mrf.mxu0  ;;  %v3834_v16 = vpop.f32.mrf.mxu1 }
 0x24f   : > { %v4770_v17 = vpop.f32.mrf.mxu0  ;;  %v4772_v18 = vpop.f32.mrf.mxu1 }
 0x251   : > { %v3829_v19 = vpop.f32.mrf.mxu0  ;;  %v3835_v20 = vpop.f32.mrf.mxu1 }
 0x253   : > { %v979_v21 = vpop.f32.mrf.mxu0  ;;  %v1026_v22 = vpop.f32.mrf.mxu1 }
 0x255   : > { %v3840_v23 = vpop.f32.mrf.mxu0  ;;  %v3846_v24 = vpop.f32.mrf.mxu1 }
 0x256   : > { %v1714_v23 = vpack.c.bf16 %v4772_v18, %v4768_v14 }
 0x257   : > { %v982_v25 = vpop.f32.mrf.mxu0  ;;  %v1029_v26 = vpop.f32.mrf.mxu1 }
 0x258   : > { %v1715_v27 = vpack.c.bf16 %v982_v25, %v979_v21  ;;  %v1716_v28 = vpack.c.bf16 %v1029_v26, %v1026_v22  ;;  %v1713_v22 = vpack.c.bf16 %v4770_v17, %v4766_v13 }
 0x259   : > { %v3841_v29 = vpop.f32.mrf.mxu0  ;;  %v3847_v30 = vpop.f32.mrf.mxu1 }
 0x25a   : > { %v1728_v31 = vsel %vm1723_vm1, %v1715_v27, 0  ;;  %v1775_v32 = vsel %vm1723_vm1, %v1716_v28, 0 }
 0x25b   : > { %v1073_v33 = vpop.f32.mrf.mxu0  ;;  %v1120_v34 = vpop.f32.mrf.mxu1  ;;  %3933 = vmatpush3.bf16.xpose.msra.mxu0 %v1728_v31  ;;  %3939 = vmatpush3.bf16.xpose.msra.mxu1 %v1775_v32 }
 0x25c   : > { %3944 = vmatprep.subr.bf16.mxu0 %v4372_v12  ;;  %3950 = vmatprep.subr.bf16.mxu1 %v4372_v12 }
 0x25d   : > { %v3852_v35 = vpop.f32.mrf.mxu0  ;;  %v3858_v36 = vpop.f32.mrf.mxu1 }
 0x25f   : > { %v1076_v37 = vpop.f32.mrf.mxu0  ;;  %v1123_v38 = vpop.f32.mrf.mxu1 }
 0x260   : > { %v1717_v41 = vpack.c.bf16 %v1076_v37, %v1073_v33  ;;  %v1718_v42 = vpack.c.bf16 %v1123_v38, %v1120_v34 }
 0x261   : > { %v3853_v43 = vpop.f32.mrf.mxu0  ;;  %v3859_v44 = vpop.f32.mrf.mxu1 }
 0x262   : > { %v1822_v45 = vsel %vm1723_vm1, %v1717_v41, 0  ;;  %v1869_v46 = vsel %vm1723_vm1, %v1718_v42, 0  ;;  %3935 = vmatmul.mubr.msk.bf16.vlgmr.msra.gmra.mxu0 %vm1723_vm1, %v1707_v39  ;;  %3941 = vmatmul.mubr.msk.bf16.vlgmr.msra.gmra.mxu1 %vm1723_vm1, %v1708_v40 }
 0x263   : > { %v1167_v47 = vpop.f32.mrf.mxu0  ;;  %v1214_v48 = vpop.f32.mrf.mxu1  ;;  %3945 = vmatpush3.bf16.xpose.msra.mxu0 %v1822_v45  ;;  %3951 = vmatpush3.bf16.xpose.msra.mxu1 %v1869_v46 }
 0x264   : > { %3946 = vmatprep.mubr.msk.bf16.mxu0 %vm4373_vm0, %v4372_v12  ;;  %3952 = vmatprep.mubr.msk.bf16.mxu1 %vm4373_vm0, %v4372_v12 }
 0x265   : > { %v3864_v49 = vpop.f32.mrf.mxu0  ;;  %v3870_v50 = vpop.f32.mrf.mxu1  ;;  %3956 = vmatprep.subr.bf16.mxu0 %v4372_v12  ;;  %3962 = vmatprep.subr.bf16.mxu1 %v4372_v12 }
 0x267   : > { %v1170_v51 = vpop.f32.mrf.mxu0  ;;  %v1217_v52 = vpop.f32.mrf.mxu1 }
 0x268   : > { %v1719_v55 = vpack.c.bf16 %v1170_v51, %v1167_v47  ;;  %v1720_v56 = vpack.c.bf16 %v1217_v52, %v1214_v48 }
 0x269   : > { %v3865_v57 = vpop.f32.mrf.mxu0  ;;  %v3871_v58 = vpop.f32.mrf.mxu1 }
 0x26a   : > { %v1916_v59 = vsel %vm1723_vm1, %v1719_v55, 0  ;;  %v1963_v62 = vsel %vm1723_vm1, %v1720_v56, 0  ;;  %3947 = vmatmul.mubr.msk.bf16.vlgmr.msra.gmra.mxu0 %vm1723_vm1, %v1709_v53  ;;  %3953 = vmatmul.mubr.msk.bf16.vlgmr.msra.gmra.mxu1 %vm1723_vm1, %v1710_v54 }
 0x26b   : > { %v1261_v63 = vpop.f32.mrf.mxu0  ;;  %v1308_v2 = vpop.f32.mrf.mxu1  ;;  %3957 = vmatpush3.bf16.xpose.msra.mxu0 %v1916_v59  ;;  %3963 = vmatpush3.bf16.xpose.msra.mxu1 %v1963_v62 }
 0x26c   : > { %3958 = vmatprep.mubr.msk.bf16.mxu0 %vm4373_vm0, %v4372_v12  ;;  %3964 = vmatprep.mubr.msk.bf16.mxu1 %vm4373_vm0, %v4372_v12 }
 0x26d   : > { %v3876_v60 = vpop.f32.mrf.mxu0  ;;  %v3882_v61 = vpop.f32.mrf.mxu1  ;;  %3968 = vmatprep.subr.bf16.mxu0 %v4372_v12  ;;  %3974 = vmatprep.subr.bf16.mxu1 %v4372_v12 }
 0x26f   : > { %v1264_v0 = vpop.f32.mrf.mxu0  ;;  %v1311_v1 = vpop.f32.mrf.mxu1 }
 0x270   : > { %v1721_v7 = vpack.c.bf16 %v1264_v0, %v1261_v63  ;;  %v1722_v10 = vpack.c.bf16 %v1311_v1, %v1308_v2 }
 0x271   : > { %v3877_v11 = vpop.f32.mrf.mxu0  ;;  %v3883_v15 = vpop.f32.mrf.mxu1 }
 0x272   : > { %v2010_v16 = vsel %vm1723_vm1, %v1721_v7, 0  ;;  %v2057_v19 = vsel %vm1723_vm1, %v1722_v10, 0  ;;  %3959 = vmatmul.mubr.msk.bf16.vlgmr.msra.gmra.mxu0 %vm1723_vm1, %v1711_v3  ;;  %3965 = vmatmul.mubr.msk.bf16.vlgmr.msra.gmra.mxu1 %vm1723_vm1, %v1712_v6 }
 0x273   : > { %v1371_v20 = vpop.f32.mrf.mxu0  ;;  %v1418_v21 = vpop.f32.mrf.mxu1  ;;  %3969 = vmatpush3.bf16.xpose.msra.mxu0 %v2010_v16  ;;  %3975 = vmatpush3.bf16.xpose.msra.mxu1 %v2057_v19 }
 0x274   : > { %3970 = vmatprep.mubr.msk.bf16.mxu0 %vm4373_vm0, %v4372_v12  ;;  %3976 = vmatprep.mubr.msk.bf16.mxu1 %vm4373_vm0, %v4372_v12 }
 0x275   : > { %v3888_v4 = vpop.f32.mrf.mxu0  ;;  %v3894_v5 = vpop.f32.mrf.mxu1  ;;  %3980 = vmatprep.subr.bf16.mxu0 %v4372_v12  ;;  %3986 = vmatprep.subr.bf16.mxu1 %v4372_v12 }
 0x277   : > { %v1374_v8 = vpop.f32.mrf.mxu0  ;;  %v1421_v9 = vpop.f32.mrf.mxu1 }
 0x278   : > { %v2284_v24 = vpack.c.bf16 %v1374_v8, %v1371_v20  ;;  %v2285_v25 = vpack.c.bf16 %v1421_v9, %v1418_v21 }
 0x279   : > { %v3889_v26 = vpop.f32.mrf.mxu0  ;;  %v3895_v27 = vpop.f32.mrf.mxu1 }
 0x27a   : > { %3971 = vmatmul.mubr.msk.bf16.vlgmr.msra.gmra.mxu0 %vm1723_vm1, %v1713_v22  ;;  %3977 = vmatmul.mubr.msk.bf16.vlgmr.msra.gmra.mxu1 %vm1723_vm1, %v1714_v23 }
 0x27b   : > { %v4824_v28 = vpop.f32.mrf.mxu0  ;;  %v4826_v29 = vpop.f32.mrf.mxu1  ;;  %3981 = vmatpush3.bf16.msra.mxu0 %v2284_v24  ;;  %3987 = vmatpush3.bf16.msra.mxu1 %v2285_v25 }
 0x27c   : > { %3982 = vmatprep.mubr.msk.bf16.mxu0 %vm4373_vm0, %v4372_v12  ;;  %3992 = vmatprep.subr.bf16.mxu0 %v4372_v12 }
 0x27d   : > { %v3900_v13 = vpop.f32.mrf.mxu0  ;;  %v3906_v14 = vpop.f32.mrf.mxu1  ;;  %3988 = vmatprep.mubr.msk.bf16.mxu1 %vm4373_vm0, %v4372_v12  ;;  %3998 = vmatprep.subr.bf16.mxu1 %v4372_v12 }
 0x27f   : > { %v4834_v17 = vpop.f32.mrf.mxu0  ;;  %v4836_v18 = vpop.f32.mrf.mxu1 }
 0x280   : > { %v2286_v30 = vpack.c.bf16 %v4834_v17, %v4824_v28  ;;  %v2287_v31 = vpack.c.bf16 %v4836_v18, %v4826_v29 }
 0x281   : > { %v3901_v32 = vpop.f32.mrf.mxu0  ;;  %v3907_v33 = vpop.f32.mrf.mxu1 }
 0x283   : > { %v4842_v34 = vpop.f32.mrf.mxu0  ;;  %v4844_v35 = vpop.f32.mrf.mxu1 }
 0x285   : > { %v3912_v36 = vpop.f32.mrf.mxu0  ;;  %v3918_v37 = vpop.f32.mrf.mxu1 }
 0x287   : > { %v4846_v38 = vpop.f32.mrf.mxu0  ;;  %v4848_v39 = vpop.f32.mrf.mxu1 }
 0x288   : > { %v2288_v40 = vpack.c.bf16 %v4846_v38, %v4842_v34  ;;  %v2289_v41 = vpack.c.bf16 %v4848_v39, %v4844_v35 }
 0x289   : > { %v3913_v42 = vpop.f32.mrf.mxu0  ;;  %v3919_v43 = vpop.f32.mrf.mxu1 }
 0x28b   : > { %v4854_v44 = vpop.f32.mrf.mxu0  ;;  %v4856_v45 = vpop.f32.mrf.mxu1 }
 0x28d   : > { %v3924_v46 = vpop.f32.mrf.mxu0  ;;  %v3930_v47 = vpop.f32.mrf.mxu1 }
 0x28f   : > { %v4858_v48 = vpop.f32.mrf.mxu0  ;;  %v4860_v49 = vpop.f32.mrf.mxu1 }
 0x290   : > { %v2290_v50 = vpack.c.bf16 %v4858_v48, %v4854_v44  ;;  %v2291_v51 = vpack.c.bf16 %v4860_v49, %v4856_v45  ;;  %v4153_v45 = vld [vmem:[%s5314_s6] sm:$0xff]   ;;  %v4154_v49 = vld [vmem:[%s5314_s6 + $0x8] sm:$0xff]  }
 0x291   : > { %v3925_v52 = vpop.f32.mrf.mxu0  ;;  %v3931_v53 = vpop.f32.mrf.mxu1 }
 0x322   : > { %v4866_v54 = vpop.f32.mrf.mxu0  ;;  %v4868_v55 = vpop.f32.mrf.mxu1 }
 0x323   : > { %v2100_v56 = vsel %vm1723_vm1, %v4866_v54, -inf  ;;  %v2106_v63 = vsel %vm1723_vm1, %v4868_v55, -inf }
 0x324   : > { %v3942_v57 = vpop.f32.mrf.mxu1  ;;  %2101 = vmax.xlane.f32.xlu0 %v2100_v56  ;;  %v3936_v58 = vpop.f32.mrf.mxu0 }
 0x326   : > { %v4872_v59 = vpop.f32.mrf.mxu0  ;;  %v4874_v62 = vpop.f32.mrf.mxu1 }
 0x327   : > { %v2103_v2 = vsel %vm1723_vm1, %v4872_v59, -inf  ;;  %v2109_v3 = vsel %vm1723_vm1, %v4874_v62, -inf }
 0x328   : > { %v3943_v60 = vpop.f32.mrf.mxu1  ;;  %2107 = vmax.xlane.f32.xlu0 %v2106_v63  ;;  %2104 = vmax.xlane.f32.xlu1 %v2103_v2  ;;  %v3937_v61 = vpop.f32.mrf.mxu0 }
 0x32a   : > { %v4880_v0 = vpop.f32.mrf.mxu0  ;;  %v4882_v1 = vpop.f32.mrf.mxu1 }
 0x32b   : > { %v2112_v6 = vsel %vm1723_vm1, %v4880_v0, -inf  ;;  %v2118_v16 = vsel %vm1723_vm1, %v4882_v1, -inf }
 0x32c   : > { %v3954_v7 = vpop.f32.mrf.mxu1  ;;  %2110 = vmax.xlane.f32.xlu1 %v2109_v3  ;;  %2113 = vmax.xlane.f32.xlu0 %v2112_v6  ;;  %v3948_v10 = vpop.f32.mrf.mxu0 }
 0x32e   : > { %v4888_v11 = vpop.f32.mrf.mxu0  ;;  %v4890_v15 = vpop.f32.mrf.mxu1 }
 0x32f   : > { %v2115_v19 = vsel %vm1723_vm1, %v4888_v11, -inf  ;;  %v2121_v8 = vsel %vm1723_vm1, %v4890_v15, -inf }
 0x330   : > { %v3955_v20 = vpop.f32.mrf.mxu1  ;;  %2119 = vmax.xlane.f32.xlu0 %v2118_v16  ;;  %2116 = vmax.xlane.f32.xlu1 %v2115_v19  ;;  %v3949_v21 = vpop.f32.mrf.mxu0 }
 0x332   : > { %v4896_v4 = vpop.f32.mrf.mxu0  ;;  %v4898_v5 = vpop.f32.mrf.mxu1 }
 0x333   : > { %v2124_v9 = vsel %vm1723_vm1, %v4896_v4, -inf  ;;  %v2130_v26 = vsel %vm1723_vm1, %v4898_v5, -inf }
 0x334   : > { %v3966_v22 = vpop.f32.mrf.mxu1  ;;  %2122 = vmax.xlane.f32.xlu1 %v2121_v8  ;;  %2125 = vmax.xlane.f32.xlu0 %v2124_v9  ;;  %v3960_v23 = vpop.f32.mrf.mxu0 }
 0x336   : > { %v4904_v24 = vpop.f32.mrf.mxu0  ;;  %v4906_v25 = vpop.f32.mrf.mxu1 }
 0x337   : > { %v2127_v27 = vsel %vm1723_vm1, %v4904_v24, -inf  ;;  %v2133_v36 = vsel %vm1723_vm1, %v4906_v25, -inf }
 0x338   : > { %v3967_v13 = vpop.f32.mrf.mxu1  ;;  %2131 = vmax.xlane.f32.xlu0 %v2130_v26  ;;  %2128 = vmax.xlane.f32.xlu1 %v2127_v27  ;;  %v3961_v14 = vpop.f32.mrf.mxu0 }
 0x33a   : > { %v4912_v32 = vpop.f32.mrf.mxu0  ;;  %v4914_v33 = vpop.f32.mrf.mxu1 }
 0x33b   : > { %v2136_v37 = vsel %vm1723_vm1, %v4912_v32, -inf  ;;  %v2142_v52 = vsel %vm1723_vm1, %v4914_v33, -inf }
 0x33c   : > { %v3978_v42 = vpop.f32.mrf.mxu1  ;;  %2134 = vmax.xlane.f32.xlu1 %v2133_v36  ;;  %2137 = vmax.xlane.f32.xlu0 %v2136_v37  ;;  %v3972_v43 = vpop.f32.mrf.mxu0 }
 0x33e   : > { %v4920_v46 = vpop.f32.mrf.mxu0  ;;  %v4922_v47 = vpop.f32.mrf.mxu1 }
 0x33f   : > { %v2139_v53 = vsel %vm1723_vm1, %v4920_v46, -inf  ;;  %v2145_v58 = vsel %vm1723_vm1, %v4922_v47, -inf }
 0x340   : > { %v3979_v56 = vpop.f32.mrf.mxu1  ;;  %2143 = vmax.xlane.f32.xlu0 %v2142_v52  ;;  %2140 = vmax.xlane.f32.xlu1 %v2139_v53  ;;  %v3973_v57 = vpop.f32.mrf.mxu0 }
 0x344   : > { %2146 = vmax.xlane.f32.xlu1 %v2145_v58 }
 0x3ad   : > { %v2102_v63 = vpop.xlane.xlu0 %2101 }
 0x3ae   : > { %v2148_v2 = vsub.f32 %v4866_v54, %v2102_v63 }
 0x3b0   : > { %v2164_v60 = vmul.f32 1.442695, %v2148_v2 }
 0x3b1   : > { %v2108_v61 = vpop.xlane.xlu0 %2107  ;;  %v2105_v3 = vpop.xlane.xlu1 %2104 }
 0x3b2   : > { %4205 = vpow2.f32 %v2164_v60  ;;  %v2150_v6 = vsub.f32 %v4868_v55, %v2108_v61  ;;  %v2149_v7 = vsub.f32 %v4872_v59, %v2105_v3 }
 0x3b4   : > { %v2168_v10 = vmul.f32 1.442695, %v2150_v6  ;;  %v2166_v16 = vmul.f32 1.442695, %v2149_v7 }
 0x3b5   : > { %v2111_v19 = vpop.xlane.xlu1 %2110  ;;  %v2114_v20 = vpop.xlane.xlu0 %2113 }
 0x3b6   : > { %4207 = vpow2.f32 %v2168_v10  ;;  %v2151_v21 = vsub.f32 %v4874_v62, %v2111_v19  ;;  %v2152_v8 = vsub.f32 %v4880_v0, %v2114_v20 }
 0x3b7   : > { %4209 = vpow2.f32 %v2166_v16 }
 0x3b8   : > { %v2170_v9 = vmul.f32 1.442695, %v2151_v21  ;;  %v2172_v54 = vmul.f32 1.442695, %v2152_v8 }
 0x3b9   : > { %v2120_v22 = vpop.xlane.xlu0 %2119  ;;  %v2117_v23 = vpop.xlane.xlu1 %2116 }
 0x3ba   : > { %4211 = vpow2.f32 %v2170_v9  ;;  %v2154_v26 = vsub.f32 %v4882_v1, %v2120_v22  ;;  %v2153_v55 = vsub.f32 %v4888_v11, %v2117_v23 }
 0x3bb   : > { %4213 = vpow2.f32 %v2172_v54 }
 0x3bc   : > { %v2176_v59 = vmul.f32 1.442695, %v2154_v26  ;;  %v2174_v27 = vmul.f32 1.442695, %v2153_v55 }
 0x3bd   : > { %v2123_v13 = vpop.xlane.xlu1 %2122  ;;  %v2126_v14 = vpop.xlane.xlu0 %2125 }
 0x3be   : > { %4215 = vpow2.f32 %v2176_v59  ;;  %v2155_v62 = vsub.f32 %v4890_v15, %v2123_v13  ;;  %v2156_v0 = vsub.f32 %v4896_v4, %v2126_v14 }
 0x3bf   : > { %v4939_v36 = vpop.eup %4205  ;;  %4217 = vpow2.f32 %v2174_v27 }
 0x3c0   : > { %v2178_v37 = vmul.f32 1.442695, %v2155_v62  ;;  %v2180_v42 = vmul.f32 1.442695, %v2156_v0  ;;  %v2196_v1 = vsel %vm1723_vm1, %v4939_v36, 0.0 }
 0x3c1   : > { %v2132_v43 = vpop.xlane.xlu0 %2131  ;;  %v2129_v11 = vpop.xlane.xlu1 %2128  ;;  %2197 = vadd.xlane.f32.xlu0 %v2196_v1 }
 0x3c2   : > { %4219 = vpow2.f32 %v2178_v37  ;;  %v2158_v52 = vsub.f32 %v4898_v5, %v2132_v43  ;;  %v2157_v53 = vsub.f32 %v4904_v24, %v2129_v11 }
 0x3c3   : > { %v4945_v56 = vpop.eup %4207  ;;  %4221 = vpow2.f32 %v2180_v42 }
 0x3c4   : > { %v4947_v15 = vpop.eup %4209  ;;  %v2184_v4 = vmul.f32 1.442695, %v2158_v52  ;;  %v2182_v57 = vmul.f32 1.442695, %v2157_v53  ;;  %v2202_v58 = vsel %vm1723_vm1, %v4945_v56, 0.0 }
 0x3c5   : > { %v2135_v63 = vpop.xlane.xlu1 %2134  ;;  %2203 = vadd.xlane.f32.xlu0 %v2202_v58  ;;  %v2138_v2 = vpop.xlane.xlu0 %2137  ;;  %v2199_v60 = vsel %vm1723_vm1, %v4947_v15, 0.0 }
 0x3c6   : > { %4223 = vpow2.f32 %v2184_v4  ;;  %v2159_v5 = vsub.f32 %v4906_v25, %v2135_v63  ;;  %v2160_v24 = vsub.f32 %v4912_v32, %v2138_v2  ;;  %2200 = vadd.xlane.f32.xlu1 %v2199_v60 }
 0x3c7   : > { %v4955_v61 = vpop.eup %4211  ;;  %4225 = vpow2.f32 %v2182_v57 }
 0x3c8   : > { %v4957_v3 = vpop.eup %4213  ;;  %v2186_v6 = vmul.f32 1.442695, %v2159_v5  ;;  %v2188_v7 = vmul.f32 1.442695, %v2160_v24  ;;  %v2205_v10 = vsel %vm1723_vm1, %v4955_v61, 0.0 }
 0x3c9   : > { %v2208_v16 = vsel %vm1723_vm1, %v4957_v3, 0.0  ;;  %v2144_v19 = vpop.xlane.xlu0 %2143  ;;  %v2141_v20 = vpop.xlane.xlu1 %2140 }
 0x3ca   : > { %4227 = vpow2.f32 %v2186_v6  ;;  %2209 = vadd.xlane.f32.xlu0 %v2208_v16  ;;  %v2162_v25 = vsub.f32 %v4914_v33, %v2144_v19  ;;  %2206 = vadd.xlane.f32.xlu1 %v2205_v10  ;;  %v2161_v32 = vsub.f32 %v4920_v46, %v2141_v20 }
 0x3cb   : > { %v4965_v21 = vpop.eup %4215  ;;  %4229 = vpow2.f32 %v2188_v7 }
 0x3cc   : > { %v4967_v8 = vpop.eup %4217  ;;  %v2192_v9 = vmul.f32 1.442695, %v2162_v25  ;;  %v2190_v54 = vmul.f32 1.442695, %v2161_v32  ;;  %v2214_v22 = vsel %vm1723_vm1, %v4965_v21, 0.0 }
 0x3cd   : > { %v2211_v23 = vsel %vm1723_vm1, %v4967_v8, 0.0  ;;  %v2147_v26 = vpop.xlane.xlu1 %2146 }
 0x3ce   : > { %4231 = vpow2.f32 %v2192_v9  ;;  %2215 = vadd.xlane.f32.xlu0 %v2214_v22  ;;  %2212 = vadd.xlane.f32.xlu1 %v2211_v23  ;;  %v2163_v33 = vsub.f32 %v4922_v47, %v2147_v26 }
 0x3cf   : > { %v4974_v46 = vpop.eup %4219  ;;  %4233 = vpow2.f32 %v2190_v54 }
 0x3d0   : > { %v4976_v55 = vpop.eup %4221  ;;  %v2194_v59 = vmul.f32 1.442695, %v2163_v33  ;;  %v2217_v27 = vsel %vm1723_vm1, %v4974_v46, 0.0 }
 0x3d1   : > { %v2220_v13 = vsel %vm1723_vm1, %v4976_v55, 0.0 }
 0x3d2   : > { %4235 = vpow2.f32 %v2194_v59  ;;  %2221 = vadd.xlane.f32.xlu0 %v2220_v13  ;;  %2218 = vadd.xlane.f32.xlu1 %v2217_v27 }
 0x3d3   : > { %v4982_v14 = vpop.eup %4223 }
 0x3d4   : > { %v4984_v62 = vpop.eup %4225  ;;  %v2226_v47 = vsel %vm1723_vm1, %v4982_v14, 0.0 }
 0x3d5   : > { %v2223_v0 = vsel %vm1723_vm1, %v4984_v62, 0.0 }
 0x3d6   : > { %2227 = vadd.xlane.f32.xlu0 %v2226_v47  ;;  %2224 = vadd.xlane.f32.xlu1 %v2223_v0 }
 0x3d7   : > { %v4990_v37 = vpop.eup %4227 }
 0x3d8   : > { %v4992_v42 = vpop.eup %4229  ;;  %v2229_v1 = vsel %vm1723_vm1, %v4990_v37, 0.0 }
 0x3d9   : > { %v2232_v43 = vsel %vm1723_vm1, %v4992_v42, 0.0 }
 0x3da   : > { %2233 = vadd.xlane.f32.xlu0 %v2232_v43  ;;  %2230 = vadd.xlane.f32.xlu1 %v2229_v1 }
 0x3db   : > { %v4998_v11 = vpop.eup %4231 }
 0x3dc   : > { %v5000_v52 = vpop.eup %4233  ;;  %v2238_v53 = vsel %vm1723_vm1, %v4998_v11, 0.0 }
 0x3dd   : > { %v2235_v4 = vsel %vm1723_vm1, %v5000_v52, 0.0 }
 0x3de   : > { %2239 = vadd.xlane.f32.xlu0 %v2238_v53  ;;  %2236 = vadd.xlane.f32.xlu1 %v2235_v4 }
 0x3df   : > { %v5006_v57 = vpop.eup %4235 }
 0x3e0   : > { %v2241_v58 = vsel %vm1723_vm1, %v5006_v57, 0.0 }
 0x3e2   : > { %2242 = vadd.xlane.f32.xlu1 %v2241_v58 }
 0x44a   : > { %v2198_v63 = vpop.xlane.xlu0 %2197 }
 0x44b   : > { %4237 = vrcp.f32 %v2198_v63 }
 0x44e   : > { %v2204_v2 = vpop.xlane.xlu0 %2203 }
 0x44f   : > { %v2201_v60 = vpop.xlane.xlu1 %2200 }
 0x450   : > { %4239 = vrcp.f32 %v2201_v60 }
 0x451   : > { %4241 = vrcp.f32 %v2204_v2 }
 0x453   : > { %v2210_v5 = vpop.xlane.xlu0 %2209  ;;  %v2207_v24 = vpop.xlane.xlu1 %2206 }
 0x454   : > { %4243 = vrcp.f32 %v2207_v24 }
 0x455   : > { %4245 = vrcp.f32 %v2210_v5 }
 0x457   : > { %v2216_v6 = vpop.xlane.xlu0 %2215  ;;  %v2213_v7 = vpop.xlane.xlu1 %2212 }
 0x458   : > { %4247 = vrcp.f32 %v2213_v7  ;;  %v4238_v10 = vpop.eup %4237 }
 0x459   : > { %4249 = vrcp.f32 %v2216_v6  ;;  %v2260_v25 = vmul.f32 %v4238_v10, %v4939_v36  ;;  %v4156_v6 = vld [vmem:[%s5314_s6 + $0x18] sm:$0xff]  }
 0x45b   : > { %v2222_v16 = vpop.xlane.xlu0 %2221  ;;  %v2219_v19 = vpop.xlane.xlu1 %2218 }
 0x45c   : > { %4251 = vrcp.f32 %v2219_v19 }
 0x45d   : > { %v4240_v20 = vpop.eup %4239  ;;  %4253 = vrcp.f32 %v2222_v16 }
 0x45e   : > { %v2261_v32 = vmul.f32 %v4240_v20, %v4947_v15  ;;  %v4242_v22 = vpop.eup %4241 }
 0x45f   : > { %v2228_v9 = vpop.xlane.xlu0 %2227  ;;  %v2225_v54 = vpop.xlane.xlu1 %2224  ;;  %v2262_v36 = vmul.f32 %v4242_v22, %v4945_v56 }
 0x460   : > { %v2276_v23 = vpack.c.bf16 %v2261_v32, %v2260_v25  ;;  %4255 = vrcp.f32 %v2225_v54  ;;  %v4157_v25 = vld [vmem:[%s5314_s6 + $0x20] sm:$0xff]  }
 0x461   : > { %v4244_v26 = vpop.eup %4243  ;;  %4257 = vrcp.f32 %v2228_v9 }
 0x462   : > { %3983 = vmatmul.mubr.msk.bf16.vlgmr.msra.gmra.mxu0 %vm1723_vm1, %v2276_v23  ;;  %v2263_v15 = vmul.f32 %v4244_v26, %v4955_v61  ;;  %v4246_v27 = vpop.eup %4245  ;;  %v4158_v26 = vld [vmem:[%s5314_s6 + $0x28] sm:$0xff]  }
 0x463   : > { %3993 = vmatpush3.bf16.msra.mxu0 %v2286_v30  ;;  %v2234_v33 = vpop.xlane.xlu0 %2233  ;;  %v2231_v59 = vpop.xlane.xlu1 %2230  ;;  %3994 = vmatprep.mubr.msk.bf16.mxu0 %vm4373_vm0, %v4372_v12  ;;  %v2264_v30 = vmul.f32 %v4246_v27, %v4957_v3 }
 0x464   : > { %4004 = vmatprep.subr.bf16.mxu0 %v4372_v12  ;;  %4259 = vrcp.f32 %v2231_v59  ;;  %v2277_v13 = vpack.c.bf16 %v2263_v15, %v2262_v36 }
 0x465   : > { %v4248_v47 = vpop.eup %4247  ;;  %4261 = vrcp.f32 %v2234_v33 }
 0x466   : > { %3989 = vmatmul.mubr.msk.bf16.vlgmr.msra.gmra.mxu1 %vm1723_vm1, %v2277_v13  ;;  %v2265_v56 = vmul.f32 %v4248_v47, %v4967_v8  ;;  %v4250_v0 = vpop.eup %4249  ;;  %v4159_v13 = vld [vmem:[%s5314_s6 + $0x30] sm:$0xff]  }
 0x467   : > { %v2240_v28 = vpop.xlane.xlu0 %2239  ;;  %v2237_v17 = vpop.xlane.xlu1 %2236  ;;  %3999 = vmatpush3.bf16.msra.mxu1 %v2287_v31  ;;  %4000 = vmatprep.mubr.msk.bf16.mxu1 %vm4373_vm0, %v4372_v12  ;;  %v2266_v3 = vmul.f32 %v4250_v0, %v4965_v21  ;;  %v4160_v0 = vld [vmem:[%s5314_s6 + $0x38] sm:$0xff]  }
 0x468   : > { %4263 = vrcp.f32 %v2237_v17  ;;  %v2278_v61 = vpack.c.bf16 %v2265_v56, %v2264_v30  ;;  %4010 = vmatprep.subr.bf16.mxu1 %v4372_v12 }
 0x469   : > { %v4252_v1 = vpop.eup %4251  ;;  %4265 = vrcp.f32 %v2240_v28 }
 0x46a   : > { %3995 = vmatmul.mubr.msk.bf16.vlgmr.msra.gmra.mxu0 %vm1723_vm1, %v2278_v61  ;;  %v2267_v8 = vmul.f32 %v4252_v1, %v4974_v46  ;;  %v4254_v53 = vpop.eup %4253 }
 0x46b   : > { %v2243_v43 = vpop.xlane.xlu1 %2242  ;;  %4005 = vmatpush3.bf16.msra.mxu0 %v2288_v40  ;;  %4006 = vmatprep.mubr.msk.bf16.mxu0 %vm4373_vm0, %v4372_v12  ;;  %v2268_v31 = vmul.f32 %v4254_v53, %v4976_v55 }
 0x46c   : > { %4267 = vrcp.f32 %v2243_v43  ;;  %v2279_v29 = vpack.c.bf16 %v2267_v8, %v2266_v3  ;;  %4016 = vmatprep.subr.bf16.mxu0 %v4372_v12 }
 0x46d   : > { %v4256_v18 = vpop.eup %4255 }
 0x46e   : > { %4001 = vmatmul.mubr.msk.bf16.vlgmr.msra.gmra.mxu1 %vm1723_vm1, %v2279_v29  ;;  %v2269_v21 = vmul.f32 %v4256_v18, %v4984_v62  ;;  %v4258_v46 = vpop.eup %4257 }
 0x46f   : > { %4011 = vmatpush3.bf16.msra.mxu1 %v2289_v41  ;;  %4012 = vmatprep.mubr.msk.bf16.mxu1 %vm4373_vm0, %v4372_v12  ;;  %v2270_v40 = vmul.f32 %v4258_v46, %v4982_v14 }
 0x470   : > { %v2280_v34 = vpack.c.bf16 %v2269_v21, %v2268_v31  ;;  %4022 = vmatprep.subr.bf16.mxu1 %v4372_v12 }
 0x471   : > { %v4260_v38 = vpop.eup %4259 }
 0x472   : > { %4007 = vmatmul.mubr.msk.bf16.vlgmr.msra.gmra.mxu0 %vm1723_vm1, %v2280_v34  ;;  %v2271_v55 = vmul.f32 %v4260_v38, %v4990_v37  ;;  %v4262_v4 = vpop.eup %4261 }
 0x473   : > { %4017 = vmatpush3.bf16.msra.mxu0 %v2290_v50  ;;  %4018 = vmatprep.mubr.msk.bf16.mxu0 %vm4373_vm0, %v4372_v12  ;;  %v2272_v62 = vmul.f32 %v4262_v4, %v4992_v42 }
 0x474   : > { %v2281_v35 = vpack.c.bf16 %v2271_v55, %v2270_v40  ;;  %4028 = vmatprep.subr.bf16.mxu0 %v4372_v12 }
 0x475   : > { %v4264_v39 = vpop.eup %4263 }
 0x476   : > { %v4266_v41 = vpop.eup %4265  ;;  %4013 = vmatmul.mubr.msk.bf16.vlgmr.msra.gmra.mxu1 %vm1723_vm1, %v2281_v35  ;;  %v2273_v14 = vmul.f32 %v4264_v39, %v5000_v52 }
 0x477   : > { %4023 = vmatpush3.bf16.msra.mxu1 %v2291_v51  ;;  %4024 = vmatprep.mubr.msk.bf16.mxu1 %vm4373_vm0, %v4372_v12  ;;  %v2274_v50 = vmul.f32 %v4266_v41, %v4998_v11 }
 0x478   : > { %v2282_v48 = vpack.c.bf16 %v2273_v14, %v2272_v62  ;;  %4034 = vmatprep.subr.bf16.mxu1 %v4372_v12 }
 0x479   : > { %v4268_v44 = vpop.eup %4267 }
 0x47a   : > { %v2275_v37 = vmul.f32 %v4268_v44, %v5006_v57  ;;  %4019 = vmatmul.mubr.msk.bf16.vlgmr.msra.gmra.mxu0 %vm1723_vm1, %v2282_v48  ;;  %v4155_v57 = vld [vmem:[%s5314_s6 + $0x10] sm:$0xff]  }
 0x47b   : > { %4030 = vmatprep.mubr.msk.bf16.mxu0 %vm4373_vm0, %v4372_v12  ;;  %4029 = vmatpush3.bf16.msra.mxu0 %v4153_v45 }
 0x47c   : > { %v2283_v42 = vpack.c.bf16 %v2275_v37, %v2274_v50  ;;  %4040 = vmatprep.subr.bf16.mxu0 %v4372_v12 }
 0x47e   : > { %4025 = vmatmul.mubr.msk.bf16.vlgmr.msra.gmra.mxu1 %vm1723_vm1, %v2283_v42 }
 0x47f   : > { %4036 = vmatprep.mubr.msk.bf16.mxu1 %vm4373_vm0, %v4372_v12  ;;  %4035 = vmatpush3.bf16.msra.mxu1 %v4154_v49 }
 0x480   : > { %4046 = vmatprep.subr.bf16.mxu1 %v4372_v12 }
 0x522   : > { %v2329_v51 = vpop.f32.mrf.mxu0 }
 0x524   : > { %v3984_v11 = vpop.f32.mrf.mxu0 }
 0x526   : > { %v2332_v52 = vpop.f32.mrf.mxu0  ;;  %v2373_v63 = vpop.f32.mrf.mxu1 }
 0x527   : > { %v2644_v58 = vpack.c.bf16 %v2332_v52, %v2329_v51 }
 0x528   : > { %v3985_v2 = vpop.f32.mrf.mxu0  ;;  %v3990_v60 = vpop.f32.mrf.mxu1 }
 0x529   : > { %4031 = vmatmul.mubr.msk.bf16.vlgmr.msra.gmra.mxu0 %vm1723_vm1, %v2644_v58 }
 0x52a   : > { %4041 = vmatpush3.bf16.msra.mxu0 %v4155_v57  ;;  %4042 = vmatprep.mubr.msk.bf16.mxu0 %vm4373_vm0, %v4372_v12  ;;  %v2376_v5 = vpop.f32.mrf.mxu1  ;;  %v2417_v24 = vpop.f32.mrf.mxu0 }
 0x52b   : > { %4052 = vmatprep.subr.bf16.mxu0 %v4372_v12  ;;  %v2645_v7 = vpack.c.bf16 %v2376_v5, %v2373_v63 }
 0x52c   : > { %v3991_v10 = vpop.f32.mrf.mxu1  ;;  %v3996_v16 = vpop.f32.mrf.mxu0 }
 0x52d   : > { %4037 = vmatmul.mubr.msk.bf16.vlgmr.msra.gmra.mxu1 %vm1723_vm1, %v2645_v7 }
 0x52e   : > { %v2420_v19 = vpop.f32.mrf.mxu0  ;;  %v2461_v20 = vpop.f32.mrf.mxu1  ;;  %4047 = vmatpush3.bf16.msra.mxu1 %v4156_v6  ;;  %4048 = vmatprep.mubr.msk.bf16.mxu1 %vm4373_vm0, %v4372_v12 }
 0x52f   : > { %v2646_v32 = vpack.c.bf16 %v2420_v19, %v2417_v24  ;;  %4058 = vmatprep.subr.bf16.mxu1 %v4372_v12 }
 0x530   : > { %v3997_v9 = vpop.f32.mrf.mxu0  ;;  %v4002_v54 = vpop.f32.mrf.mxu1 }
 0x531   : > { %4043 = vmatmul.mubr.msk.bf16.vlgmr.msra.gmra.mxu0 %vm1723_vm1, %v2646_v32 }
 0x532   : > { %v2464_v22 = vpop.f32.mrf.mxu1  ;;  %v2505_v23 = vpop.f32.mrf.mxu0  ;;  %4053 = vmatpush3.bf16.msra.mxu0 %v4157_v25  ;;  %4054 = vmatprep.mubr.msk.bf16.mxu0 %vm4373_vm0, %v4372_v12 }
 0x533   : > { %v2647_v33 = vpack.c.bf16 %v2464_v22, %v2461_v20  ;;  %4064 = vmatprep.subr.bf16.mxu0 %v4372_v12 }
 0x534   : > { %v4003_v59 = vpop.f32.mrf.mxu1  ;;  %v4008_v36 = vpop.f32.mrf.mxu0 }
 0x535   : > { %4049 = vmatmul.mubr.msk.bf16.vlgmr.msra.gmra.mxu1 %vm1723_vm1, %v2647_v33  ;;  %v3627_v59 = vld [vmem:[%s5315_s7] ss:$0 sm:$0xff] }
 0x536   : > { %v2508_v15 = vpop.f32.mrf.mxu0  ;;  %v2549_v27 = vpop.f32.mrf.mxu1  ;;  %4059 = vmatpush3.bf16.msra.mxu1 %v4158_v26  ;;  %4060 = vmatprep.mubr.msk.bf16.mxu1 %vm4373_vm0, %v4372_v12 }
 0x537   : > { %v2648_v47 = vpack.c.bf16 %v2508_v15, %v2505_v23  ;;  %4070 = vmatprep.subr.bf16.mxu1 %v4372_v12  ;;  %v4273_v15 = vld [vmem:[%s4556_s21] sm:$0xff] }
 0x538   : > { %v4009_v28 = vpop.f32.mrf.mxu0  ;;  %v4014_v17 = vpop.f32.mrf.mxu1 }
 0x539   : > { %4055 = vmatmul.mubr.msk.bf16.vlgmr.msra.gmra.mxu0 %vm1723_vm1, %v2648_v47 }
 0x53a   : > { %v2552_v30 = vpop.f32.mrf.mxu1  ;;  %v2593_v56 = vpop.f32.mrf.mxu0  ;;  %4065 = vmatpush3.bf16.msra.mxu0 %v4159_v13  ;;  %4066 = vmatprep.mubr.msk.bf16.mxu0 %vm4373_vm0, %v4372_v12 }
 0x53b   : > { %v2649_v61 = vpack.c.bf16 %v2552_v30, %v2549_v27  ;;  %v4274_v30 = vld [vmem:[%s4556_s21 + $0x8] sm:$0xff] }
 0x53c   : > { %v4015_v1 = vpop.f32.mrf.mxu1  ;;  %v4020_v43 = vpop.f32.mrf.mxu0 }
 0x53d   : > { %4061 = vmatmul.mubr.msk.bf16.vlgmr.msra.gmra.mxu1 %vm1723_vm1, %v2649_v61  ;;  %v4161_v61 = vld [vmem:[%s5318_s10 + $0x70] ss:$8 sps:$4 sm:$0xff]   ;;  %v4163_v1 = vld [vmem:[%s5318_s10 + $0x74] ss:$8 sps:$4 sm:$0xff]  }
 0x53e   : > { %v2596_v3 = vpop.f32.mrf.mxu0  ;;  %v2637_v8 = vpop.f32.mrf.mxu1  ;;  %4071 = vmatpush3.bf16.msra.mxu1 %v4160_v0  ;;  %4072 = vmatprep.mubr.msk.bf16.mxu1 %vm4373_vm0, %v4372_v12 }
 0x53f   : > { %v2650_v53 = vpack.c.bf16 %v2596_v3, %v2593_v56  ;;  %3242 = vmatprep.subr.bf16.mxu0 %v4163_v1 }
 0x540   : > { %v4021_v29 = vpop.f32.mrf.mxu0  ;;  %v4026_v18 = vpop.f32.mrf.mxu1 }
 0x541   : > { %4067 = vmatmul.mubr.msk.bf16.vlgmr.msra.gmra.mxu0 %vm1723_vm1, %v2650_v53 }
 0x542   : > { %v2640_v31 = vpop.f32.mrf.mxu1  ;;  %3243 = vmatpush1.bf16.msra.mxu0 %v4161_v61  ;;  %v3150_v61 = vld [vmem:[%s5319_s11] sm:$0x3] }
 0x543   : > { %v2651_v21 = vpack.c.bf16 %v2640_v31, %v2637_v8 }
 0x544   : > { %v4027_v46 = vpop.f32.mrf.mxu1 }
 0x545   : > { %4073 = vmatmul.mubr.msk.bf16.vlgmr.msra.gmra.mxu1 %vm1723_vm1, %v2651_v21  ;;  %v4166_v46 = vld [vmem:[%s5318_s10 + $0x64] ss:$8 sps:$4 sm:$0xff]  }
 0x546   : > { %3244 = vmatprep.subr.bf16.mxu0 %v4166_v46 }
 0x5e9   : > { %v2711_v34 = vpop.f32.mrf.mxu0 }
 0x5eb   : > { %v4032_v38 = vpop.f32.mrf.mxu0 }
 0x5ec   : > { %v4169_v38 = vld [vmem:[%s5318_s10 + $0x54] ss:$8 sps:$4 sm:$0xff]  }
 0x5ed   : > { %v2714_v40 = vpop.f32.mrf.mxu0  ;;  %v2761_v55 = vpop.f32.mrf.mxu1 }
 0x5ee   : > { %v3068_v45 = vadd.f32 %v2761_v55, %v2711_v34  ;;  %v4164_v34 = vld [vmem:[%s5318_s10 + $0x60] ss:$8 sps:$4 sm:$0xff]  }
 0x5ef   : > { %v4033_v4 = vpop.f32.mrf.mxu0  ;;  %v4038_v35 = vpop.f32.mrf.mxu1  ;;  %3245 = vmatpush1.bf16.msra.mxu0 %v4164_v34  ;;  %v4170_v55 = vld [vmem:[%s5318_s10 + $0x40] ss:$8 sps:$4 sm:$0xff]  }
 0x5f0   : > { %3246 = vmatprep.subr.bf16.mxu0 %v4169_v38  ;;  %v4172_v4 = vld [vmem:[%s5318_s10 + $0x44] ss:$8 sps:$4 sm:$0xff]   ;;  %v4175_v35 = vld [vmem:[%s5318_s10 + $0x34] ss:$8 sps:$4 sm:$0xff]  }
 0x5f1   : > { %v2764_v39 = vpop.f32.mrf.mxu1  ;;  %v2811_v41 = vpop.f32.mrf.mxu0 }
 0x5f2   : > { %v3069_v11 = vadd.f32 %v3068_v45, %v2811_v41  ;;  %v3075_v58 = vadd.f32 %v2764_v39, %v2714_v40  ;;  %v4167_v40 = vld [vmem:[%s5318_s10 + $0x50] ss:$8 sps:$4 sm:$0xff]   ;;  %v4374_v41 = vmov 0  }
 0x5f3   : > { %v4039_v62 = vpop.f32.mrf.mxu1  ;;  %v4044_v12 = vpop.f32.mrf.mxu0  ;;  %3247 = vmatpush1.bf16.msra.mxu0 %v4167_v40  ;;  %v4173_v39 = vld [vmem:[%s5318_s10 + $0x30] ss:$8 sps:$4 sm:$0xff]   ;;  %3274 = vmatprep.mubr.bf16.mxu0 %v4374_v41 }
 0x5f4   : > { %3248 = vmatprep.subr.bf16.mxu0 %v4172_v4  ;;  %v4178_v62 = vld [vmem:[%s5318_s10 + $0x24] ss:$8 sps:$4 sm:$0xff]   ;;  %v4176_v12 = vld [vmem:[%s5318_s10 + $0x20] ss:$8 sps:$4 sm:$0xff]   ;;  %v4187_v45 = vld [vmem:[%s5320_s12 + $0x70] sm:$0xff]  }
 0x5f5   : > { %v2814_v14 = vpop.f32.mrf.mxu0  ;;  %v2861_v44 = vpop.f32.mrf.mxu1 }
 0x5f6   : > { %v3070_v63 = vadd.f32 %v3069_v11, %v2861_v44  ;;  %v3076_v5 = vadd.f32 %v3075_v58, %v2814_v14  ;;  %v4181_v14 = vld [vmem:[%s5318_s10 + $0x14] ss:$8 sps:$4 sm:$0xff]   ;;  %v4179_v44 = vld [vmem:[%s5318_s10 + $0x10] ss:$8 sps:$4 sm:$0xff]   ;;  %v4190_v11 = vld [vmem:[%s5320_s12 + $0x28] sm:$0xff]  }
 0x5f7   : > { %v4045_v48 = vpop.f32.mrf.mxu0  ;;  %v4050_v50 = vpop.f32.mrf.mxu1  ;;  %3249 = vmatpush1.bf16.msra.mxu0 %v4170_v55  ;;  %v4193_v58 = vld [vmem:[%s5320_s12 + $0x58] sm:$0xff]  }
 0x5f8   : > { %3250 = vmatprep.subr.bf16.mxu0 %v4175_v35  ;;  %v4184_v48 = vld [vmem:[%s5318_s10 + $0x4] ss:$8 sps:$4 sm:$0xff]   ;;  %v4182_v50 = vld [vmem:[%s5318_s10] ss:$8 sps:$4 sm:$0xff]  }
 0x5f9   : > { %v2864_v37 = vpop.f32.mrf.mxu1  ;;  %v2911_v42 = vpop.f32.mrf.mxu0 }
 0x5fa   : > { %v3071_v24 = vadd.f32 %v3070_v63, %v2911_v42  ;;  %v3077_v10 = vadd.f32 %v3076_v5, %v2864_v37  ;;  %v4185_v37 = vld [vmem:[%s5320_s12 + $0x78] sm:$0xff]  }
 0x5fb   : > { %v4051_v49 = vpop.f32.mrf.mxu1  ;;  %v4056_v51 = vpop.f32.mrf.mxu0  ;;  %3251 = vmatpush1.bf16.msra.mxu0 %v4173_v39  ;;  %v4186_v42 = vld [vmem:[%s5320_s12 + $0x38] sm:$0xff]   ;;  %3766 = vmatprep.subr.bf16.mxu1 %v4185_v37 }
 0x5fc   : > { %3252 = vmatprep.subr.bf16.mxu0 %v4178_v62  ;;  %3767 = vmatpush3.bf16.msra.mxu1 %v4186_v42  ;;  %v4188_v49 = vld [vmem:[%s5320_s12 + $0x30] sm:$0xff]   ;;  %v4189_v51 = vld [vmem:[%s5320_s12 + $0x68] sm:$0xff]   ;;  %v4194_v63 = vld [vmem:[%s5320_s12 + $0x18] sm:$0xff]  }
 0x5fd   : > { %v2914_v52 = vpop.f32.mrf.mxu0  ;;  %v2961_v57 = vpop.f32.mrf.mxu1  ;;  %3768 = vmatprep.subr.bf16.mxu1 %v4187_v45 }
 0x5fe   : > { %v3072_v16 = vadd.f32 %v3071_v24, %v2961_v57  ;;  %v3078_v25 = vadd.f32 %v3077_v10, %v2914_v52  ;;  %v4191_v52 = vld [vmem:[%s5320_s12 + $0x60] sm:$0xff]  }
 0x5ff   : > { %v4057_v2 = vpop.f32.mrf.mxu0  ;;  %v4062_v60 = vpop.f32.mrf.mxu1  ;;  %3253 = vmatpush1.bf16.msra.mxu0 %v4176_v12  ;;  %v4192_v57 = vld [vmem:[%s5320_s12 + $0x20] sm:$0xff]  }
 0x600   : > { %3254 = vmatprep.subr.bf16.mxu0 %v4181_v14  ;;  %3769 = vmatpush3.bf16.msra.mxu1 %v4188_v49  ;;  %v3662_v12 = vld [vmem:[%s5321_s13] ss:$0 sm:$0xff] }
 0x601   : > { %v2964_v6 = vpop.f32.mrf.mxu1  ;;  %v3011_v7 = vpop.f32.mrf.mxu0  ;;  %3770 = vmatprep.subr.bf16.mxu1 %v4189_v51 }
 0x602   : > { %v3073_v32 = vadd.f32 %v3072_v16, %v3011_v7  ;;  %v3079_v22 = vadd.f32 %v3078_v25, %v2964_v6 }
 0x603   : > { %v4063_v19 = vpop.f32.mrf.mxu1  ;;  %v4068_v20 = vpop.f32.mrf.mxu0  ;;  %3255 = vmatpush1.bf16.msra.mxu0 %v4179_v44 }
 0x604   : > { %3256 = vmatprep.subr.bf16.mxu0 %v4184_v48  ;;  %3771 = vmatpush3.bf16.msra.mxu1 %v4190_v11  ;;  %v3628_v19 = vld [vmem:[%s5316_s8] ss:$0 sm:$0xff] }
 0x605   : > { %v3014_v9 = vpop.f32.mrf.mxu0  ;;  %v3061_v54 = vpop.f32.mrf.mxu1  ;;  %3772 = vmatprep.subr.bf16.mxu1 %v4191_v52 }
 0x606   : > { %v3074_v23 = vadd.f32 %v3073_v32, %v3061_v54  ;;  %v3080_v36 = vadd.f32 %v3079_v22, %v3014_v9  ;;  %v3629_v9 = vld [vmem:[%s5317_s9] ss:$0 sm:$0xff] }
 0x607   : > { %v4069_v26 = vpop.f32.mrf.mxu0  ;;  %v4074_v33 = vpop.f32.mrf.mxu1  ;;  %3257 = vmatpush1.bf16.msra.mxu0 %v4182_v50 }
 0x608   : > { %v3082_v27 = vadd.f32 %v4273_v15, %v3074_v23  ;;  %3773 = vmatpush3.bf16.msra.mxu1 %v4192_v57  ;;  %v4195_v33 = vld [vmem:[%s5320_s12 + $0x50] sm:$0xff]   ;;  %v4198_v15 = vld [vmem:[%s5320_s12 + $0x8] sm:$0xff]  }
 0x609   : > { %v3064_v13 = vpop.f32.mrf.mxu1  ;;  %3774 = vmatprep.subr.bf16.mxu1 %v4193_v58 }
 0x60a   : > { %v3081_v47 = vadd.f32 %v3080_v36, %v3064_v13  ;;  %v5128_v28 = vadd.f32 %v3627_v59, %v3082_v27  ;;  %v4197_v36 = vld [vmem:[%s5320_s12 + $0x48] sm:$0xff]   ;;  %v4199_v27 = vld [vmem:[%s5320_s12 + $0x40] sm:$0xff]  }
 0x60b   : > { %v4075_v17 = vpop.f32.mrf.mxu1  ;;  %v4200_v13 = vld [vmem:[%s5320_s12] sm:$0xff]  }
 0x60c   : > { %v3083_v56 = vadd.f32 %v4274_v30, %v3081_v47  ;;  %3095 = vadd.xlane.f32.xlu0 %v5128_v28  ;;  %3775 = vmatpush3.bf16.msra.mxu1 %v4194_v63  ;;  %v3152_v47 = vlaneseq }
 0x60d   : > { %3776 = vmatprep.subr.bf16.mxu1 %v4195_v33 }
 0x60e   : > { %v5132_v0 = vadd.f32 %v3627_v59, %v3083_v56  ;;  %v4196_v59 = vld [vmem:[%s5320_s12 + $0x10] sm:$0xff]   ;;  %v3153_v17 = vshrl.u32 %v3152_v47, 7 }
 0x610   : > { %3097 = vadd.xlane.f32.xlu1 %v5132_v0  ;;  %3777 = vmatpush3.bf16.msra.mxu1 %v4196_v59  ;;  %v3158_v30 = vsub.s32 1, %v3153_v17  ;;  %v3154_v56 = vsub.s32 0, %v3153_v17 }
 0x611   : > { %3778 = vmatprep.subr.bf16.mxu1 %v4197_v36 }
 0x614   : > { %3779 = vmatpush3.bf16.msra.mxu1 %v4198_v15 }
 0x615   : > { %3780 = vmatprep.subr.bf16.mxu1 %v4199_v27 }
 0x618   : > { %3781 = vmatpush3.bf16.msra.mxu1 %v4200_v13 }
 0x695   : > { %v3096_v43 = vpop.xlane.xlu0 %3095 }
 0x696   : > { %v3099_v3 = vmul.f32 0.0078125, %v3096_v43  ;;  %v3159_v43 = vrot.slane %v3150_v61, %v3158_v30 }
 0x698   : > { %v5142_v8 = vsub.f32 %v5128_v28, %v3099_v3  ;;  %v3155_v3 = vrot.slane %v3150_v61, %v3154_v56 }
 0x699   : > { %v3098_v53 = vpop.xlane.xlu1 %3097 }
 0x69a   : > { %v3100_v29 = vmul.f32 0.0078125, %v3098_v53  ;;  %v3103_v18 = vmul.f32 %v5142_v8, %v5142_v8 }
 0x69c   : > { %v5147_v31 = vsub.f32 %v5132_v0, %v3100_v29  ;;  %3105 = vadd.xlane.f32.xlu0 %v3103_v18 }
 0x69e   : > { %v3104_v21 = vmul.f32 %v5147_v31, %v5147_v31 }
 0x6a0   : > { %3107 = vadd.xlane.f32.xlu1 %v3104_v21 }
 0x725   : > { %v3106_v2 = vpop.xlane.xlu0 %3105 }
 0x726   : > { %v3109_v60 = vmul.f32 0.0078125, %v3106_v2 }
 0x728   : > { %v3111_v5 = vadd.f32 1e-05, %v3109_v60 }
 0x729   : > { %v3108_v24 = vpop.xlane.xlu1 %3107 }
 0x72a   : > { %4269 = vrsqrt.f32 %v3111_v5  ;;  %v3110_v6 = vmul.f32 0.0078125, %v3108_v24 }
 0x72c   : > { %v3112_v7 = vadd.f32 1e-05, %v3110_v6 }
 0x72e   : > { %4271 = vrsqrt.f32 %v3112_v7 }
 0x737   : > { %v4270_v10 = vpop.eup %4269 }
 0x738   : > { %v3115_v16 = vmul.f32 %v4270_v10, %v5142_v8 }
 0x73a   : > { %v3123_v32 = vmul.f32 %v3628_v19, %v3115_v16 }
 0x73b   : > { %v4272_v20 = vpop.eup %4271 }
 0x73c   : > { %v3116_v25 = vmul.f32 %v4272_v20, %v5147_v31  ;;  %v3131_v22 = vadd.f32 %v3629_v9, %v3123_v32 }
 0x73e   : > { %v3124_v54 = vmul.f32 %v3628_v19, %v3116_v25 }
 0x740   : > { %v3132_v23 = vadd.f32 %v3629_v9, %v3124_v54 }
 0x742   : > { %v3133_v26 = vpack.c.bf16 %v3132_v23, %v3131_v22 }
 0x744   : > { %3275 = vmatmul.mubr.bf16.vlgmr.msra.gmra.mxu0 %v3133_v26 }
 0x804   : > { %v3276_v1 = vpop.f32.mrf.mxu0 }
 0x805   : > { %v3277_v31 = vadd.f32 %v3276_v1, %v3155_v3 }
 0x806   : > { %v3278_v8 = vpop.f32.mrf.mxu0 }
 0x807   : > { %v3279_v29 = vadd.f32 %v3278_v8, %v3159_v43  ;;  %v3285_v55 = vmax.f32 %v3277_v31, 0.0 }
 0x808   : > { %v3280_v53 = vpop.f32.mrf.mxu0 }
 0x809   : > { %v3281_v18 = vadd.f32 %v3280_v53, %v3155_v3  ;;  %v3286_v38 = vmax.f32 %v3279_v29, 0.0 }
 0x80a   : > { %v3282_v21 = vpop.f32.mrf.mxu0 }
 0x80b   : > { %v3283_v46 = vadd.f32 %v3282_v21, %v3159_v43  ;;  %v3287_v34 = vmax.f32 %v3281_v18, 0.0 }
 0x80d   : > { %v3288_v40 = vmax.f32 %v3283_v46, 0.0  ;;  %v3289_v35 = vpack.c.bf16 %v3287_v34, %v3285_v55 }
 0x80f   : > { %v3290_v4 = vpack.c.bf16 %v3288_v40, %v3286_v38 }
 0x811   : > { %3451 = vmatprep.mubr.bf16.mxu1 %v3290_v4 }
 0x812   : > { %3452 = vmatmul.mubr.bf16.vlgmr.msra.gmra.mxu1 %v3289_v35 }
 0x8d2   : > { %v3782_v39 = vpop.f32.mrf.mxu1 }
 0x8d4   : > { %v3783_v41 = vpop.f32.mrf.mxu1 }
 0x8d5   : > { %v3784_v62 = vadd.f32 %v3783_v41, %v3782_v39 }
 0x8d6   : > { %v3785_v14 = vpop.f32.mrf.mxu1 }
 0x8d7   : > { %v3460_v44 = vadd.f32 %v3784_v62, %v5128_v28 }
 0x8d8   : > { %v3786_v48 = vpop.f32.mrf.mxu1 }
 0x8d9   : > { %v3469_v50 = vadd.f32 %v3662_v12, %v3460_v44  ;;  %v3787_v37 = vadd.f32 %v3786_v48, %v3785_v14 }
 0x8db   : > { %3471 = vst [vmem:[%s485_s27] sm:$0xff] %v3469_v50  ;;  %v3461_v42 = vadd.f32 %v3787_v37, %v5132_v0 }
 0x8dd   : > { %v3470_v28 = vadd.f32 %v3662_v12, %v3461_v42 }
 0x8df   : > { %3472 = vst [vmem:[%s485_s27 + $0x8] sm:$0xff] %v3470_v28 }
 0x8e0   : > { %4316 = shalt.err (!%p4313_p10)
}
 0x8e1   : > { %s4317_s19 = scalar_lea.hbm %s5265_s23, 256  ;;  %s4321_s21 = scalar_lea.hbm %s5347_s28, 512 }
 0x8e2   : > { %p4318_p0 = scmp.ne.s32.totalorder %s5265_s23, %s4317_s19  ;;  %p4322_p1 = scmp.lt.s32.totalorder %s5265_s23, %s5347_s28 }
 0x8e3   : > { %p4323_p3 = scmp.lt.s32.totalorder %s4321_s21, %s4317_s19 }
 0x8e4   : > { %p4319_p2 = pnand %p4318_p0, %p5348_p12 }
 0x8e5   : > { %p4324_p6 = por %p4323_p3, %p4322_p1 }
 0x8e6   : > { %p4320_p9 = pneg %p4319_p2 }
 0x8e8   : > { %p4325_p11 = pnand %p4324_p6, %p4320_p9 }
 0x8ea   : > { %4328 = shalt.err (!%p4325_p11)
}
 0x8eb   : > { %s4376_s14 = smov 128   ;;  %s4377_s29 = smov 8  }
 0x8ec   : > { %4078 = dma.vmem_to_hbm [thread:$0]  (%p5348_p12), %s5259_s18, 256, %s5265_s23, %s3474_s20, %s4376_s14, %s4376_s14, %s4377_s29  }
 0x8ed PF: > { %s5349_s15 = sld [smem:[#allocation8_spill]]  ;;  %p5352_p4 = scmp.ge.s32.totalorder %s4367_s16, 2 }
 0x8ee   : > { %s5350_s27 = sld [smem:[#allocation13_spill]] }
 0x8f3   : > { %s3502_s22 = sand.u32 1, %s5349_s15  }
 0x8f4   : > { %p5351_p13 = scmp.ne.s32.totalorder %s5350_s27, 0  ;;  %s3503_s19 = scalar_lea.sflag [#allocation4], %s3502_s22 }
 0x8f6   : > { %p4085_p5 = pnand %p5352_p4, %p5351_p13 }
 0x8f8   : > { %p4086_p7 = pneg %p4085_p5 }
 0x8fa   : > { %4350 = dma.done.wait (%p4086_p7), %s3503_s19, 256  }
 0x8fb   : > { %4352 = vsyncadd (%p4086_p7), %s3503_s19, 4294967040  ;;  %s5353_s16 = sld [smem:[#allocation10_spill]]  ;;  %s5356_s29 = smov %s4359_s30 }
 0x8fc   : > { %s5354_s21 = sld [smem:[#allocation9_spill]] }
 0x8fd   : > { %s5355_s15 = sld [smem:[#allocation11_spill]] }
 0x901   : > { %p27_p8 = scmp.ge.s32.totalorder %s5353_s16, 4  }
 0x902   : > { %s5357_s30 = smov %s5354_s21 }
 0x903   :  { %29 = sbr.rel (!%p27_p8) target bundleno = 7 (0x7), region = 121 }
 0x908   :  { %3508 = vsyncpa [#allocation3], 1 }
 0x909   :  { %3510 = vsyncpa [#allocation3 + $0x1], 1 }
 0x90a   :  { %3511 = vsyncpa [#allocation4], 1 }
 0x90b   :  { %3513 = vsyncpa [#allocation4 + $0x1], 1 }

// kernel: transformer_forward.2
= control target key start
LH: loop header
LB: loop body
LE: loop exit
PB: predicated region body
PF: predicated region fallthrough
CT: control target
= control target key end

     0   :  { %s4266_s29 = smov 0   ;;  %s4987_s0 = inlined_call_operand.vmem [shape: f32[2,16,128], index: 0, kind: input, shape index: {}, may-alias: {0,14}]   ;;  %s4988_s1 = inlined_call_operand.vmem [shape: f32[1,128], index: 1, kind: input, shape index: {}]   ;;  %s4989_s2 = inlined_call_operand.vmem [shape: f32[1,128], index: 2, kind: input, shape index: {}]   ;;  %s4990_s3 = inlined_call_operand.vmem [shape: bf16[8,16,128], index: 3, kind: input, shape index: {}]   ;;  %s4991_s4 = inlined_call_operand.vmem [shape: bf16[8,16,128], index: 4, kind: input, shape index: {}]   ;;  %s4992_s5 = inlined_call_operand.vmem [shape: bf16[8,16,128], index: 5, kind: input, shape index: {}]   ;;  %s4993_s6 = inlined_call_operand.vmem [shape: bf16[8,16,128], index: 6, kind: input, shape index: {}]   ;;  %s4994_s7 = inlined_call_operand.vmem [shape: f32[1,128], index: 7, kind: input, shape index: {}]   ;;  %s4995_s8 = inlined_call_operand.vmem [shape: f32[1,128], index: 8, kind: input, shape index: {}]   ;;  %s4996_s9 = inlined_call_operand.vmem [shape: f32[1,128], index: 9, kind: input, shape index: {}]   ;;  %s4997_s10 = inlined_call_operand.vmem [shape: bf16[128,256], index: 10, kind: input, shape index: {}]   ;;  %s4998_s11 = inlined_call_operand.vmem [shape: f32[1,256], index: 11, kind: input, shape index: {}]   ;;  %s4999_s12 = inlined_call_operand.vmem [shape: bf16[256,128], index: 12, kind: input, shape index: {}]   ;;  %s5000_s13 = inlined_call_operand.vmem [shape: f32[1,128], index: 13, kind: input, shape index: {}]   ;;  %s5001_s14 = inlined_call_operand.vmem [shape: f32[2,16,128], index: 14, kind: output, shape index: {}, may-alias: {0,14}]  }
   0x1 LB: > { %s3510_s30 = sadd.s32 4294967295, %s4186_s29   ;;  %p3514_p0 = scmp.ge.s32.totalorder %s4186_s29, 1  ;;  %s4186_s29 = sphi %s4266_s29, %s24_s29  }
   0x2   : > { %p412_p1 = scmp.lt.s32.totalorder %s4186_s29, 3 }
   0x4   : > { %p413_p2 = pnand %p3514_p0, %p412_p1 }
   0x5   : > { %p458_p3 = scmp.lt.s32.totalorder (!%p413_p2), %s3510_s30, 1 }
   0x6   : > { %416 = sbr.rel (%p413_p2) target bundleno = 2228 (0x8b4), region = 76 }
   0xb   : > { %s5003_s30 = smov (!%p458_p3, %s3510_s30), 1  ;;  %v4034_v10 = vld [vmem:[%s4990_s3] sm:$0xff]   ;;  %v4035_v11 = vld [vmem:[%s4990_s3 + $0x8] sm:$0xff]   ;;  %v4188_v12 = vmov 0.0   ;;  %vm4189_vm0 = vmmov 0   ;;  %v4036_v29 = vld [vmem:[%s4990_s3 + $0x10] sm:$0xff]  }
   0xc   : > { %s3615_s15 = sshll.u32 %s5003_s30, 4  ;;  %3735 = vmatprep.subr.bf16.mxu0 %v4188_v12  ;;  %3741 = vmatprep.subr.bf16.mxu1 %v4188_v12  ;;  %v3519_v21 = vld [vmem:[%s4988_s1] ss:$0 sm:$0xff]  ;;  %v4037_v30 = vld [vmem:[%s4990_s3 + $0x18] sm:$0xff]   ;;  %v4039_v33 = vld [vmem:[%s4990_s3 + $0x28] sm:$0xff]   ;;  %vm1705_vm1 = vcmask 130048  }
   0xd   : > { %s4282_s18 = scalar_lea.vmem %s4987_s0, %s3615_s15  ;;  %3736 = vmatpush3.bf16.xpose.msra.mxu0 %v4034_v10  ;;  %3742 = vmatpush3.bf16.xpose.msra.mxu1 %v4035_v11  ;;  %v3520_v25 = vld [vmem:[%s4989_s2] ss:$0 sm:$0xff]  ;;  %v4040_v34 = vld [vmem:[%s4990_s3 + $0x30] sm:$0xff]   ;;  %v4041_v35 = vld [vmem:[%s4990_s3 + $0x38] sm:$0xff]   ;;  %s467_s25 = scalar_lea.vmem %s5001_s14, %s3615_s15 }
   0xe   : > { %v469_v0 = vld [vmem:[%s4282_s18] sm:$0xff]  ;;  %v470_v1 = vld [vmem:[%s4282_s18 + $0x8] sm:$0xff]  ;;  %3747 = vmatprep.subr.bf16.mxu0 %v4188_v12  ;;  %3753 = vmatprep.subr.bf16.mxu1 %v4188_v12  ;;  %v4044_v38 = vld [vmem:[%s4991_s4 + $0x10] sm:$0xff]  }
   0xf   : > { %473 = vadd.xlane.f32.xlu0 %v469_v0  ;;  %3737 = vmatprep.mubr.msk.bf16.mxu0 %vm4189_vm0, %v4188_v12  ;;  %v4038_v32 = vld [vmem:[%s4990_s3 + $0x20] sm:$0xff]   ;;  %v4043_v37 = vld [vmem:[%s4991_s4 + $0x8] sm:$0xff]   ;;  %v4045_v39 = vld [vmem:[%s4991_s4 + $0x18] sm:$0xff]  }
  0x10   : > { %3743 = vmatprep.mubr.msk.bf16.mxu1 %vm4189_vm0, %v4188_v12  ;;  %v4042_v36 = vld [vmem:[%s4991_s4] sm:$0xff]   ;;  %v4047_v41 = vld [vmem:[%s4991_s4 + $0x28] sm:$0xff]   ;;  %v4048_v42 = vld [vmem:[%s4991_s4 + $0x30] sm:$0xff]  }
  0x11   : > { %v4046_v40 = vld [vmem:[%s4991_s4 + $0x20] sm:$0xff]   ;;  %v4049_v43 = vld [vmem:[%s4991_s4 + $0x38] sm:$0xff]   ;;  %v4051_v45 = vld [vmem:[%s4992_s5 + $0x8] sm:$0xff]  }
  0x12   : > { %v4050_v44 = vld [vmem:[%s4992_s5] sm:$0xff]   ;;  %v4052_v46 = vld [vmem:[%s4992_s5 + $0x10] sm:$0xff]   ;;  %v4053_v47 = vld [vmem:[%s4992_s5 + $0x18] sm:$0xff]  }
  0x13   : > { %475 = vadd.xlane.f32.xlu0 %v470_v1  ;;  %v4054_v48 = vld [vmem:[%s4992_s5 + $0x20] sm:$0xff]   ;;  %v4055_v49 = vld [vmem:[%s4992_s5 + $0x28] sm:$0xff]   ;;  %v4056_v50 = vld [vmem:[%s4992_s5 + $0x30] sm:$0xff]  }
  0x14   : > { %v4057_v51 = vld [vmem:[%s4992_s5 + $0x38] sm:$0xff]  }
  0x98   : > { %v474_v2 = vpop.xlane.xlu0 %473 }
  0x99   : > { %v478_v3 = vmul.f32 0.0078125, %v474_v2 }
  0x9b   : > { %v480_v4 = vsub.f32 %v469_v0, %v478_v3 }
  0x9c   : > { %v476_v5 = vpop.xlane.xlu0 %475 }
  0x9d   : > { %v479_v6 = vmul.f32 0.0078125, %v476_v5  ;;  %v482_v7 = vmul.f32 %v480_v4, %v480_v4 }
  0x9f   : > { %v481_v8 = vsub.f32 %v470_v1, %v479_v6  ;;  %484 = vadd.xlane.f32.xlu1 %v482_v7 }
  0xa1   : > { %v483_v9 = vmul.f32 %v481_v8, %v481_v8 }
  0xa3   : > { %486 = vadd.xlane.f32.xlu1 %v483_v9 }
 0x128   : > { %v485_v13 = vpop.xlane.xlu1 %484 }
 0x129   : > { %v488_v14 = vmul.f32 0.0078125, %v485_v13 }
 0x12b   : > { %v490_v15 = vadd.f32 1e-05, %v488_v14 }
 0x12c   : > { %v487_v16 = vpop.xlane.xlu1 %486 }
 0x12d   : > { %4106 = vrsqrt.f32 %v490_v15  ;;  %v489_v17 = vmul.f32 0.0078125, %v487_v16 }
 0x12f   : > { %v491_v18 = vadd.f32 1e-05, %v489_v17 }
 0x131   : > { %4108 = vrsqrt.f32 %v491_v18 }
 0x13a   : > { %v4107_v19 = vpop.eup %4106 }
 0x13b   : > { %v494_v20 = vmul.f32 %v4107_v19, %v480_v4 }
 0x13d   : > { %v502_v23 = vmul.f32 %v3519_v21, %v494_v20 }
 0x13e   : > { %v4109_v22 = vpop.eup %4108 }
 0x13f   : > { %v495_v24 = vmul.f32 %v4109_v22, %v481_v8  ;;  %v510_v27 = vadd.f32 %v3520_v25, %v502_v23 }
 0x141   : > { %v503_v26 = vmul.f32 %v3519_v21, %v495_v24 }
 0x143   : > { %v511_v28 = vadd.f32 %v3520_v25, %v503_v26 }
 0x145   : > { %v4312_v31 = vpack.c.bf16 %v511_v28, %v510_v27 }
 0x147   : > { %3738 = vmatmul.mubr.bf16.vlgmr.msra.gmra.mxu0 %v4312_v31  ;;  %3744 = vmatmul.mubr.bf16.vlgmr.msra.gmra.mxu1 %v4312_v31 }
 0x148   : > { %3748 = vmatpush3.bf16.xpose.msra.mxu0 %v4036_v29  ;;  %3754 = vmatpush3.bf16.xpose.msra.mxu1 %v4037_v30 }
 0x149   : > { %3749 = vmatprep.mubr.msk.bf16.mxu0 %vm4189_vm0, %v4188_v12  ;;  %3755 = vmatprep.mubr.msk.bf16.mxu1 %vm4189_vm0, %v4188_v12 }
 0x14a   : > { %3759 = vmatprep.subr.bf16.mxu0 %v4188_v12  ;;  %3765 = vmatprep.subr.bf16.mxu1 %v4188_v12 }
 0x14f   : > { %3750 = vmatmul.mubr.bf16.vlgmr.msra.gmra.mxu0 %v4312_v31  ;;  %3756 = vmatmul.mubr.bf16.vlgmr.msra.gmra.mxu1 %v4312_v31 }
 0x150   : > { %3760 = vmatpush3.bf16.xpose.msra.mxu0 %v4038_v32  ;;  %3766 = vmatpush3.bf16.xpose.msra.mxu1 %v4039_v33 }
 0x151   : > { %3761 = vmatprep.mubr.msk.bf16.mxu0 %vm4189_vm0, %v4188_v12  ;;  %3767 = vmatprep.mubr.msk.bf16.mxu1 %vm4189_vm0, %v4188_v12 }
 0x152   : > { %3771 = vmatprep.subr.bf16.mxu0 %v4188_v12  ;;  %3777 = vmatprep.subr.bf16.mxu1 %v4188_v12 }
 0x157   : > { %3762 = vmatmul.mubr.bf16.vlgmr.msra.gmra.mxu0 %v4312_v31  ;;  %3768 = vmatmul.mubr.bf16.vlgmr.msra.gmra.mxu1 %v4312_v31 }
 0x158   : > { %3772 = vmatpush3.bf16.xpose.msra.mxu0 %v4040_v34  ;;  %3778 = vmatpush3.bf16.xpose.msra.mxu1 %v4041_v35 }
 0x159   : > { %3773 = vmatprep.mubr.msk.bf16.mxu0 %vm4189_vm0, %v4188_v12  ;;  %3779 = vmatprep.mubr.msk.bf16.mxu1 %vm4189_vm0, %v4188_v12 }
 0x15a   : > { %3783 = vmatprep.subr.bf16.mxu0 %v4188_v12  ;;  %3789 = vmatprep.subr.bf16.mxu1 %v4188_v12 }
 0x15f   : > { %3774 = vmatmul.mubr.bf16.vlgmr.msra.gmra.mxu0 %v4312_v31  ;;  %3780 = vmatmul.mubr.bf16.vlgmr.msra.gmra.mxu1 %v4312_v31 }
 0x160   : > { %3784 = vmatpush3.bf16.xpose.msra.mxu0 %v4042_v36  ;;  %3790 = vmatpush3.bf16.xpose.msra.mxu1 %v4043_v37 }
 0x161   : > { %3785 = vmatprep.mubr.msk.bf16.mxu0 %vm4189_vm0, %v4188_v12  ;;  %3791 = vmatprep.mubr.msk.bf16.mxu1 %vm4189_vm0, %v4188_v12 }
 0x162   : > { %3795 = vmatprep.subr.bf16.mxu0 %v4188_v12  ;;  %3801 = vmatprep.subr.bf16.mxu1 %v4188_v12 }
 0x167   : > { %3786 = vmatmul.mubr.bf16.vlgmr.msra.gmra.mxu0 %v4312_v31  ;;  %3792 = vmatmul.mubr.bf16.vlgmr.msra.gmra.mxu1 %v4312_v31 }
 0x168   : > { %3796 = vmatpush3.bf16.xpose.msra.mxu0 %v4044_v38  ;;  %3802 = vmatpush3.bf16.xpose.msra.mxu1 %v4045_v39 }
 0x169   : > { %3797 = vmatprep.mubr.msk.bf16.mxu0 %vm4189_vm0, %v4188_v12  ;;  %3803 = vmatprep.mubr.msk.bf16.mxu1 %vm4189_vm0, %v4188_v12 }
 0x16a   : > { %3807 = vmatprep.subr.bf16.mxu0 %v4188_v12  ;;  %3813 = vmatprep.subr.bf16.mxu1 %v4188_v12 }
 0x16f   : > { %3798 = vmatmul.mubr.bf16.vlgmr.msra.gmra.mxu0 %v4312_v31  ;;  %3804 = vmatmul.mubr.bf16.vlgmr.msra.gmra.mxu1 %v4312_v31 }
 0x170   : > { %3808 = vmatpush3.bf16.xpose.msra.mxu0 %v4046_v40  ;;  %3814 = vmatpush3.bf16.xpose.msra.mxu1 %v4047_v41 }
 0x171   : > { %3809 = vmatprep.mubr.msk.bf16.mxu0 %vm4189_vm0, %v4188_v12  ;;  %3815 = vmatprep.mubr.msk.bf16.mxu1 %vm4189_vm0, %v4188_v12 }
 0x172   : > { %3819 = vmatprep.subr.bf16.mxu0 %v4188_v12  ;;  %3825 = vmatprep.subr.bf16.mxu1 %v4188_v12 }
 0x177   : > { %3810 = vmatmul.mubr.bf16.vlgmr.msra.gmra.mxu0 %v4312_v31  ;;  %3816 = vmatmul.mubr.bf16.vlgmr.msra.gmra.mxu1 %v4312_v31 }
 0x178   : > { %3820 = vmatpush3.bf16.xpose.msra.mxu0 %v4048_v42  ;;  %3826 = vmatpush3.bf16.xpose.msra.mxu1 %v4049_v43 }
 0x179   : > { %3821 = vmatprep.mubr.msk.bf16.mxu0 %vm4189_vm0, %v4188_v12  ;;  %3827 = vmatprep.mubr.msk.bf16.mxu1 %vm4189_vm0, %v4188_v12 }
 0x17a   : > { %3831 = vmatprep.subr.bf16.mxu0 %v4188_v12  ;;  %3837 = vmatprep.subr.bf16.mxu1 %v4188_v12 }
 0x17f   : > { %3822 = vmatmul.mubr.bf16.vlgmr.msra.gmra.mxu0 %v4312_v31  ;;  %3828 = vmatmul.mubr.bf16.vlgmr.msra.gmra.mxu1 %v4312_v31 }
 0x180   : > { %3832 = vmatpush3.bf16.xpose.msra.mxu0 %v4050_v44  ;;  %3838 = vmatpush3.bf16.xpose.msra.mxu1 %v4051_v45 }
 0x181   : > { %3833 = vmatprep.mubr.msk.bf16.mxu0 %vm4189_vm0, %v4188_v12  ;;  %3839 = vmatprep.mubr.msk.bf16.mxu1 %vm4189_vm0, %v4188_v12 }
 0x182   : > { %3843 = vmatprep.subr.bf16.mxu0 %v4188_v12  ;;  %3849 = vmatprep.subr.bf16.mxu1 %v4188_v12 }
 0x187   : > { %3834 = vmatmul.mubr.bf16.vlgmr.msra.gmra.mxu0 %v4312_v31  ;;  %3840 = vmatmul.mubr.bf16.vlgmr.msra.gmra.mxu1 %v4312_v31 }
 0x188   : > { %3844 = vmatpush3.bf16.xpose.msra.mxu0 %v4052_v46  ;;  %3850 = vmatpush3.bf16.xpose.msra.mxu1 %v4053_v47 }
 0x189   : > { %3845 = vmatprep.mubr.msk.bf16.mxu0 %vm4189_vm0, %v4188_v12  ;;  %3851 = vmatprep.mubr.msk.bf16.mxu1 %vm4189_vm0, %v4188_v12 }
 0x18a   : > { %3855 = vmatprep.subr.bf16.mxu0 %v4188_v12  ;;  %3861 = vmatprep.subr.bf16.mxu1 %v4188_v12 }
 0x18f   : > { %3846 = vmatmul.mubr.bf16.vlgmr.msra.gmra.mxu0 %v4312_v31  ;;  %3852 = vmatmul.mubr.bf16.vlgmr.msra.gmra.mxu1 %v4312_v31 }
 0x190   : > { %3856 = vmatpush3.bf16.xpose.msra.mxu0 %v4054_v48  ;;  %3862 = vmatpush3.bf16.xpose.msra.mxu1 %v4055_v49 }
 0x191   : > { %3857 = vmatprep.mubr.msk.bf16.mxu0 %vm4189_vm0, %v4188_v12  ;;  %3863 = vmatprep.mubr.msk.bf16.mxu1 %vm4189_vm0, %v4188_v12 }
 0x192   : > { %3867 = vmatprep.subr.bf16.mxu0 %v4188_v12  ;;  %3873 = vmatprep.subr.bf16.mxu1 %v4188_v12 }
 0x197   : > { %3858 = vmatmul.mubr.bf16.vlgmr.msra.gmra.mxu0 %v4312_v31  ;;  %3864 = vmatmul.mubr.bf16.vlgmr.msra.gmra.mxu1 %v4312_v31 }
 0x198   : > { %3868 = vmatpush3.bf16.xpose.msra.mxu0 %v4056_v50  ;;  %3874 = vmatpush3.bf16.xpose.msra.mxu1 %v4057_v51 }
 0x199   : > { %3869 = vmatprep.mubr.msk.bf16.mxu0 %vm4189_vm0, %v4188_v12  ;;  %3875 = vmatprep.mubr.msk.bf16.mxu1 %vm4189_vm0, %v4188_v12 }
 0x19a   : > { %3879 = vmatprep.subr.bf16.mxu0 %v4188_v12  ;;  %3885 = vmatprep.subr.bf16.mxu1 %v4188_v12 }
 0x19f   : > { %3870 = vmatmul.mubr.bf16.vlgmr.msra.gmra.mxu0 %v4312_v31  ;;  %3876 = vmatmul.mubr.bf16.vlgmr.msra.gmra.mxu1 %v4312_v31 }
 0x1a0   : > { %3881 = vmatprep.mubr.msk.bf16.mxu0 %vm4189_vm0, %v4188_v12  ;;  %3887 = vmatprep.mubr.msk.bf16.mxu1 %vm4189_vm0, %v4188_v12 }
 0x207   : > { %v4468_v52 = vpop.f32.mrf.mxu0  ;;  %v4470_v53 = vpop.f32.mrf.mxu1 }
 0x209   : > { %v3739_v54 = vpop.f32.mrf.mxu0  ;;  %v3745_v55 = vpop.f32.mrf.mxu1 }
 0x20b   : > { %v572_v56 = vpop.f32.mrf.mxu0  ;;  %v619_v57 = vpop.f32.mrf.mxu1 }
 0x20c   : > { %v1689_v39 = vpack.c.bf16 %v572_v56, %v4468_v52  ;;  %v1690_v40 = vpack.c.bf16 %v619_v57, %v4470_v53 }
 0x20d   : > { %v3740_v58 = vpop.f32.mrf.mxu0  ;;  %v3746_v59 = vpop.f32.mrf.mxu1 }
 0x20f   : > { %v4472_v60 = vpop.f32.mrf.mxu0  ;;  %v4474_v61 = vpop.f32.mrf.mxu1 }
 0x211   : > { %v3751_v62 = vpop.f32.mrf.mxu0  ;;  %v3757_v63 = vpop.f32.mrf.mxu1 }
 0x213   : > { %v4476_v0 = vpop.f32.mrf.mxu0  ;;  %v4478_v1 = vpop.f32.mrf.mxu1 }
 0x214   : > { %v1691_v53 = vpack.c.bf16 %v4476_v0, %v4472_v60  ;;  %v1692_v54 = vpack.c.bf16 %v4478_v1, %v4474_v61 }
 0x215   : > { %v3752_v2 = vpop.f32.mrf.mxu0  ;;  %v3758_v3 = vpop.f32.mrf.mxu1 }
 0x217   : > { %v4480_v4 = vpop.f32.mrf.mxu0  ;;  %v4482_v5 = vpop.f32.mrf.mxu1 }
 0x219   : > { %v3763_v6 = vpop.f32.mrf.mxu0  ;;  %v3769_v7 = vpop.f32.mrf.mxu1 }
 0x21b   : > { %v4484_v8 = vpop.f32.mrf.mxu0  ;;  %v4486_v9 = vpop.f32.mrf.mxu1 }
 0x21c   : > { %v1693_v3 = vpack.c.bf16 %v4484_v8, %v4480_v4  ;;  %v1694_v6 = vpack.c.bf16 %v4486_v9, %v4482_v5 }
 0x21d   : > { %v3764_v10 = vpop.f32.mrf.mxu0  ;;  %v3770_v11 = vpop.f32.mrf.mxu1 }
 0x21f   : > { %v4488_v13 = vpop.f32.mrf.mxu0  ;;  %v4490_v14 = vpop.f32.mrf.mxu1 }
 0x221   : > { %v3775_v15 = vpop.f32.mrf.mxu0  ;;  %v3781_v16 = vpop.f32.mrf.mxu1 }
 0x223   : > { %v4492_v17 = vpop.f32.mrf.mxu0  ;;  %v4494_v18 = vpop.f32.mrf.mxu1 }
 0x225   : > { %v3776_v19 = vpop.f32.mrf.mxu0  ;;  %v3782_v20 = vpop.f32.mrf.mxu1 }
 0x227   : > { %v961_v21 = vpop.f32.mrf.mxu0  ;;  %v1008_v22 = vpop.f32.mrf.mxu1 }
 0x229   : > { %v3787_v23 = vpop.f32.mrf.mxu0  ;;  %v3793_v24 = vpop.f32.mrf.mxu1 }
 0x22a   : > { %v1696_v23 = vpack.c.bf16 %v4494_v18, %v4490_v14 }
 0x22b   : > { %v964_v25 = vpop.f32.mrf.mxu0  ;;  %v1011_v26 = vpop.f32.mrf.mxu1 }
 0x22c   : > { %v1697_v27 = vpack.c.bf16 %v964_v25, %v961_v21  ;;  %v1698_v28 = vpack.c.bf16 %v1011_v26, %v1008_v22  ;;  %v1695_v22 = vpack.c.bf16 %v4492_v17, %v4488_v13 }
 0x22d   : > { %v3788_v29 = vpop.f32.mrf.mxu0  ;;  %v3794_v30 = vpop.f32.mrf.mxu1 }
 0x22e   : > { %v1710_v31 = vsel %vm1705_vm1, %v1697_v27, 0  ;;  %v1757_v32 = vsel %vm1705_vm1, %v1698_v28, 0 }
 0x22f   : > { %v1055_v33 = vpop.f32.mrf.mxu0  ;;  %v1102_v34 = vpop.f32.mrf.mxu1  ;;  %3880 = vmatpush3.bf16.xpose.msra.mxu0 %v1710_v31  ;;  %3886 = vmatpush3.bf16.xpose.msra.mxu1 %v1757_v32 }
 0x230   : > { %3891 = vmatprep.subr.bf16.mxu0 %v4188_v12  ;;  %3897 = vmatprep.subr.bf16.mxu1 %v4188_v12 }
 0x231   : > { %v3799_v35 = vpop.f32.mrf.mxu0  ;;  %v3805_v36 = vpop.f32.mrf.mxu1 }
 0x233   : > { %v1058_v37 = vpop.f32.mrf.mxu0  ;;  %v1105_v38 = vpop.f32.mrf.mxu1 }
 0x234   : > { %v1699_v41 = vpack.c.bf16 %v1058_v37, %v1055_v33  ;;  %v1700_v42 = vpack.c.bf16 %v1105_v38, %v1102_v34 }
 0x235   : > { %v3800_v43 = vpop.f32.mrf.mxu0  ;;  %v3806_v44 = vpop.f32.mrf.mxu1 }
 0x236   : > { %v1804_v45 = vsel %vm1705_vm1, %v1699_v41, 0  ;;  %v1851_v46 = vsel %vm1705_vm1, %v1700_v42, 0  ;;  %3882 = vmatmul.mubr.msk.bf16.vlgmr.msra.gmra.mxu0 %vm1705_vm1, %v1689_v39  ;;  %3888 = vmatmul.mubr.msk.bf16.vlgmr.msra.gmra.mxu1 %vm1705_vm1, %v1690_v40 }
 0x237   : > { %v1149_v47 = vpop.f32.mrf.mxu0  ;;  %v1196_v48 = vpop.f32.mrf.mxu1  ;;  %3892 = vmatpush3.bf16.xpose.msra.mxu0 %v1804_v45  ;;  %3898 = vmatpush3.bf16.xpose.msra.mxu1 %v1851_v46 }
 0x238   : > { %3893 = vmatprep.mubr.msk.bf16.mxu0 %vm4189_vm0, %v4188_v12  ;;  %3899 = vmatprep.mubr.msk.bf16.mxu1 %vm4189_vm0, %v4188_v12 }
 0x239   : > { %v3811_v49 = vpop.f32.mrf.mxu0  ;;  %v3817_v50 = vpop.f32.mrf.mxu1  ;;  %3903 = vmatprep.subr.bf16.mxu0 %v4188_v12  ;;  %3909 = vmatprep.subr.bf16.mxu1 %v4188_v12 }
 0x23b   : > { %v1152_v51 = vpop.f32.mrf.mxu0  ;;  %v1199_v52 = vpop.f32.mrf.mxu1 }
 0x23c   : > { %v1701_v55 = vpack.c.bf16 %v1152_v51, %v1149_v47  ;;  %v1702_v56 = vpack.c.bf16 %v1199_v52, %v1196_v48 }
 0x23d   : > { %v3812_v57 = vpop.f32.mrf.mxu0  ;;  %v3818_v58 = vpop.f32.mrf.mxu1 }
 0x23e   : > { %v1898_v59 = vsel %vm1705_vm1, %v1701_v55, 0  ;;  %v1945_v62 = vsel %vm1705_vm1, %v1702_v56, 0  ;;  %3894 = vmatmul.mubr.msk.bf16.vlgmr.msra.gmra.mxu0 %vm1705_vm1, %v1691_v53  ;;  %3900 = vmatmul.mubr.msk.bf16.vlgmr.msra.gmra.mxu1 %vm1705_vm1, %v1692_v54 }
 0x23f   : > { %v1243_v63 = vpop.f32.mrf.mxu0  ;;  %v1290_v2 = vpop.f32.mrf.mxu1  ;;  %3904 = vmatpush3.bf16.xpose.msra.mxu0 %v1898_v59  ;;  %3910 = vmatpush3.bf16.xpose.msra.mxu1 %v1945_v62 }
 0x240   : > { %3905 = vmatprep.mubr.msk.bf16.mxu0 %vm4189_vm0, %v4188_v12  ;;  %3911 = vmatprep.mubr.msk.bf16.mxu1 %vm4189_vm0, %v4188_v12 }
 0x241   : > { %v3823_v60 = vpop.f32.mrf.mxu0  ;;  %v3829_v61 = vpop.f32.mrf.mxu1  ;;  %3915 = vmatprep.subr.bf16.mxu0 %v4188_v12  ;;  %3921 = vmatprep.subr.bf16.mxu1 %v4188_v12 }
 0x243   : > { %v1246_v0 = vpop.f32.mrf.mxu0  ;;  %v1293_v1 = vpop.f32.mrf.mxu1 }
 0x244   : > { %v1703_v7 = vpack.c.bf16 %v1246_v0, %v1243_v63  ;;  %v1704_v10 = vpack.c.bf16 %v1293_v1, %v1290_v2 }
 0x245   : > { %v3824_v11 = vpop.f32.mrf.mxu0  ;;  %v3830_v15 = vpop.f32.mrf.mxu1 }
 0x246   : > { %v1992_v16 = vsel %vm1705_vm1, %v1703_v7, 0  ;;  %v2039_v19 = vsel %vm1705_vm1, %v1704_v10, 0  ;;  %3906 = vmatmul.mubr.msk.bf16.vlgmr.msra.gmra.mxu0 %vm1705_vm1, %v1693_v3  ;;  %3912 = vmatmul.mubr.msk.bf16.vlgmr.msra.gmra.mxu1 %vm1705_vm1, %v1694_v6 }
 0x247   : > { %v1353_v20 = vpop.f32.mrf.mxu0  ;;  %v1400_v21 = vpop.f32.mrf.mxu1  ;;  %3916 = vmatpush3.bf16.xpose.msra.mxu0 %v1992_v16  ;;  %3922 = vmatpush3.bf16.xpose.msra.mxu1 %v2039_v19 }
 0x248   : > { %3917 = vmatprep.mubr.msk.bf16.mxu0 %vm4189_vm0, %v4188_v12  ;;  %3923 = vmatprep.mubr.msk.bf16.mxu1 %vm4189_vm0, %v4188_v12 }
 0x249   : > { %v3835_v4 = vpop.f32.mrf.mxu0  ;;  %v3841_v5 = vpop.f32.mrf.mxu1  ;;  %3927 = vmatprep.subr.bf16.mxu0 %v4188_v12  ;;  %3933 = vmatprep.subr.bf16.mxu1 %v4188_v12 }
 0x24b   : > { %v1356_v8 = vpop.f32.mrf.mxu0  ;;  %v1403_v9 = vpop.f32.mrf.mxu1 }
 0x24c   : > { %v2266_v24 = vpack.c.bf16 %v1356_v8, %v1353_v20  ;;  %v2267_v25 = vpack.c.bf16 %v1403_v9, %v1400_v21 }
 0x24d   : > { %v3836_v26 = vpop.f32.mrf.mxu0  ;;  %v3842_v27 = vpop.f32.mrf.mxu1 }
 0x24e   : > { %3918 = vmatmul.mubr.msk.bf16.vlgmr.msra.gmra.mxu0 %vm1705_vm1, %v1695_v22  ;;  %3924 = vmatmul.mubr.msk.bf16.vlgmr.msra.gmra.mxu1 %vm1705_vm1, %v1696_v23 }
 0x24f   : > { %v4546_v28 = vpop.f32.mrf.mxu0  ;;  %v4548_v29 = vpop.f32.mrf.mxu1  ;;  %3928 = vmatpush3.bf16.msra.mxu0 %v2266_v24  ;;  %3934 = vmatpush3.bf16.msra.mxu1 %v2267_v25 }
 0x250   : > { %3929 = vmatprep.mubr.msk.bf16.mxu0 %vm4189_vm0, %v4188_v12  ;;  %3939 = vmatprep.subr.bf16.mxu0 %v4188_v12 }
 0x251   : > { %v3847_v13 = vpop.f32.mrf.mxu0  ;;  %v3853_v14 = vpop.f32.mrf.mxu1  ;;  %3935 = vmatprep.mubr.msk.bf16.mxu1 %vm4189_vm0, %v4188_v12  ;;  %3945 = vmatprep.subr.bf16.mxu1 %v4188_v12 }
 0x253   : > { %v4556_v17 = vpop.f32.mrf.mxu0  ;;  %v4558_v18 = vpop.f32.mrf.mxu1 }
 0x254   : > { %v2268_v30 = vpack.c.bf16 %v4556_v17, %v4546_v28  ;;  %v2269_v31 = vpack.c.bf16 %v4558_v18, %v4548_v29 }
 0x255   : > { %v3848_v32 = vpop.f32.mrf.mxu0  ;;  %v3854_v33 = vpop.f32.mrf.mxu1 }
 0x257   : > { %v4564_v34 = vpop.f32.mrf.mxu0  ;;  %v4566_v35 = vpop.f32.mrf.mxu1 }
 0x259   : > { %v3859_v36 = vpop.f32.mrf.mxu0  ;;  %v3865_v37 = vpop.f32.mrf.mxu1 }
 0x25b   : > { %v4568_v38 = vpop.f32.mrf.mxu0  ;;  %v4570_v39 = vpop.f32.mrf.mxu1 }
 0x25c   : > { %v2270_v40 = vpack.c.bf16 %v4568_v38, %v4564_v34  ;;  %v2271_v41 = vpack.c.bf16 %v4570_v39, %v4566_v35 }
 0x25d   : > { %v3860_v42 = vpop.f32.mrf.mxu0  ;;  %v3866_v43 = vpop.f32.mrf.mxu1 }
 0x25f   : > { %v4576_v44 = vpop.f32.mrf.mxu0  ;;  %v4578_v45 = vpop.f32.mrf.mxu1 }
 0x261   : > { %v3871_v46 = vpop.f32.mrf.mxu0  ;;  %v3877_v47 = vpop.f32.mrf.mxu1 }
 0x263   : > { %v4580_v48 = vpop.f32.mrf.mxu0  ;;  %v4582_v49 = vpop.f32.mrf.mxu1 }
 0x264   : > { %v2272_v50 = vpack.c.bf16 %v4580_v48, %v4576_v44  ;;  %v2273_v51 = vpack.c.bf16 %v4582_v49, %v4578_v45  ;;  %v4058_v45 = vld [vmem:[%s4993_s6] sm:$0xff]   ;;  %v4059_v49 = vld [vmem:[%s4993_s6 + $0x8] sm:$0xff]  }
 0x265   : > { %v3872_v52 = vpop.f32.mrf.mxu0  ;;  %v3878_v53 = vpop.f32.mrf.mxu1 }
 0x2f6   : > { %v4588_v54 = vpop.f32.mrf.mxu0  ;;  %v4590_v55 = vpop.f32.mrf.mxu1 }
 0x2f7   : > { %v2082_v56 = vsel %vm1705_vm1, %v4588_v54, -inf  ;;  %v2088_v63 = vsel %vm1705_vm1, %v4590_v55, -inf }
 0x2f8   : > { %v3889_v57 = vpop.f32.mrf.mxu1  ;;  %2083 = vmax.xlane.f32.xlu0 %v2082_v56  ;;  %v3883_v58 = vpop.f32.mrf.mxu0 }
 0x2fa   : > { %v4594_v59 = vpop.f32.mrf.mxu0  ;;  %v4596_v62 = vpop.f32.mrf.mxu1 }
 0x2fb   : > { %v2085_v2 = vsel %vm1705_vm1, %v4594_v59, -inf  ;;  %v2091_v3 = vsel %vm1705_vm1, %v4596_v62, -inf }
 0x2fc   : > { %v3890_v60 = vpop.f32.mrf.mxu1  ;;  %2089 = vmax.xlane.f32.xlu0 %v2088_v63  ;;  %2086 = vmax.xlane.f32.xlu1 %v2085_v2  ;;  %v3884_v61 = vpop.f32.mrf.mxu0 }
 0x2fe   : > { %v4602_v0 = vpop.f32.mrf.mxu0  ;;  %v4604_v1 = vpop.f32.mrf.mxu1 }
 0x2ff   : > { %v2094_v6 = vsel %vm1705_vm1, %v4602_v0, -inf  ;;  %v2100_v16 = vsel %vm1705_vm1, %v4604_v1, -inf }
 0x300   : > { %v3901_v7 = vpop.f32.mrf.mxu1  ;;  %2092 = vmax.xlane.f32.xlu1 %v2091_v3  ;;  %2095 = vmax.xlane.f32.xlu0 %v2094_v6  ;;  %v3895_v10 = vpop.f32.mrf.mxu0 }
 0x302   : > { %v4610_v11 = vpop.f32.mrf.mxu0  ;;  %v4612_v15 = vpop.f32.mrf.mxu1 }
 0x303   : > { %v2097_v19 = vsel %vm1705_vm1, %v4610_v11, -inf  ;;  %v2103_v8 = vsel %vm1705_vm1, %v4612_v15, -inf }
 0x304   : > { %v3902_v20 = vpop.f32.mrf.mxu1  ;;  %2101 = vmax.xlane.f32.xlu0 %v2100_v16  ;;  %2098 = vmax.xlane.f32.xlu1 %v2097_v19  ;;  %v3896_v21 = vpop.f32.mrf.mxu0 }
 0x306   : > { %v4618_v4 = vpop.f32.mrf.mxu0  ;;  %v4620_v5 = vpop.f32.mrf.mxu1 }
 0x307   : > { %v2106_v9 = vsel %vm1705_vm1, %v4618_v4, -inf  ;;  %v2112_v26 = vsel %vm1705_vm1, %v4620_v5, -inf }
 0x308   : > { %v3913_v22 = vpop.f32.mrf.mxu1  ;;  %2104 = vmax.xlane.f32.xlu1 %v2103_v8  ;;  %2107 = vmax.xlane.f32.xlu0 %v2106_v9  ;;  %v3907_v23 = vpop.f32.mrf.mxu0 }
 0x30a   : > { %v4626_v24 = vpop.f32.mrf.mxu0  ;;  %v4628_v25 = vpop.f32.mrf.mxu1 }
 0x30b   : > { %v2109_v27 = vsel %vm1705_vm1, %v4626_v24, -inf  ;;  %v2115_v36 = vsel %vm1705_vm1, %v4628_v25, -inf }
 0x30c   : > { %v3914_v13 = vpop.f32.mrf.mxu1  ;;  %2113 = vmax.xlane.f32.xlu0 %v2112_v26  ;;  %2110 = vmax.xlane.f32.xlu1 %v2109_v27  ;;  %v3908_v14 = vpop.f32.mrf.mxu0 }
 0x30e   : > { %v4634_v32 = vpop.f32.mrf.mxu0  ;;  %v4636_v33 = vpop.f32.mrf.mxu1 }
 0x30f   : > { %v2118_v37 = vsel %vm1705_vm1, %v4634_v32, -inf  ;;  %v2124_v52 = vsel %vm1705_vm1, %v4636_v33, -inf }
 0x310   : > { %v3925_v42 = vpop.f32.mrf.mxu1  ;;  %2116 = vmax.xlane.f32.xlu1 %v2115_v36  ;;  %2119 = vmax.xlane.f32.xlu0 %v2118_v37  ;;  %v3919_v43 = vpop.f32.mrf.mxu0 }
 0x312   : > { %v4642_v46 = vpop.f32.mrf.mxu0  ;;  %v4644_v47 = vpop.f32.mrf.mxu1 }
 0x313   : > { %v2121_v53 = vsel %vm1705_vm1, %v4642_v46, -inf  ;;  %v2127_v58 = vsel %vm1705_vm1, %v4644_v47, -inf }
 0x314   : > { %v3926_v56 = vpop.f32.mrf.mxu1  ;;  %2125 = vmax.xlane.f32.xlu0 %v2124_v52  ;;  %2122 = vmax.xlane.f32.xlu1 %v2121_v53  ;;  %v3920_v57 = vpop.f32.mrf.mxu0 }
 0x318   : > { %2128 = vmax.xlane.f32.xlu1 %v2127_v58 }
 0x381   : > { %v2084_v63 = vpop.xlane.xlu0 %2083 }
 0x382   : > { %v2130_v2 = vsub.f32 %v4588_v54, %v2084_v63 }
 0x384   : > { %v2146_v60 = vmul.f32 1.442695, %v2130_v2 }
 0x385   : > { %v2090_v61 = vpop.xlane.xlu0 %2089  ;;  %v2087_v3 = vpop.xlane.xlu1 %2086 }
 0x386   : > { %4110 = vpow2.f32 %v2146_v60  ;;  %v2132_v6 = vsub.f32 %v4590_v55, %v2090_v61  ;;  %v2131_v7 = vsub.f32 %v4594_v59, %v2087_v3 }
 0x388   : > { %v2150_v10 = vmul.f32 1.442695, %v2132_v6  ;;  %v2148_v16 = vmul.f32 1.442695, %v2131_v7 }
 0x389   : > { %v2093_v19 = vpop.xlane.xlu1 %2092  ;;  %v2096_v20 = vpop.xlane.xlu0 %2095 }
 0x38a   : > { %4112 = vpow2.f32 %v2150_v10  ;;  %v2133_v21 = vsub.f32 %v4596_v62, %v2093_v19  ;;  %v2134_v8 = vsub.f32 %v4602_v0, %v2096_v20 }
 0x38b   : > { %4114 = vpow2.f32 %v2148_v16 }
 0x38c   : > { %v2152_v9 = vmul.f32 1.442695, %v2133_v21  ;;  %v2154_v54 = vmul.f32 1.442695, %v2134_v8 }
 0x38d   : > { %v2102_v22 = vpop.xlane.xlu0 %2101  ;;  %v2099_v23 = vpop.xlane.xlu1 %2098 }
 0x38e   : > { %4116 = vpow2.f32 %v2152_v9  ;;  %v2136_v26 = vsub.f32 %v4604_v1, %v2102_v22  ;;  %v2135_v55 = vsub.f32 %v4610_v11, %v2099_v23 }
 0x38f   : > { %4118 = vpow2.f32 %v2154_v54 }
 0x390   : > { %v2158_v59 = vmul.f32 1.442695, %v2136_v26  ;;  %v2156_v27 = vmul.f32 1.442695, %v2135_v55 }
 0x391   : > { %v2105_v13 = vpop.xlane.xlu1 %2104  ;;  %v2108_v14 = vpop.xlane.xlu0 %2107 }
 0x392   : > { %4120 = vpow2.f32 %v2158_v59  ;;  %v2137_v62 = vsub.f32 %v4612_v15, %v2105_v13  ;;  %v2138_v0 = vsub.f32 %v4618_v4, %v2108_v14 }
 0x393   : > { %v4661_v36 = vpop.eup %4110  ;;  %4122 = vpow2.f32 %v2156_v27 }
 0x394   : > { %v2160_v37 = vmul.f32 1.442695, %v2137_v62  ;;  %v2162_v42 = vmul.f32 1.442695, %v2138_v0  ;;  %v2178_v1 = vsel %vm1705_vm1, %v4661_v36, 0.0 }
 0x395   : > { %v2114_v43 = vpop.xlane.xlu0 %2113  ;;  %v2111_v11 = vpop.xlane.xlu1 %2110  ;;  %2179 = vadd.xlane.f32.xlu0 %v2178_v1 }
 0x396   : > { %4124 = vpow2.f32 %v2160_v37  ;;  %v2140_v52 = vsub.f32 %v4620_v5, %v2114_v43  ;;  %v2139_v53 = vsub.f32 %v4626_v24, %v2111_v11 }
 0x397   : > { %v4667_v56 = vpop.eup %4112  ;;  %4126 = vpow2.f32 %v2162_v42 }
 0x398   : > { %v4669_v15 = vpop.eup %4114  ;;  %v2166_v4 = vmul.f32 1.442695, %v2140_v52  ;;  %v2164_v57 = vmul.f32 1.442695, %v2139_v53  ;;  %v2184_v58 = vsel %vm1705_vm1, %v4667_v56, 0.0 }
 0x399   : > { %v2117_v63 = vpop.xlane.xlu1 %2116  ;;  %2185 = vadd.xlane.f32.xlu0 %v2184_v58  ;;  %v2120_v2 = vpop.xlane.xlu0 %2119  ;;  %v2181_v60 = vsel %vm1705_vm1, %v4669_v15, 0.0 }
 0x39a   : > { %4128 = vpow2.f32 %v2166_v4  ;;  %v2141_v5 = vsub.f32 %v4628_v25, %v2117_v63  ;;  %v2142_v24 = vsub.f32 %v4634_v32, %v2120_v2  ;;  %2182 = vadd.xlane.f32.xlu1 %v2181_v60 }
 0x39b   : > { %v4677_v61 = vpop.eup %4116  ;;  %4130 = vpow2.f32 %v2164_v57 }
 0x39c   : > { %v4679_v3 = vpop.eup %4118  ;;  %v2168_v6 = vmul.f32 1.442695, %v2141_v5  ;;  %v2170_v7 = vmul.f32 1.442695, %v2142_v24  ;;  %v2187_v10 = vsel %vm1705_vm1, %v4677_v61, 0.0 }
 0x39d   : > { %v2190_v16 = vsel %vm1705_vm1, %v4679_v3, 0.0  ;;  %v2126_v19 = vpop.xlane.xlu0 %2125  ;;  %v2123_v20 = vpop.xlane.xlu1 %2122 }
 0x39e   : > { %4132 = vpow2.f32 %v2168_v6  ;;  %2191 = vadd.xlane.f32.xlu0 %v2190_v16  ;;  %v2144_v25 = vsub.f32 %v4636_v33, %v2126_v19  ;;  %2188 = vadd.xlane.f32.xlu1 %v2187_v10  ;;  %v2143_v32 = vsub.f32 %v4642_v46, %v2123_v20 }
 0x39f   : > { %v4687_v21 = vpop.eup %4120  ;;  %4134 = vpow2.f32 %v2170_v7 }
 0x3a0   : > { %v4689_v8 = vpop.eup %4122  ;;  %v2174_v9 = vmul.f32 1.442695, %v2144_v25  ;;  %v2172_v54 = vmul.f32 1.442695, %v2143_v32  ;;  %v2196_v22 = vsel %vm1705_vm1, %v4687_v21, 0.0 }
 0x3a1   : > { %v2193_v23 = vsel %vm1705_vm1, %v4689_v8, 0.0  ;;  %v2129_v26 = vpop.xlane.xlu1 %2128 }
 0x3a2   : > { %4136 = vpow2.f32 %v2174_v9  ;;  %2197 = vadd.xlane.f32.xlu0 %v2196_v22  ;;  %2194 = vadd.xlane.f32.xlu1 %v2193_v23  ;;  %v2145_v33 = vsub.f32 %v4644_v47, %v2129_v26 }
 0x3a3   : > { %v4696_v46 = vpop.eup %4124  ;;  %4138 = vpow2.f32 %v2172_v54 }
 0x3a4   : > { %v4698_v55 = vpop.eup %4126  ;;  %v2176_v59 = vmul.f32 1.442695, %v2145_v33  ;;  %v2199_v27 = vsel %vm1705_vm1, %v4696_v46, 0.0 }
 0x3a5   : > { %v2202_v13 = vsel %vm1705_vm1, %v4698_v55, 0.0 }
 0x3a6   : > { %4140 = vpow2.f32 %v2176_v59  ;;  %2203 = vadd.xlane.f32.xlu0 %v2202_v13  ;;  %2200 = vadd.xlane.f32.xlu1 %v2199_v27 }
 0x3a7   : > { %v4704_v14 = vpop.eup %4128 }
 0x3a8   : > { %v4706_v62 = vpop.eup %4130  ;;  %v2208_v47 = vsel %vm1705_vm1, %v4704_v14, 0.0 }
 0x3a9   : > { %v2205_v0 = vsel %vm1705_vm1, %v4706_v62, 0.0 }
 0x3aa   : > { %2209 = vadd.xlane.f32.xlu0 %v2208_v47  ;;  %2206 = vadd.xlane.f32.xlu1 %v2205_v0 }
 0x3ab   : > { %v4712_v37 = vpop.eup %4132 }
 0x3ac   : > { %v4714_v42 = vpop.eup %4134  ;;  %v2211_v1 = vsel %vm1705_vm1, %v4712_v37, 0.0 }
 0x3ad   : > { %v2214_v43 = vsel %vm1705_vm1, %v4714_v42, 0.0 }
 0x3ae   : > { %2215 = vadd.xlane.f32.xlu0 %v2214_v43  ;;  %2212 = vadd.xlane.f32.xlu1 %v2211_v1 }
 0x3af   : > { %v4720_v11 = vpop.eup %4136 }
 0x3b0   : > { %v4722_v52 = vpop.eup %4138  ;;  %v2220_v53 = vsel %vm1705_vm1, %v4720_v11, 0.0 }
 0x3b1   : > { %v2217_v4 = vsel %vm1705_vm1, %v4722_v52, 0.0 }
 0x3b2   : > { %2221 = vadd.xlane.f32.xlu0 %v2220_v53  ;;  %2218 = vadd.xlane.f32.xlu1 %v2217_v4 }
 0x3b3   : > { %v4728_v57 = vpop.eup %4140 }
 0x3b4   : > { %v2223_v58 = vsel %vm1705_vm1, %v4728_v57, 0.0 }
 0x3b6   : > { %2224 = vadd.xlane.f32.xlu1 %v2223_v58 }
 0x41e   : > { %v2180_v63 = vpop.xlane.xlu0 %2179 }
 0x41f   : > { %4142 = vrcp.f32 %v2180_v63 }
 0x422   : > { %v2186_v2 = vpop.xlane.xlu0 %2185 }
 0x423   : > { %v2183_v60 = vpop.xlane.xlu1 %2182 }
 0x424   : > { %4144 = vrcp.f32 %v2183_v60 }
 0x425   : > { %4146 = vrcp.f32 %v2186_v2 }
 0x427   : > { %v2192_v5 = vpop.xlane.xlu0 %2191  ;;  %v2189_v24 = vpop.xlane.xlu1 %2188 }
 0x428   : > { %4148 = vrcp.f32 %v2189_v24 }
 0x429   : > { %4150 = vrcp.f32 %v2192_v5 }
 0x42b   : > { %v2198_v6 = vpop.xlane.xlu0 %2197  ;;  %v2195_v7 = vpop.xlane.xlu1 %2194 }
 0x42c   : > { %4152 = vrcp.f32 %v2195_v7  ;;  %v4143_v10 = vpop.eup %4142 }
 0x42d   : > { %4154 = vrcp.f32 %v2198_v6  ;;  %v2242_v25 = vmul.f32 %v4143_v10, %v4661_v36  ;;  %v4061_v6 = vld [vmem:[%s4993_s6 + $0x18] sm:$0xff]  }
 0x42f   : > { %v2204_v16 = vpop.xlane.xlu0 %2203  ;;  %v2201_v19 = vpop.xlane.xlu1 %2200 }
 0x430   : > { %4156 = vrcp.f32 %v2201_v19 }
 0x431   : > { %v4145_v20 = vpop.eup %4144  ;;  %4158 = vrcp.f32 %v2204_v16 }
 0x432   : > { %v2243_v32 = vmul.f32 %v4145_v20, %v4669_v15  ;;  %v4147_v22 = vpop.eup %4146 }
 0x433   : > { %v2210_v9 = vpop.xlane.xlu0 %2209  ;;  %v2207_v54 = vpop.xlane.xlu1 %2206  ;;  %v2244_v36 = vmul.f32 %v4147_v22, %v4667_v56 }
 0x434   : > { %v2258_v23 = vpack.c.bf16 %v2243_v32, %v2242_v25  ;;  %4160 = vrcp.f32 %v2207_v54  ;;  %v4062_v25 = vld [vmem:[%s4993_s6 + $0x20] sm:$0xff]  }
 0x435   : > { %v4149_v26 = vpop.eup %4148  ;;  %4162 = vrcp.f32 %v2210_v9 }
 0x436   : > { %3930 = vmatmul.mubr.msk.bf16.vlgmr.msra.gmra.mxu0 %vm1705_vm1, %v2258_v23  ;;  %v2245_v15 = vmul.f32 %v4149_v26, %v4677_v61  ;;  %v4151_v27 = vpop.eup %4150  ;;  %v4063_v26 = vld [vmem:[%s4993_s6 + $0x28] sm:$0xff]  }
 0x437   : > { %3940 = vmatpush3.bf16.msra.mxu0 %v2268_v30  ;;  %v2216_v33 = vpop.xlane.xlu0 %2215  ;;  %v2213_v59 = vpop.xlane.xlu1 %2212  ;;  %3941 = vmatprep.mubr.msk.bf16.mxu0 %vm4189_vm0, %v4188_v12  ;;  %v2246_v30 = vmul.f32 %v4151_v27, %v4679_v3 }
 0x438   : > { %3951 = vmatprep.subr.bf16.mxu0 %v4188_v12  ;;  %4164 = vrcp.f32 %v2213_v59  ;;  %v2259_v13 = vpack.c.bf16 %v2245_v15, %v2244_v36 }
 0x439   : > { %v4153_v47 = vpop.eup %4152  ;;  %4166 = vrcp.f32 %v2216_v33 }
 0x43a   : > { %3936 = vmatmul.mubr.msk.bf16.vlgmr.msra.gmra.mxu1 %vm1705_vm1, %v2259_v13  ;;  %v2247_v56 = vmul.f32 %v4153_v47, %v4689_v8  ;;  %v4155_v0 = vpop.eup %4154  ;;  %v4064_v13 = vld [vmem:[%s4993_s6 + $0x30] sm:$0xff]  }
 0x43b   : > { %v2222_v28 = vpop.xlane.xlu0 %2221  ;;  %v2219_v17 = vpop.xlane.xlu1 %2218  ;;  %3946 = vmatpush3.bf16.msra.mxu1 %v2269_v31  ;;  %3947 = vmatprep.mubr.msk.bf16.mxu1 %vm4189_vm0, %v4188_v12  ;;  %v2248_v3 = vmul.f32 %v4155_v0, %v4687_v21  ;;  %v4065_v0 = vld [vmem:[%s4993_s6 + $0x38] sm:$0xff]  }
 0x43c   : > { %4168 = vrcp.f32 %v2219_v17  ;;  %v2260_v61 = vpack.c.bf16 %v2247_v56, %v2246_v30  ;;  %3957 = vmatprep.subr.bf16.mxu1 %v4188_v12 }
 0x43d   : > { %v4157_v1 = vpop.eup %4156  ;;  %4170 = vrcp.f32 %v2222_v28 }
 0x43e   : > { %3942 = vmatmul.mubr.msk.bf16.vlgmr.msra.gmra.mxu0 %vm1705_vm1, %v2260_v61  ;;  %v2249_v8 = vmul.f32 %v4157_v1, %v4696_v46  ;;  %v4159_v53 = vpop.eup %4158 }
 0x43f   : > { %v2225_v43 = vpop.xlane.xlu1 %2224  ;;  %3952 = vmatpush3.bf16.msra.mxu0 %v2270_v40  ;;  %3953 = vmatprep.mubr.msk.bf16.mxu0 %vm4189_vm0, %v4188_v12  ;;  %v2250_v31 = vmul.f32 %v4159_v53, %v4698_v55 }
 0x440   : > { %4172 = vrcp.f32 %v2225_v43  ;;  %v2261_v29 = vpack.c.bf16 %v2249_v8, %v2248_v3  ;;  %3963 = vmatprep.subr.bf16.mxu0 %v4188_v12 }
 0x441   : > { %v4161_v18 = vpop.eup %4160 }
 0x442   : > { %3948 = vmatmul.mubr.msk.bf16.vlgmr.msra.gmra.mxu1 %vm1705_vm1, %v2261_v29  ;;  %v2251_v21 = vmul.f32 %v4161_v18, %v4706_v62  ;;  %v4163_v46 = vpop.eup %4162 }
 0x443   : > { %3958 = vmatpush3.bf16.msra.mxu1 %v2271_v41  ;;  %3959 = vmatprep.mubr.msk.bf16.mxu1 %vm4189_vm0, %v4188_v12  ;;  %v2252_v40 = vmul.f32 %v4163_v46, %v4704_v14 }
 0x444   : > { %v2262_v34 = vpack.c.bf16 %v2251_v21, %v2250_v31  ;;  %3969 = vmatprep.subr.bf16.mxu1 %v4188_v12 }
 0x445   : > { %v4165_v38 = vpop.eup %4164 }
 0x446   : > { %3954 = vmatmul.mubr.msk.bf16.vlgmr.msra.gmra.mxu0 %vm1705_vm1, %v2262_v34  ;;  %v2253_v55 = vmul.f32 %v4165_v38, %v4712_v37  ;;  %v4167_v4 = vpop.eup %4166 }
 0x447   : > { %3964 = vmatpush3.bf16.msra.mxu0 %v2272_v50  ;;  %3965 = vmatprep.mubr.msk.bf16.mxu0 %vm4189_vm0, %v4188_v12  ;;  %v2254_v62 = vmul.f32 %v4167_v4, %v4714_v42 }
 0x448   : > { %v2263_v35 = vpack.c.bf16 %v2253_v55, %v2252_v40  ;;  %3975 = vmatprep.subr.bf16.mxu0 %v4188_v12 }
 0x449   : > { %v4169_v39 = vpop.eup %4168 }
 0x44a   : > { %v4171_v41 = vpop.eup %4170  ;;  %3960 = vmatmul.mubr.msk.bf16.vlgmr.msra.gmra.mxu1 %vm1705_vm1, %v2263_v35  ;;  %v2255_v14 = vmul.f32 %v4169_v39, %v4722_v52 }
 0x44b   : > { %3970 = vmatpush3.bf16.msra.mxu1 %v2273_v51  ;;  %3971 = vmatprep.mubr.msk.bf16.mxu1 %vm4189_vm0, %v4188_v12  ;;  %v2256_v50 = vmul.f32 %v4171_v41, %v4720_v11 }
 0x44c   : > { %v2264_v48 = vpack.c.bf16 %v2255_v14, %v2254_v62  ;;  %3981 = vmatprep.subr.bf16.mxu1 %v4188_v12 }
 0x44d   : > { %v4173_v44 = vpop.eup %4172 }
 0x44e   : > { %v2257_v37 = vmul.f32 %v4173_v44, %v4728_v57  ;;  %3966 = vmatmul.mubr.msk.bf16.vlgmr.msra.gmra.mxu0 %vm1705_vm1, %v2264_v48  ;;  %v4060_v57 = vld [vmem:[%s4993_s6 + $0x10] sm:$0xff]  }
 0x44f   : > { %3977 = vmatprep.mubr.msk.bf16.mxu0 %vm4189_vm0, %v4188_v12  ;;  %3976 = vmatpush3.bf16.msra.mxu0 %v4058_v45 }
 0x450   : > { %v2265_v42 = vpack.c.bf16 %v2257_v37, %v2256_v50  ;;  %3987 = vmatprep.subr.bf16.mxu0 %v4188_v12 }
 0x452   : > { %3972 = vmatmul.mubr.msk.bf16.vlgmr.msra.gmra.mxu1 %vm1705_vm1, %v2265_v42 }
 0x453   : > { %3983 = vmatprep.mubr.msk.bf16.mxu1 %vm4189_vm0, %v4188_v12  ;;  %3982 = vmatpush3.bf16.msra.mxu1 %v4059_v49 }
 0x454   : > { %3993 = vmatprep.subr.bf16.mxu1 %v4188_v12 }
 0x4f6   : > { %v2311_v51 = vpop.f32.mrf.mxu0 }
 0x4f8   : > { %v3931_v11 = vpop.f32.mrf.mxu0 }
 0x4fa   : > { %v2314_v52 = vpop.f32.mrf.mxu0  ;;  %v2355_v63 = vpop.f32.mrf.mxu1 }
 0x4fb   : > { %v2626_v58 = vpack.c.bf16 %v2314_v52, %v2311_v51 }
 0x4fc   : > { %v3932_v2 = vpop.f32.mrf.mxu0  ;;  %v3937_v60 = vpop.f32.mrf.mxu1 }
 0x4fd   : > { %3978 = vmatmul.mubr.msk.bf16.vlgmr.msra.gmra.mxu0 %vm1705_vm1, %v2626_v58 }
 0x4fe   : > { %3988 = vmatpush3.bf16.msra.mxu0 %v4060_v57  ;;  %3989 = vmatprep.mubr.msk.bf16.mxu0 %vm4189_vm0, %v4188_v12  ;;  %v2358_v5 = vpop.f32.mrf.mxu1  ;;  %v2399_v24 = vpop.f32.mrf.mxu0 }
 0x4ff   : > { %3999 = vmatprep.subr.bf16.mxu0 %v4188_v12  ;;  %v2627_v7 = vpack.c.bf16 %v2358_v5, %v2355_v63 }
 0x500   : > { %v3938_v10 = vpop.f32.mrf.mxu1  ;;  %v3943_v16 = vpop.f32.mrf.mxu0 }
 0x501   : > { %3984 = vmatmul.mubr.msk.bf16.vlgmr.msra.gmra.mxu1 %vm1705_vm1, %v2627_v7 }
 0x502   : > { %v2402_v19 = vpop.f32.mrf.mxu0  ;;  %v2443_v20 = vpop.f32.mrf.mxu1  ;;  %3994 = vmatpush3.bf16.msra.mxu1 %v4061_v6  ;;  %3995 = vmatprep.mubr.msk.bf16.mxu1 %vm4189_vm0, %v4188_v12 }
 0x503   : > { %v2628_v32 = vpack.c.bf16 %v2402_v19, %v2399_v24  ;;  %4005 = vmatprep.subr.bf16.mxu1 %v4188_v12 }
 0x504   : > { %v3944_v9 = vpop.f32.mrf.mxu0  ;;  %v3949_v54 = vpop.f32.mrf.mxu1 }
 0x505   : > { %3990 = vmatmul.mubr.msk.bf16.vlgmr.msra.gmra.mxu0 %vm1705_vm1, %v2628_v32 }
 0x506   : > { %v2446_v22 = vpop.f32.mrf.mxu1  ;;  %v2487_v23 = vpop.f32.mrf.mxu0  ;;  %4000 = vmatpush3.bf16.msra.mxu0 %v4062_v25  ;;  %4001 = vmatprep.mubr.msk.bf16.mxu0 %vm4189_vm0, %v4188_v12 }
 0x507   : > { %v2629_v33 = vpack.c.bf16 %v2446_v22, %v2443_v20  ;;  %4011 = vmatprep.subr.bf16.mxu0 %v4188_v12 }
 0x508   : > { %v3950_v59 = vpop.f32.mrf.mxu1  ;;  %v3955_v36 = vpop.f32.mrf.mxu0 }
 0x509   : > { %3996 = vmatmul.mubr.msk.bf16.vlgmr.msra.gmra.mxu1 %vm1705_vm1, %v2629_v33  ;;  %v3577_v59 = vld [vmem:[%s4994_s7] ss:$0 sm:$0xff] }
 0x50a   : > { %v2490_v15 = vpop.f32.mrf.mxu0  ;;  %v2531_v27 = vpop.f32.mrf.mxu1  ;;  %4006 = vmatpush3.bf16.msra.mxu1 %v4063_v26  ;;  %4007 = vmatprep.mubr.msk.bf16.mxu1 %vm4189_vm0, %v4188_v12 }
 0x50b   : > { %v2630_v47 = vpack.c.bf16 %v2490_v15, %v2487_v23  ;;  %4017 = vmatprep.subr.bf16.mxu1 %v4188_v12  ;;  %v4178_v15 = vld [vmem:[%s4282_s18] sm:$0xff] }
 0x50c   : > { %v3956_v28 = vpop.f32.mrf.mxu0  ;;  %v3961_v17 = vpop.f32.mrf.mxu1 }
 0x50d   : > { %4002 = vmatmul.mubr.msk.bf16.vlgmr.msra.gmra.mxu0 %vm1705_vm1, %v2630_v47 }
 0x50e   : > { %v2534_v30 = vpop.f32.mrf.mxu1  ;;  %v2575_v56 = vpop.f32.mrf.mxu0  ;;  %4012 = vmatpush3.bf16.msra.mxu0 %v4064_v13  ;;  %4013 = vmatprep.mubr.msk.bf16.mxu0 %vm4189_vm0, %v4188_v12 }
 0x50f   : > { %v2631_v61 = vpack.c.bf16 %v2534_v30, %v2531_v27  ;;  %v4179_v30 = vld [vmem:[%s4282_s18 + $0x8] sm:$0xff] }
 0x510   : > { %v3962_v1 = vpop.f32.mrf.mxu1  ;;  %v3967_v43 = vpop.f32.mrf.mxu0 }
 0x511   : > { %4008 = vmatmul.mubr.msk.bf16.vlgmr.msra.gmra.mxu1 %vm1705_vm1, %v2631_v61  ;;  %v4066_v61 = vld [vmem:[%s4997_s10 + $0x70] ss:$8 sps:$4 sm:$0xff]   ;;  %v4068_v1 = vld [vmem:[%s4997_s10 + $0x74] ss:$8 sps:$4 sm:$0xff]  }
 0x512   : > { %v2578_v3 = vpop.f32.mrf.mxu0  ;;  %v2619_v8 = vpop.f32.mrf.mxu1  ;;  %4018 = vmatpush3.bf16.msra.mxu1 %v4065_v0  ;;  %4019 = vmatprep.mubr.msk.bf16.mxu1 %vm4189_vm0, %v4188_v12 }
 0x513   : > { %v2632_v53 = vpack.c.bf16 %v2578_v3, %v2575_v56  ;;  %3224 = vmatprep.subr.bf16.mxu0 %v4068_v1 }
 0x514   : > { %v3968_v29 = vpop.f32.mrf.mxu0  ;;  %v3973_v18 = vpop.f32.mrf.mxu1 }
 0x515   : > { %4014 = vmatmul.mubr.msk.bf16.vlgmr.msra.gmra.mxu0 %vm1705_vm1, %v2632_v53 }
 0x516   : > { %v2622_v31 = vpop.f32.mrf.mxu1  ;;  %3225 = vmatpush1.bf16.msra.mxu0 %v4066_v61  ;;  %v3132_v61 = vld [vmem:[%s4998_s11] sm:$0x3] }
 0x517   : > { %v2633_v21 = vpack.c.bf16 %v2622_v31, %v2619_v8 }
 0x518   : > { %v3974_v46 = vpop.f32.mrf.mxu1 }
 0x519   : > { %4020 = vmatmul.mubr.msk.bf16.vlgmr.msra.gmra.mxu1 %vm1705_vm1, %v2633_v21  ;;  %v4071_v46 = vld [vmem:[%s4997_s10 + $0x64] ss:$8 sps:$4 sm:$0xff]  }
 0x51a   : > { %3226 = vmatprep.subr.bf16.mxu0 %v4071_v46 }
 0x5bd   : > { %v2693_v34 = vpop.f32.mrf.mxu0 }
 0x5bf   : > { %v3979_v38 = vpop.f32.mrf.mxu0 }
 0x5c0   : > { %v4074_v38 = vld [vmem:[%s4997_s10 + $0x54] ss:$8 sps:$4 sm:$0xff]  }
 0x5c1   : > { %v2696_v40 = vpop.f32.mrf.mxu0  ;;  %v2743_v55 = vpop.f32.mrf.mxu1 }
 0x5c2   : > { %v3050_v45 = vadd.f32 %v2743_v55, %v2693_v34  ;;  %v4069_v34 = vld [vmem:[%s4997_s10 + $0x60] ss:$8 sps:$4 sm:$0xff]  }
 0x5c3   : > { %v3980_v4 = vpop.f32.mrf.mxu0  ;;  %v3985_v35 = vpop.f32.mrf.mxu1  ;;  %3227 = vmatpush1.bf16.msra.mxu0 %v4069_v34  ;;  %v4075_v55 = vld [vmem:[%s4997_s10 + $0x40] ss:$8 sps:$4 sm:$0xff]  }
 0x5c4   : > { %3228 = vmatprep.subr.bf16.mxu0 %v4074_v38  ;;  %v4077_v4 = vld [vmem:[%s4997_s10 + $0x44] ss:$8 sps:$4 sm:$0xff]   ;;  %v4080_v35 = vld [vmem:[%s4997_s10 + $0x34] ss:$8 sps:$4 sm:$0xff]  }
 0x5c5   : > { %v2746_v39 = vpop.f32.mrf.mxu1  ;;  %v2793_v41 = vpop.f32.mrf.mxu0 }
 0x5c6   : > { %v3051_v11 = vadd.f32 %v3050_v45, %v2793_v41  ;;  %v3057_v58 = vadd.f32 %v2746_v39, %v2696_v40  ;;  %v4072_v40 = vld [vmem:[%s4997_s10 + $0x50] ss:$8 sps:$4 sm:$0xff]   ;;  %v4190_v41 = vmov 0  }
 0x5c7   : > { %v3986_v62 = vpop.f32.mrf.mxu1  ;;  %v3991_v12 = vpop.f32.mrf.mxu0  ;;  %3229 = vmatpush1.bf16.msra.mxu0 %v4072_v40  ;;  %v4078_v39 = vld [vmem:[%s4997_s10 + $0x30] ss:$8 sps:$4 sm:$0xff]   ;;  %3256 = vmatprep.mubr.bf16.mxu0 %v4190_v41 }
 0x5c8   : > { %3230 = vmatprep.subr.bf16.mxu0 %v4077_v4  ;;  %v4083_v62 = vld [vmem:[%s4997_s10 + $0x24] ss:$8 sps:$4 sm:$0xff]   ;;  %v4081_v12 = vld [vmem:[%s4997_s10 + $0x20] ss:$8 sps:$4 sm:$0xff]   ;;  %v4092_v45 = vld [vmem:[%s4999_s12 + $0x70] sm:$0xff]  }
 0x5c9   : > { %v2796_v14 = vpop.f32.mrf.mxu0  ;;  %v2843_v44 = vpop.f32.mrf.mxu1 }
 0x5ca   : > { %v3052_v63 = vadd.f32 %v3051_v11, %v2843_v44  ;;  %v3058_v5 = vadd.f32 %v3057_v58, %v2796_v14  ;;  %v4086_v14 = vld [vmem:[%s4997_s10 + $0x14] ss:$8 sps:$4 sm:$0xff]   ;;  %v4084_v44 = vld [vmem:[%s4997_s10 + $0x10] ss:$8 sps:$4 sm:$0xff]   ;;  %v4095_v11 = vld [vmem:[%s4999_s12 + $0x28] sm:$0xff]  }
 0x5cb   : > { %v3992_v48 = vpop.f32.mrf.mxu0  ;;  %v3997_v50 = vpop.f32.mrf.mxu1  ;;  %3231 = vmatpush1.bf16.msra.mxu0 %v4075_v55  ;;  %v4098_v58 = vld [vmem:[%s4999_s12 + $0x58] sm:$0xff]  }
 0x5cc   : > { %3232 = vmatprep.subr.bf16.mxu0 %v4080_v35  ;;  %v4089_v48 = vld [vmem:[%s4997_s10 + $0x4] ss:$8 sps:$4 sm:$0xff]   ;;  %v4087_v50 = vld [vmem:[%s4997_s10] ss:$8 sps:$4 sm:$0xff]  }
 0x5cd   : > { %v2846_v37 = vpop.f32.mrf.mxu1  ;;  %v2893_v42 = vpop.f32.mrf.mxu0 }
 0x5ce   : > { %v3053_v24 = vadd.f32 %v3052_v63, %v2893_v42  ;;  %v3059_v10 = vadd.f32 %v3058_v5, %v2846_v37  ;;  %v4090_v37 = vld [vmem:[%s4999_s12 + $0x78] sm:$0xff]  }
 0x5cf   : > { %v3998_v49 = vpop.f32.mrf.mxu1  ;;  %v4003_v51 = vpop.f32.mrf.mxu0  ;;  %3233 = vmatpush1.bf16.msra.mxu0 %v4078_v39  ;;  %v4091_v42 = vld [vmem:[%s4999_s12 + $0x38] sm:$0xff]   ;;  %3713 = vmatprep.subr.bf16.mxu1 %v4090_v37 }
 0x5d0   : > { %3234 = vmatprep.subr.bf16.mxu0 %v4083_v62  ;;  %3714 = vmatpush3.bf16.msra.mxu1 %v4091_v42  ;;  %v4093_v49 = vld [vmem:[%s4999_s12 + $0x30] sm:$0xff]   ;;  %v4094_v51 = vld [vmem:[%s4999_s12 + $0x68] sm:$0xff]   ;;  %v4099_v63 = vld [vmem:[%s4999_s12 + $0x18] sm:$0xff]  }
 0x5d1   : > { %v2896_v52 = vpop.f32.mrf.mxu0  ;;  %v2943_v57 = vpop.f32.mrf.mxu1  ;;  %3715 = vmatprep.subr.bf16.mxu1 %v4092_v45 }
 0x5d2   : > { %v3054_v16 = vadd.f32 %v3053_v24, %v2943_v57  ;;  %v3060_v25 = vadd.f32 %v3059_v10, %v2896_v52  ;;  %v4096_v52 = vld [vmem:[%s4999_s12 + $0x60] sm:$0xff]  }
 0x5d3   : > { %v4004_v2 = vpop.f32.mrf.mxu0  ;;  %v4009_v60 = vpop.f32.mrf.mxu1  ;;  %3235 = vmatpush1.bf16.msra.mxu0 %v4081_v12  ;;  %v4097_v57 = vld [vmem:[%s4999_s12 + $0x20] sm:$0xff]  }
 0x5d4   : > { %3236 = vmatprep.subr.bf16.mxu0 %v4086_v14  ;;  %3716 = vmatpush3.bf16.msra.mxu1 %v4093_v49  ;;  %v3612_v12 = vld [vmem:[%s5000_s13] ss:$0 sm:$0xff] }
 0x5d5   : > { %v2946_v6 = vpop.f32.mrf.mxu1  ;;  %v2993_v7 = vpop.f32.mrf.mxu0  ;;  %3717 = vmatprep.subr.bf16.mxu1 %v4094_v51 }
 0x5d6   : > { %v3055_v32 = vadd.f32 %v3054_v16, %v2993_v7  ;;  %v3061_v22 = vadd.f32 %v3060_v25, %v2946_v6 }
 0x5d7   : > { %v4010_v19 = vpop.f32.mrf.mxu1  ;;  %v4015_v20 = vpop.f32.mrf.mxu0  ;;  %3237 = vmatpush1.bf16.msra.mxu0 %v4084_v44 }
 0x5d8   : > { %3238 = vmatprep.subr.bf16.mxu0 %v4089_v48  ;;  %3718 = vmatpush3.bf16.msra.mxu1 %v4095_v11  ;;  %v3578_v19 = vld [vmem:[%s4995_s8] ss:$0 sm:$0xff] }
 0x5d9   : > { %v2996_v9 = vpop.f32.mrf.mxu0  ;;  %v3043_v54 = vpop.f32.mrf.mxu1  ;;  %3719 = vmatprep.subr.bf16.mxu1 %v4096_v52 }
 0x5da   : > { %v3056_v23 = vadd.f32 %v3055_v32, %v3043_v54  ;;  %v3062_v36 = vadd.f32 %v3061_v22, %v2996_v9  ;;  %v3579_v9 = vld [vmem:[%s4996_s9] ss:$0 sm:$0xff] }
 0x5db   : > { %v4016_v26 = vpop.f32.mrf.mxu0  ;;  %v4021_v33 = vpop.f32.mrf.mxu1  ;;  %3239 = vmatpush1.bf16.msra.mxu0 %v4087_v50 }
 0x5dc   : > { %v3064_v27 = vadd.f32 %v4178_v15, %v3056_v23  ;;  %3720 = vmatpush3.bf16.msra.mxu1 %v4097_v57  ;;  %v4100_v33 = vld [vmem:[%s4999_s12 + $0x50] sm:$0xff]   ;;  %v4103_v15 = vld [vmem:[%s4999_s12 + $0x8] sm:$0xff]  }
 0x5dd   : > { %v3046_v13 = vpop.f32.mrf.mxu1  ;;  %3721 = vmatprep.subr.bf16.mxu1 %v4098_v58 }
 0x5de   : > { %v3063_v47 = vadd.f32 %v3062_v36, %v3046_v13  ;;  %v4850_v28 = vadd.f32 %v3577_v59, %v3064_v27  ;;  %v4102_v36 = vld [vmem:[%s4999_s12 + $0x48] sm:$0xff]   ;;  %v4104_v27 = vld [vmem:[%s4999_s12 + $0x40] sm:$0xff]  }
 0x5df   : > { %v4022_v17 = vpop.f32.mrf.mxu1  ;;  %v4105_v13 = vld [vmem:[%s4999_s12] sm:$0xff]  }
 0x5e0   : > { %v3065_v56 = vadd.f32 %v4179_v30, %v3063_v47  ;;  %3077 = vadd.xlane.f32.xlu0 %v4850_v28  ;;  %3722 = vmatpush3.bf16.msra.mxu1 %v4099_v63  ;;  %v3134_v47 = vlaneseq }
 0x5e1   : > { %3723 = vmatprep.subr.bf16.mxu1 %v4100_v33 }
 0x5e2   : > { %v4854_v0 = vadd.f32 %v3577_v59, %v3065_v56  ;;  %v4101_v59 = vld [vmem:[%s4999_s12 + $0x10] sm:$0xff]   ;;  %v3135_v17 = vshrl.u32 %v3134_v47, 7 }
 0x5e4   : > { %3079 = vadd.xlane.f32.xlu1 %v4854_v0  ;;  %3724 = vmatpush3.bf16.msra.mxu1 %v4101_v59  ;;  %v3140_v30 = vsub.s32 1, %v3135_v17  ;;  %v3136_v56 = vsub.s32 0, %v3135_v17 }
 0x5e5   : > { %3725 = vmatprep.subr.bf16.mxu1 %v4102_v36 }
 0x5e8   : > { %3726 = vmatpush3.bf16.msra.mxu1 %v4103_v15 }
 0x5e9   : > { %3727 = vmatprep.subr.bf16.mxu1 %v4104_v27 }
 0x5ec   : > { %3728 = vmatpush3.bf16.msra.mxu1 %v4105_v13 }
 0x669   : > { %v3078_v43 = vpop.xlane.xlu0 %3077 }
 0x66a   : > { %v3081_v3 = vmul.f32 0.0078125, %v3078_v43  ;;  %v3141_v43 = vrot.slane %v3132_v61, %v3140_v30 }
 0x66c   : > { %v4864_v8 = vsub.f32 %v4850_v28, %v3081_v3  ;;  %v3137_v3 = vrot.slane %v3132_v61, %v3136_v56 }
 0x66d   : > { %v3080_v53 = vpop.xlane.xlu1 %3079 }
 0x66e   : > { %v3082_v29 = vmul.f32 0.0078125, %v3080_v53  ;;  %v3085_v18 = vmul.f32 %v4864_v8, %v4864_v8 }
 0x670   : > { %v4869_v31 = vsub.f32 %v4854_v0, %v3082_v29  ;;  %3087 = vadd.xlane.f32.xlu0 %v3085_v18 }
 0x672   : > { %v3086_v21 = vmul.f32 %v4869_v31, %v4869_v31 }
 0x674   : > { %3089 = vadd.xlane.f32.xlu1 %v3086_v21 }
 0x6f9   : > { %v3088_v2 = vpop.xlane.xlu0 %3087 }
 0x6fa   : > { %v3091_v60 = vmul.f32 0.0078125, %v3088_v2 }
 0x6fc   : > { %v3093_v5 = vadd.f32 1e-05, %v3091_v60 }
 0x6fd   : > { %v3090_v24 = vpop.xlane.xlu1 %3089 }
 0x6fe   : > { %4174 = vrsqrt.f32 %v3093_v5  ;;  %v3092_v6 = vmul.f32 0.0078125, %v3090_v24 }
 0x700   : > { %v3094_v7 = vadd.f32 1e-05, %v3092_v6 }
 0x702   : > { %4176 = vrsqrt.f32 %v3094_v7 }
 0x70b   : > { %v4175_v10 = vpop.eup %4174 }
 0x70c   : > { %v3097_v16 = vmul.f32 %v4175_v10, %v4864_v8 }
 0x70e   : > { %v3105_v32 = vmul.f32 %v3578_v19, %v3097_v16 }
 0x70f   : > { %v4177_v20 = vpop.eup %4176 }
 0x710   : > { %v3098_v25 = vmul.f32 %v4177_v20, %v4869_v31  ;;  %v3113_v22 = vadd.f32 %v3579_v9, %v3105_v32 }
 0x712   : > { %v3106_v54 = vmul.f32 %v3578_v19, %v3098_v25 }
 0x714   : > { %v3114_v23 = vadd.f32 %v3579_v9, %v3106_v54 }
 0x716   : > { %v3115_v26 = vpack.c.bf16 %v3114_v23, %v3113_v22 }
 0x718   : > { %3257 = vmatmul.mubr.bf16.vlgmr.msra.gmra.mxu0 %v3115_v26 }
 0x7d8   : > { %v3258_v1 = vpop.f32.mrf.mxu0 }
 0x7d9   : > { %v3259_v31 = vadd.f32 %v3258_v1, %v3137_v3 }
 0x7da   : > { %v3260_v8 = vpop.f32.mrf.mxu0 }
 0x7db   : > { %v3261_v29 = vadd.f32 %v3260_v8, %v3141_v43  ;;  %v3267_v55 = vmax.f32 %v3259_v31, 0.0 }
 0x7dc   : > { %v3262_v53 = vpop.f32.mrf.mxu0 }
 0x7dd   : > { %v3263_v18 = vadd.f32 %v3262_v53, %v3137_v3  ;;  %v3268_v38 = vmax.f32 %v3261_v29, 0.0 }
 0x7de   : > { %v3264_v21 = vpop.f32.mrf.mxu0 }
 0x7df   : > { %v3265_v46 = vadd.f32 %v3264_v21, %v3141_v43  ;;  %v3269_v34 = vmax.f32 %v3263_v18, 0.0 }
 0x7e1   : > { %v3270_v40 = vmax.f32 %v3265_v46, 0.0  ;;  %v3271_v35 = vpack.c.bf16 %v3269_v34, %v3267_v55 }
 0x7e3   : > { %v3272_v4 = vpack.c.bf16 %v3270_v40, %v3268_v38 }
 0x7e5   : > { %3433 = vmatprep.mubr.bf16.mxu1 %v3272_v4 }
 0x7e6   : > { %3434 = vmatmul.mubr.bf16.vlgmr.msra.gmra.mxu1 %v3271_v35 }
 0x8a6   : > { %v3729_v39 = vpop.f32.mrf.mxu1 }
 0x8a8   : > { %v3730_v41 = vpop.f32.mrf.mxu1 }
 0x8a9   : > { %v3731_v62 = vadd.f32 %v3730_v41, %v3729_v39 }
 0x8aa   : > { %v3732_v14 = vpop.f32.mrf.mxu1 }
 0x8ab   : > { %v3442_v44 = vadd.f32 %v3731_v62, %v4850_v28 }
 0x8ac   : > { %v3733_v48 = vpop.f32.mrf.mxu1 }
 0x8ad   : > { %v3451_v50 = vadd.f32 %v3612_v12, %v3442_v44  ;;  %v3734_v37 = vadd.f32 %v3733_v48, %v3732_v14 }
 0x8af   : > { %3453 = vst [vmem:[%s467_s25] sm:$0xff] %v3451_v50  ;;  %v3443_v42 = vadd.f32 %v3734_v37, %v4854_v0 }
 0x8b1   : > { %v3452_v45 = vadd.f32 %v3612_v12, %v3443_v42 }
 0x8b3   : > { %3454 = vst [vmem:[%s467_s25 + $0x8] sm:$0xff] %v3452_v45 }
 0x8b4 PF: > { %s24_s29 = sadd.s32 1, %s4186_s29  }
 0x8b5   : > { %p21_p4 = scmp.ge.s32.totalorder %s24_s29, 4  }
 0x8b7   :  { %23 = sbr.rel (!%p21_p4) target bundleno = 1 (0x1), region = 106 }

</bundles_post_ra>
